<compile_context>
chip_gen: v7x
topology: tpu7x:2x2x1
jax: 0.10.0
libtpu: 0.0.40
codegen_flags: <defaults>
</compile_context>

<pallas_src>
import functools

import jax
import jax.numpy as jnp
from jax.experimental import pallas as pl
from jax.experimental.pallas import tpu as pltpu

EPS = 1e-6                      # norm_layer = partial(nn.LayerNorm, eps=1e-6)
COMPUTE_DTYPE = jnp.bfloat16    # MXU input dtype (accumulation stays f32)


def _default_vmem_limit():
    # ~3/4 of physical VMEM, capped at 100 MB: v5e/v6e (128 MiB) -> 96 MB,
    # v7x (64 MiB per TC) -> 48 MB.
    try:
        cap = int(pltpu.get_tpu_info().vmem_capacity_bytes)
    except Exception:
        cap = 128 * 1024 * 1024
    return max(32 * 1024 * 1024, min(cap * 3 // 4, 100 * 1024 * 1024))


VMEM_LIMIT = _default_vmem_limit()


# ----------------------------------------------------------------------------
# in-kernel helpers
# ----------------------------------------------------------------------------
def _layernorm(x, w, b):
    mu = jnp.mean(x, axis=-1, keepdims=True)
    var = jnp.mean((x - mu) ** 2, axis=-1, keepdims=True)
    return (x - mu) * jax.lax.rsqrt(var + EPS) * w + b


def _erf(x):
    # Abramowitz & Stegun 7.1.26 (max abs err ~1.5e-7); uses only exp/mul/div.
    p = 0.3275911
    a1, a2, a3, a4, a5 = (0.254829592, -0.284496736, 1.421413741,
                          -1.453152027, 1.061405429)
    ax = jnp.abs(x)
    t = 1.0 / (1.0 + p * ax)
    poly = ((((a5 * t + a4) * t + a3) * t + a2) * t + a1) * t
    y = 1.0 - poly * jnp.exp(-ax * ax)
    return jnp.where(x >= 0, y, -y)


def _gelu_exact(x):
    # matches nn.GELU (erf form) to ~1e-7
    return 0.5 * x * (1.0 + _erf(x * 0.7071067811865476))


def _swap_leading(x):
    """(A, B, D) -> (B, A, D); the minor (lane) dim stays in place."""
    if hasattr(pltpu, "einshape"):
        return pltpu.einshape("abd->bad", x)
    return jnp.transpose(x, (1, 0, 2))


def _evo_block_body(x, ln1w, ln1b, qkvw, qkvb, projw, projb,
                    ln2w, ln2b, fc1w, fc1b, fc2w, fc2b, *, num_heads):
    """One Evo-ViT block on a single (N, C) token slab (f32 in / f32 out).

    Returns (new_x, contrib) where contrib = sum over heads of attn[0, 1:].
    """
    N, C = x.shape
    H = num_heads
    d = C // H
    cdt = qkvw.dtype                          # bf16 compute dtype

    # --- pre-norm (self.norms[index]) ---
    xn = _layernorm(x, ln1w, ln1b)

    # --- fused QKV projection: one wide (N, C) @ (C, 3C) MXU pass ---
    # (softmax scale already folded into the q columns of qkvw / qkvb)
    qkv = jnp.dot(xn.astype(cdt), qkvw,
                  preferred_element_type=jnp.float32) + qkvb       # (N,3C) f32

    # --- single head-major relayout: (N, 3H, d) -> (3H, N, d), bf16 ---
    qkv3 = _swap_leading(qkv.astype(cdt).reshape(N, 3 * H, d))
    q3, k3, v3 = qkv3[:H], qkv3[H:2 * H], qkv3[2 * H:]             # (H, N, d)

    # --- batched attention over the head axis ---
    s = jnp.einsum("hqd,hkd->hqk", q3, k3,
                   preferred_element_type=jnp.float32)             # (H, N, N)
    s = s - jnp.max(s, axis=-1, keepdims=True)
    e = jnp.exp(s)
    attn = e * pl.reciprocal(jnp.sum(e, axis=-1, keepdims=True), approx=True)

    # cls-token attention row, summed over heads (torch.sum over dim=1)
    contrib = jnp.sum(attn[:, 0:1, 1:], axis=0)                    # (1, N-1)

    ctx = jnp.einsum("hqk,hkd->hqd", attn.astype(cdt), v3,
                     preferred_element_type=jnp.float32)           # (H, N, d)

    # --- merge heads (bf16) and run one full-depth (N,C)@(C,C) projection ---
    ctx = _swap_leading(ctx.astype(cdt)).reshape(N, C)             # (N, C)
    y = jnp.dot(ctx, projw, preferred_element_type=jnp.float32) + projb
    x = x + y                                  # residual (drop_path=Identity)

    # --- MlpBlock: x + mlp(norm2(x)) ---
    xn2 = _layernorm(x, ln2w, ln2b)
    h1 = jnp.dot(xn2.astype(cdt), fc1w,
                 preferred_element_type=jnp.float32) + fc1b
    h1 = _gelu_exact(h1)
    y2 = jnp.dot(h1.astype(cdt), fc2w,
                 preferred_element_type=jnp.float32) + fc2b
    return x + y2, contrib


_PARAM_ORDER = [
    "ln1_w", "ln1_b", "qkv_w", "qkv_b", "proj_w", "proj_b",
    "ln2_w", "ln2_b", "fc1_w", "fc1_b", "fc2_w", "fc2_b",
]


# ----------------------------------------------------------------------------
# patch-embed projection kernel  (flattened  (B*Np, Din) @ W + b)
# ----------------------------------------------------------------------------
def _matmul_bias_kernel(x_ref, w_ref, b_ref, o_ref):
    y = jnp.dot(x_ref[...].astype(w_ref.dtype), w_ref[...],
                preferred_element_type=jnp.float32) + b_ref[...]
    o_ref[...] = y.astype(o_ref.dtype)


def patch_embed_call(x2d, w, b):
    # TODO(synk): tile the row dim for very large B*num_patches.
    M, Din = x2d.shape
    Dout = w.shape[1]
    return pl.pallas_call(
        _matmul_bias_kernel,
        out_shape=jax.ShapeDtypeStruct((M, Dout), jnp.float32),
        grid=(1,),
        in_specs=[pl.BlockSpec((M, Din), lambda i: (0, 0)),
                  pl.BlockSpec((Din, Dout), lambda i: (0, 0)),
                  pl.BlockSpec((1, Dout), lambda i: (0, 0))],
        out_specs=pl.BlockSpec((M, Dout), lambda i: (0, 0)),
        compiler_params=pltpu.CompilerParams(
            dimension_semantics=("arbitrary",), vmem_limit_bytes=VMEM_LIMIT),
    )(x2d, w, b)


# ----------------------------------------------------------------------------
# fused kernel for the un-pruned prefix:  grid = (L0, B)   (weight-stationary)
# Per-batch x and the cls-attention EMA live in VMEM scratch across layers;
# each layer's weights are streamed once (constant block index over batch).
# ----------------------------------------------------------------------------
def _evo_stack_kernel(x_ref, t_ref,
                      ln1w, ln1b, qkvw, qkvb, projw, projb,
                      ln2w, ln2b, fc1w, fc1b, fc2w, fc2b,
                      x_out, ca_out,
                      x_sc, ca_sc,
                      *, num_heads, npad):
    l = pl.program_id(0)          # layer axis (outer)
    b = pl.program_id(1)          # batch axis (inner)

    @pl.when(l == 0)
    def _():
        x_sc[b] = x_ref[0]        # bring this batch's tokens into residence

    x_new, contrib = _evo_block_body(
        x_sc[b],
        ln1w[0], ln1b[0], qkvw[0], qkvb[0], projw[0], projb[0],
        ln2w[0], ln2b[0], fc1w[0], fc1b[0], fc2w[0], fc2b[0],
        num_heads=num_heads)
    x_sc[b] = x_new
    x_out[0] = x_new.astype(x_out.dtype)

    # lane-dense (padded to ca_pad) cls-attention contribution
    if npad > 0:
        contrib = jnp.concatenate(
            [contrib, jnp.zeros((1, npad), jnp.float32)], axis=-1)

    @pl.when(l == 0)
    def _():                                   # layer 0 bootstraps cls_attn
        ca_sc[pl.ds(b, 1), :] = contrib

    @pl.when(l > 0)
    def _():                                   # later layers: EMA blend
        t = t_ref[l]                           # SMEM scalar
        ca_sc[pl.ds(b, 1), :] = ((1.0 - t) * ca_sc[pl.ds(b, 1), :]
                                 + t * contrib)

    ca_out[0] = ca_sc[pl.ds(b, 1), :]


def evo_stack_call(x, stacked, tradeoff_arr, *, num_heads, ca_pad):
    B, N, C = x.shape
    L0 = tradeoff_arr.shape[0]
    npad = ca_pad - (N - 1)
    kern = functools.partial(_evo_stack_kernel, num_heads=num_heads, npad=npad)

    arrs = [stacked[k] for k in _PARAM_ORDER]
    in_specs = [
        pl.BlockSpec((1, N, C), lambda l, b: (b, 0, 0)),
        # per-layer tradeoff scalars in SMEM (no VMEM tile, no per-step DMA)
        pl.BlockSpec(memory_space=pltpu.MemorySpace.SMEM),
    ]
    # Weight blocks indexed by the OUTER layer axis only -> DMA'd once per
    # layer (weight-stationary), reused across the inner batch axis.
    in_specs += [
        pl.BlockSpec((1,) + a.shape[1:],
                     lambda l, b, r=a.ndim: (l,) + (0,) * (r - 1))
        for a in arrs
    ]
    out_shapes = (jax.ShapeDtypeStruct((B, N, C), x.dtype),
                  jax.ShapeDtypeStruct((B, 1, ca_pad), jnp.float32))
    out_specs = (pl.BlockSpec((1, N, C), lambda l, b: (b, 0, 0)),
                 pl.BlockSpec((1, 1, ca_pad), lambda l, b: (b, 0, 0)))
    return pl.pallas_call(
        kern,
        out_shape=out_shapes,
        grid=(L0, B),
        in_specs=in_specs,
        out_specs=out_specs,
        scratch_shapes=[pltpu.VMEM((B, N, C), jnp.float32),
                        pltpu.VMEM((B, ca_pad), jnp.float32)],
        compiler_params=pltpu.CompilerParams(
            dimension_semantics=("arbitrary", "arbitrary"),
            vmem_limit_bytes=VMEM_LIMIT),
    )(x, tradeoff_arr, *arrs)


# ----------------------------------------------------------------------------
# single-layer block kernel (used for the pruned layers), grid = (B,)
# ----------------------------------------------------------------------------
def _evo_block_kernel(x_ref,
                      ln1w, ln1b, qkvw, qkvb, projw, projb,
                      ln2w, ln2b, fc1w, fc1b, fc2w, fc2b,
                      x_out, cls_out,
                      *, num_heads, npad):
    x_new, contrib = _evo_block_body(
        x_ref[0],
        ln1w[...], ln1b[...], qkvw[...], qkvb[...], projw[...], projb[...],
        ln2w[...], ln2b[...], fc1w[...], fc1b[...], fc2w[...], fc2b[...],
        num_heads=num_heads)
    x_out[0] = x_new.astype(x_out.dtype)
    if npad > 0:
        contrib = jnp.concatenate(
            [contrib, jnp.zeros((1, npad), jnp.float32)], axis=-1)
    cls_out[0] = contrib


def evo_block_call(x, lp, *, num_heads, ca_pad):
    B, N, C = x.shape
    npad = ca_pad - (N - 1)
    kern = functools.partial(_evo_block_kernel, num_heads=num_heads, npad=npad)

    arrs = [lp[k] for k in _PARAM_ORDER]
    in_specs = [pl.BlockSpec((1, N, C), lambda i: (i, 0, 0))]
    in_specs += [pl.BlockSpec(a.shape, lambda i, r=a.ndim: (0,) * r)
                 for a in arrs]
    out_shapes = (jax.ShapeDtypeStruct((B, N, C), x.dtype),
                  jax.ShapeDtypeStruct((B, 1, ca_pad), jnp.float32))
    out_specs = (pl.BlockSpec((1, N, C), lambda i: (i, 0, 0)),
                 pl.BlockSpec((1, 1, ca_pad), lambda i: (i, 0, 0)))
    return pl.pallas_call(
        kern,
        out_shape=out_shapes,
        grid=(B,),
        in_specs=in_specs,
        out_specs=out_specs,
        input_output_aliases={0: 0},
        compiler_params=pltpu.CompilerParams(
            dimension_semantics=("parallel",), vmem_limit_bytes=VMEM_LIMIT),
    )(x, *arrs)


# ----------------------------------------------------------------------------
# final head kernel (whole batch):  mean over patch tokens -> LN -> classifier
# ----------------------------------------------------------------------------
def _head_kernel(x_ref, nw_ref, nb_ref, hw_ref, hb_ref, o_ref):
    xp = x_ref[...]                                 # (B, N, C)
    m = jnp.mean(xp[:, 1:, :], axis=1)              # mean over patch tokens
    m = _layernorm(m, nw_ref[...], nb_ref[...])
    logits = jnp.dot(m, hw_ref[...],
                     preferred_element_type=jnp.float32) + hb_ref[...]
    o_ref[...] = logits.astype(o_ref.dtype)


def head_call(x, nw, nb, hw, hb):
    B, N, C = x.shape
    K = hw.shape[1]
    return pl.pallas_call(
        _head_kernel,
        out_shape=jax.ShapeDtypeStruct((B, K), jnp.float32),
        grid=(1,),
        in_specs=[pl.BlockSpec((B, N, C), lambda i: (0, 0, 0)),
                  pl.BlockSpec((1, C), lambda i: (0, 0)),
                  pl.BlockSpec((1, C), lambda i: (0, 0)),
                  pl.BlockSpec((C, K), lambda i: (0, 0)),
                  pl.BlockSpec((1, K), lambda i: (0, 0))],
        out_specs=pl.BlockSpec((B, K), lambda i: (0, 0)),
        compiler_params=pltpu.CompilerParams(
            dimension_semantics=("arbitrary",), vmem_limit_bytes=VMEM_LIMIT),
    )(x, nw, nb, hw, hb)


# ----------------------------------------------------------------------------
# parameter init (deterministic, synthetic — mirrors the module's __init__)
# and one-time conversion into the kernel layout (fused QKV, scale folding,
# bf16 weight casts, layer stacking for the fused prefix).
# ----------------------------------------------------------------------------
def init_params(key, *, in_chans, patch_size, embed_dim, num_patches,
                num_classes, mlp_ratio=4.0, depth=12):
    std = 0.02
    hidden = int(embed_dim * mlp_ratio)
    keys = jax.random.split(key, 4 + depth)

    params = {
        "patch_w": std * jax.random.normal(
            keys[0], (in_chans * patch_size * patch_size, embed_dim), jnp.float32),
        "patch_b": jnp.zeros((1, embed_dim), jnp.float32),
        "cls_token": std * jax.random.normal(keys[1], (1, 1, embed_dim), jnp.float32),
        "pos_embed": std * jax.random.normal(
            keys[2], (1, num_patches + 1, embed_dim), jnp.float32),
        "norm_w": jnp.ones((1, embed_dim), jnp.float32),
        "norm_b": jnp.zeros((1, embed_dim), jnp.float32),
        "head_w": std * jax.random.normal(keys[3], (embed_dim, num_classes), jnp.float32),
        "head_b": jnp.zeros((1, num_classes), jnp.float32),
        "layers": [],
    }
    for i in range(depth):
        ks = jax.random.split(keys[4 + i], 5)
        qk_w = std * jax.random.normal(ks[0], (embed_dim, 2 * embed_dim), jnp.float32)
        layer = dict(
            ln1_w=jnp.ones((1, embed_dim), jnp.float32),
            ln1_b=jnp.zeros((1, embed_dim), jnp.float32),
            q_w=qk_w[:, :embed_dim],
            q_b=jnp.zeros((1, embed_dim), jnp.float32),
            k_w=qk_w[:, embed_dim:],
            k_b=jnp.zeros((1, embed_dim), jnp.float32),
            v_w=std * jax.random.normal(ks[1], (embed_dim, embed_dim), jnp.float32),
            v_b=jnp.zeros((1, embed_dim), jnp.float32),
            proj_w=std * jax.random.normal(ks[2], (embed_dim, embed_dim), jnp.float32),
            proj_b=jnp.zeros((1, embed_dim), jnp.float32),
            ln2_w=jnp.ones((1, embed_dim), jnp.float32),
            ln2_b=jnp.zeros((1, embed_dim), jnp.float32),
            fc1_w=std * jax.random.normal(ks[3], (embed_dim, hidden), jnp.float32),
            fc1_b=jnp.zeros((1, hidden), jnp.float32),
            fc2_w=std * jax.random.normal(ks[4], (hidden, embed_dim), jnp.float32),
            fc2_b=jnp.zeros((1, embed_dim), jnp.float32),
        )
        params["layers"].append(layer)
    return params


def _prepare_layer(layer, num_heads, compute_dtype=COMPUTE_DTYPE):
    C = layer["v_w"].shape[0]
    d = C // num_heads
    scale = d ** (-0.5)
    # fold softmax scale into Q; fuse Q/K/V into one (C, 3C) weight
    qkv_w = jnp.concatenate(
        [layer["q_w"] * scale, layer["k_w"], layer["v_w"]], axis=1)
    qkv_b = jnp.concatenate(
        [layer["q_b"] * scale, layer["k_b"], layer["v_b"]], axis=-1)
    return dict(
        ln1_w=layer["ln1_w"], ln1_b=layer["ln1_b"],
        qkv_w=qkv_w.astype(compute_dtype), qkv_b=qkv_b,
        proj_w=layer["proj_w"].astype(compute_dtype),
        proj_b=layer["proj_b"],
        ln2_w=layer["ln2_w"], ln2_b=layer["ln2_b"],
        fc1_w=layer["fc1_w"].astype(compute_dtype), fc1_b=layer["fc1_b"],
        fc2_w=layer["fc2_w"].astype(compute_dtype), fc2_b=layer["fc2_b"],
    )


def unpruned_prefix_len(prune_ratio, depth):
    L0 = 0
    while L0 < depth and prune_ratio[L0] == 1:
        L0 += 1
    assert L0 >= 1, "first layer must be unpruned (cls_attn bootstrap)"
    return L0


def prepare_params(raw, *, num_heads, prune_ratio, compute_dtype=COMPUTE_DTYPE):
    depth = len(raw["layers"])
    L0 = unpruned_prefix_len(prune_ratio, depth)
    layers = [_prepare_layer(l, num_heads, compute_dtype) for l in raw["layers"]]
    return {
        "patch_w": raw["patch_w"].astype(compute_dtype),
        "patch_b": raw["patch_b"],
        "cls_token": raw["cls_token"],
        "pos_embed": raw["pos_embed"],
        "norm_w": raw["norm_w"], "norm_b": raw["norm_b"],
        "head_w": raw["head_w"], "head_b": raw["head_b"],
        # stacked weights of the un-pruned prefix (one fused pallas_call)
        "stack": {k: jnp.stack([layers[i][k] for i in range(L0)], axis=0)
                  for k in _PARAM_ORDER},
        "layers": layers,
    }


# ----------------------------------------------------------------------------
# full eval-mode forward (glue in plain JAX, hot paths in Pallas kernels)
# ----------------------------------------------------------------------------
def evo_vit_forward(x_nchw, params, *, patch_size, num_heads,
                    prune_ratio, tradeoff):
    B, Cin, H, W = x_nchw.shape
    p = patch_size
    gh, gw = H // p, W // p
    Np = gh * gw
    depth = len(params["layers"])
    ca_pad = max(128, ((Np + 127) // 128) * 128)   # lane-dense cls-attn slab

    # im2col: (B, Cin, H, W) -> (B*num_patches, Cin*p*p), row-major patch order
    patches = (
        x_nchw.reshape(B, Cin, gh, p, gw, p)
        .transpose(0, 2, 4, 1, 3, 5)
        .reshape(B * Np, Cin * p * p)
    )
    tokens = patch_embed_call(patches, params["patch_w"], params["patch_b"])
    C = tokens.shape[-1]
    tokens = tokens.reshape(B, Np, C)

    cls_tok = jnp.broadcast_to(params["cls_token"], (B, 1, C))
    x = jnp.concatenate([cls_tok, tokens], axis=1) + params["pos_embed"]

    # --- fused, weight-stationary un-pruned prefix (layers 0 .. L0-1) ---
    L0 = unpruned_prefix_len(prune_ratio, depth)
    t_arr = jnp.asarray(tradeoff[:L0], jnp.float32)
    x, ca = evo_stack_call(x, params["stack"], t_arr,
                           num_heads=num_heads, ca_pad=ca_pad)
    cls_attn = ca[:, 0, :Np]

    # --- remaining layers (token pruning between them is data dependent) ---
    for i in range(L0, depth):
        t = tradeoff[i]
        if prune_ratio[i] != 1:
            N_ = int(Np * prune_ratio[i])
            # sort patch tokens by cls attention (descending), process top N_
            cls_sorted, idx = jax.lax.top_k(cls_attn, Np)
            x_patch = jnp.take_along_axis(x[:, 1:, :], idx[:, :, None], axis=1)
            cls_attn = cls_sorted
            x = jnp.concatenate([x[:, :1, :], x_patch], axis=1)

            x_fast, ca_blk = evo_block_call(
                x[:, :N_ + 1], params["layers"][i],
                num_heads=num_heads, ca_pad=ca_pad)
            contrib = ca_blk[:, 0, :N_]
            cls_attn = cls_attn.at[:, :N_].set(
                (1.0 - t) * cls_attn[:, :N_] + t * contrib)
            # write processed prefix back into the full (sorted) sequence
            x = jax.lax.dynamic_update_slice(x, x_fast, (0, 0, 0))
        else:
            x_new, ca_blk = evo_block_call(
                x, params["layers"][i], num_heads=num_heads, ca_pad=ca_pad)
            contrib = ca_blk[:, 0, :x.shape[1] - 1]
            cls_attn = (1.0 - t) * cls_attn + t * contrib
            x = x_new

    # head: mean over patch tokens -> norm -> classifier   (eval-mode output)
    return head_call(x, params["norm_w"], params["norm_b"],
                     params["head_w"], params["head_b"])


# ----------------------------------------------------------------------------
if __name__ == "__main__":
    # small, module-consistent configuration
    B, IN_CHANS, IMG, PATCH = 2, 3, 16, 4
    EMBED_DIM, NUM_HEADS, NUM_CLASSES = 32, 4, 10
    NUM_PATCHES = (IMG // PATCH) ** 2                 # 16
    PRUNE_RATIO = (1, 1, 1, 1, 0.5, 0.5, 0.5, 0.5, 0.5, 0.5, 0.5, 0.5)
    TRADEOFF = (0.5,) * 12

    key = jax.random.PRNGKey(0)
    k_x, k_p = jax.random.split(key)
    x = jax.random.normal(k_x, (B, IN_CHANS, IMG, IMG), jnp.float32)
    raw_params = init_params(
        k_p, in_chans=IN_CHANS, patch_size=PATCH, embed_dim=EMBED_DIM,
        num_patches=NUM_PATCHES, num_classes=NUM_CLASSES)
    params = prepare_params(raw_params, num_heads=NUM_HEADS,
                            prune_ratio=PRUNE_RATIO)

    fwd = jax.jit(functools.partial(
        evo_vit_forward, patch_size=PATCH, num_heads=NUM_HEADS,
        prune_ratio=PRUNE_RATIO, tradeoff=TRADEOFF))

    logits = jax.block_until_ready(fwd(x, params))

    assert logits.shape == (B, NUM_CLASSES)
    assert bool(jnp.all(jnp.isfinite(logits)))
    print("KERNEL_OK")
</pallas_src>

<mosaic_0001>
module attributes {stable_mosaic.version = 11 : i64} {
  func.func @_matmul_bias_kernel(%arg0: i32, %arg1: memref<32x48xf32, #tpu.memory_space<vmem>>, %arg2: memref<48x32xbf16, #tpu.memory_space<vmem>>, %arg3: memref<1x32xf32, #tpu.memory_space<vmem>>, %arg4: memref<32x32xf32, #tpu.memory_space<vmem>>) attributes {dimension_semantics = [#tpu.dimension_semantics<arbitrary>], iteration_bounds = array<i64: 1>, scalar_prefetch = 0 : i64, scratch_operands = 0 : i64, tpu.core_type = #tpu.core_type<tc>, window_params = [{pipeline_mode = #tpu.pipeline_mode<synchronous>, transform_indices = @transform_0, window_bounds = array<i64: 32, 48>}, {pipeline_mode = #tpu.pipeline_mode<synchronous>, transform_indices = @transform_1, window_bounds = array<i64: 48, 32>}, {pipeline_mode = #tpu.pipeline_mode<synchronous>, transform_indices = @transform_2, window_bounds = array<i64: 1, 32>}, {pipeline_mode = #tpu.pipeline_mode<synchronous>, transform_indices = @transform_3, window_bounds = array<i64: 32, 32>}]} {
    %c0 = arith.constant 0 : index
    %c0_0 = arith.constant 0 : index
    %0 = vector.load %arg1[%c0, %c0_0] : memref<32x48xf32, #tpu.memory_space<vmem>>, vector<32x48xf32>
    %1 = arith.truncf %0 : vector<32x48xf32> to vector<32x48xbf16>
    %c0_1 = arith.constant 0 : index
    %c0_2 = arith.constant 0 : index
    %2 = vector.load %arg2[%c0_1, %c0_2] : memref<48x32xbf16, #tpu.memory_space<vmem>>, vector<48x32xbf16>
    %cst = arith.constant dense<0.000000e+00> : vector<32x32xf32>
    %3 = tpu.matmul %1, %2, %cst {dimension_numbers = #tpu.dot_dimension_numbers<[1], [0], [0], [1], [0, 0, 1, 1], [], []>} : vector<32x48xbf16>, vector<48x32xbf16>, vector<32x32xf32> -> vector<32x32xf32>
    %c0_3 = arith.constant 0 : index
    %c0_4 = arith.constant 0 : index
    %4 = vector.load %arg3[%c0_3, %c0_4] : memref<1x32xf32, #tpu.memory_space<vmem>>, vector<1x32xf32>
    %5 = vector.broadcast %4 : vector<1x32xf32> to vector<32x32xf32>
    %6 = arith.addf %3, %5 : vector<32x32xf32>
    %c0_5 = arith.constant 0 : index
    %c0_6 = arith.constant 0 : index
    %7 = vector.load %arg4[%c0_5, %c0_6] : memref<32x32xf32, #tpu.memory_space<vmem>>, vector<32x32xf32>
    tpu.vector_store %arg4[%c0_5, %c0_6], %6 {strides = array<i32>} : memref<32x32xf32, #tpu.memory_space<vmem>>, vector<32x32xf32>,
    return
  }
  func.func @transform_0(%arg0: i32) -> (i32, i32) {
    %c0_i32 = arith.constant 0 : i32
    %c0_i32_0 = arith.constant 0 : i32
    %c0_i32_1 = arith.constant 0 : i32
    return %c0_i32, %c0_i32_0 : i32, i32
  }
  func.func @transform_1(%arg0: i32) -> (i32, i32) {
    %c0_i32 = arith.constant 0 : i32
    %c0_i32_0 = arith.constant 0 : i32
    %c0_i32_1 = arith.constant 0 : i32
    return %c0_i32, %c0_i32_0 : i32, i32
  }
  func.func @transform_2(%arg0: i32) -> (i32, i32) {
    %c0_i32 = arith.constant 0 : i32
    %c0_i32_0 = arith.constant 0 : i32
    %c0_i32_1 = arith.constant 0 : i32
    return %c0_i32, %c0_i32_0 : i32, i32
  }
  func.func @transform_3(%arg0: i32) -> (i32, i32) {
    %c0_i32 = arith.constant 0 : i32
    %c0_i32_0 = arith.constant 0 : i32
    %c0_i32_1 = arith.constant 0 : i32
    return %c0_i32, %c0_i32_0 : i32, i32
  }
}

module attributes {stable_mosaic.version = 11 : i64} {
  func.func @_evo_stack_kernel(%arg0: i32, %arg1: i32, %arg2: memref<1x17x32xf32, #tpu.memory_space<vmem>>, %arg3: memref<4xf32, #tpu.memory_space<smem>>, %arg4: memref<1x1x32xf32, #tpu.memory_space<vmem>>, %arg5: memref<1x1x32xf32, #tpu.memory_space<vmem>>, %arg6: memref<1x32x96xbf16, #tpu.memory_space<vmem>>, %arg7: memref<1x1x96xf32, #tpu.memory_space<vmem>>, %arg8: memref<1x32x32xbf16, #tpu.memory_space<vmem>>, %arg9: memref<1x1x32xf32, #tpu.memory_space<vmem>>, %arg10: memref<1x1x32xf32, #tpu.memory_space<vmem>>, %arg11: memref<1x1x32xf32, #tpu.memory_space<vmem>>, %arg12: memref<1x32x128xbf16, #tpu.memory_space<vmem>>, %arg13: memref<1x1x128xf32, #tpu.memory_space<vmem>>, %arg14: memref<1x128x32xbf16, #tpu.memory_space<vmem>>, %arg15: memref<1x1x32xf32, #tpu.memory_space<vmem>>, %arg16: memref<1x17x32xf32, #tpu.memory_space<vmem>>, %arg17: memref<1x1x128xf32, #tpu.memory_space<vmem>>, %arg18: memref<2x17x32xf32, #tpu.memory_space<vmem>>, %arg19: memref<2x128xf32, #tpu.memory_space<vmem>>) attributes {dimension_semantics = [#tpu.dimension_semantics<arbitrary>, #tpu.dimension_semantics<arbitrary>], iteration_bounds = array<i64: 4, 2>, scalar_prefetch = 0 : i64, scratch_operands = 2 : i64, tpu.core_type = #tpu.core_type<tc>, window_params = [{transform_indices = @transform_0, window_bounds = array<i64: 1, 17, 32>}, {transform_indices = @transform_1, window_bounds = array<i64: 4>}, {transform_indices = @transform_2, window_bounds = array<i64: 1, 1, 32>}, {transform_indices = @transform_3, window_bounds = array<i64: 1, 1, 32>}, {transform_indices = @transform_4, window_bounds = array<i64: 1, 32, 96>}, {transform_indices = @transform_5, window_bounds = array<i64: 1, 1, 96>}, {transform_indices = @transform_6, window_bounds = array<i64: 1, 32, 32>}, {transform_indices = @transform_7, window_bounds = array<i64: 1, 1, 32>}, {transform_indices = @transform_8, window_bounds = array<i64: 1, 1, 32>}, {transform_indices = @transform_9, window_bounds = array<i64: 1, 1, 32>}, {transform_indices = @transform_10, window_bounds = array<i64: 1, 32, 128>}, {transform_indices = @transform_11, window_bounds = array<i64: 1, 1, 128>}, {transform_indices = @transform_12, window_bounds = array<i64: 1, 128, 32>}, {transform_indices = @transform_13, window_bounds = array<i64: 1, 1, 32>}, {transform_indices = @transform_14, window_bounds = array<i64: 1, 17, 32>}, {transform_indices = @transform_15, window_bounds = array<i64: 1, 1, 128>}]} {
    %c0_i32 = arith.constant 0 : i32
    %0 = arith.cmpi eq, %arg0, %c0_i32 : i32
    %1 = arith.extui %0 : i1 to i32
    %c0_i32_0 = arith.constant 0 : i32
    %2 = arith.cmpi ne, %1, %c0_i32_0 : i32
    scf.if %2 {
      %c0_85 = arith.constant 0 : index
      %c0_86 = arith.constant 0 : index
      %c0_87 = arith.constant 0 : index
      %175 = vector.load %arg2[%c0_85, %c0_86, %c0_87] : memref<1x17x32xf32, #tpu.memory_space<vmem>>, vector<1x17x32xf32>
      %176 = vector.shape_cast %175 : vector<1x17x32xf32> to vector<17x32xf32>
      %177 = arith.index_cast %arg1 : i32 to index
      %c0_88 = arith.constant 0 : index
      %c0_89 = arith.constant 0 : index
      %178 = vector.load %arg18[%177, %c0_88, %c0_89] : memref<2x17x32xf32, #tpu.memory_space<vmem>>, vector<1x17x32xf32>
      %179 = vector.shape_cast %178 : vector<1x17x32xf32> to vector<17x32xf32>
      %180 = vector.shape_cast %176 : vector<17x32xf32> to vector<1x17x32xf32>
      tpu.vector_store %arg18[%177, %c0_88, %c0_89], %180 {strides = array<i32>} : memref<2x17x32xf32, #tpu.memory_space<vmem>>, vector<1x17x32xf32>,
    } else {
    }
    %3 = arith.index_cast %arg1 : i32 to index
    %c0 = arith.constant 0 : index
    %c0_1 = arith.constant 0 : index
    %4 = vector.load %arg18[%3, %c0, %c0_1] : memref<2x17x32xf32, #tpu.memory_space<vmem>>, vector<1x17x32xf32>
    %5 = vector.shape_cast %4 : vector<1x17x32xf32> to vector<17x32xf32>
    %c0_2 = arith.constant 0 : index
    %c0_3 = arith.constant 0 : index
    %c0_4 = arith.constant 0 : index
    %6 = vector.load %arg4[%c0_2, %c0_3, %c0_4] : memref<1x1x32xf32, #tpu.memory_space<vmem>>, vector<1x1x32xf32>
    %7 = vector.shape_cast %6 : vector<1x1x32xf32> to vector<1x32xf32>
    %c0_5 = arith.constant 0 : index
    %c0_6 = arith.constant 0 : index
    %c0_7 = arith.constant 0 : index
    %8 = vector.load %arg5[%c0_5, %c0_6, %c0_7] : memref<1x1x32xf32, #tpu.memory_space<vmem>>, vector<1x1x32xf32>
    %9 = vector.shape_cast %8 : vector<1x1x32xf32> to vector<1x32xf32>
    %c0_8 = arith.constant 0 : index
    %c0_9 = arith.constant 0 : index
    %c0_10 = arith.constant 0 : index
    %10 = vector.load %arg6[%c0_8, %c0_9, %c0_10] : memref<1x32x96xbf16, #tpu.memory_space<vmem>>, vector<1x32x96xbf16>
    %11 = vector.shape_cast %10 : vector<1x32x96xbf16> to vector<32x96xbf16>
    %c0_11 = arith.constant 0 : index
    %c0_12 = arith.constant 0 : index
    %c0_13 = arith.constant 0 : index
    %12 = vector.load %arg7[%c0_11, %c0_12, %c0_13] : memref<1x1x96xf32, #tpu.memory_space<vmem>>, vector<1x1x96xf32>
    %13 = vector.shape_cast %12 : vector<1x1x96xf32> to vector<1x96xf32>
    %c0_14 = arith.constant 0 : index
    %c0_15 = arith.constant 0 : index
    %c0_16 = arith.constant 0 : index
    %14 = vector.load %arg8[%c0_14, %c0_15, %c0_16] : memref<1x32x32xbf16, #tpu.memory_space<vmem>>, vector<1x32x32xbf16>
    %15 = vector.shape_cast %14 : vector<1x32x32xbf16> to vector<32x32xbf16>
    %c0_17 = arith.constant 0 : index
    %c0_18 = arith.constant 0 : index
    %c0_19 = arith.constant 0 : index
    %16 = vector.load %arg9[%c0_17, %c0_18, %c0_19] : memref<1x1x32xf32, #tpu.memory_space<vmem>>, vector<1x1x32xf32>
    %17 = vector.shape_cast %16 : vector<1x1x32xf32> to vector<1x32xf32>
    %c0_20 = arith.constant 0 : index
    %c0_21 = arith.constant 0 : index
    %c0_22 = arith.constant 0 : index
    %18 = vector.load %arg10[%c0_20, %c0_21, %c0_22] : memref<1x1x32xf32, #tpu.memory_space<vmem>>, vector<1x1x32xf32>
    %19 = vector.shape_cast %18 : vector<1x1x32xf32> to vector<1x32xf32>
    %c0_23 = arith.constant 0 : index
    %c0_24 = arith.constant 0 : index
    %c0_25 = arith.constant 0 : index
    %20 = vector.load %arg11[%c0_23, %c0_24, %c0_25] : memref<1x1x32xf32, #tpu.memory_space<vmem>>, vector<1x1x32xf32>
    %21 = vector.shape_cast %20 : vector<1x1x32xf32> to vector<1x32xf32>
    %c0_26 = arith.constant 0 : index
    %c0_27 = arith.constant 0 : index
    %c0_28 = arith.constant 0 : index
    %22 = vector.load %arg12[%c0_26, %c0_27, %c0_28] : memref<1x32x128xbf16, #tpu.memory_space<vmem>>, vector<1x32x128xbf16>
    %23 = vector.shape_cast %22 : vector<1x32x128xbf16> to vector<32x128xbf16>
    %c0_29 = arith.constant 0 : index
    %c0_30 = arith.constant 0 : index
    %c0_31 = arith.constant 0 : index
    %24 = vector.load %arg13[%c0_29, %c0_30, %c0_31] : memref<1x1x128xf32, #tpu.memory_space<vmem>>, vector<1x1x128xf32>
    %25 = vector.shape_cast %24 : vector<1x1x128xf32> to vector<1x128xf32>
    %c0_32 = arith.constant 0 : index
    %c0_33 = arith.constant 0 : index
    %c0_34 = arith.constant 0 : index
    %26 = vector.load %arg14[%c0_32, %c0_33, %c0_34] : memref<1x128x32xbf16, #tpu.memory_space<vmem>>, vector<1x128x32xbf16>
    %27 = vector.shape_cast %26 : vector<1x128x32xbf16> to vector<128x32xbf16>
    %c0_35 = arith.constant 0 : index
    %c0_36 = arith.constant 0 : index
    %c0_37 = arith.constant 0 : index
    %28 = vector.load %arg15[%c0_35, %c0_36, %c0_37] : memref<1x1x32xf32, #tpu.memory_space<vmem>>, vector<1x1x32xf32>
    %29 = vector.shape_cast %28 : vector<1x1x32xf32> to vector<1x32xf32>
    %cst = arith.constant dense<0.000000e+00> : vector<17xf32>
    %30 = vector.multi_reduction <add>, %5, %cst [1] : vector<17x32xf32> to vector<17xf32>
    %31 = vector.shape_cast %30 : vector<17xf32> to vector<17x1xf32>
    %cst_38 = arith.constant 3.200000e+01 : f32
    %32 = vector.broadcast %cst_38 : f32 to vector<17x1xf32>
    %33 = arith.divf %31, %32 : vector<17x1xf32>
    %34 = vector.broadcast %33 : vector<17x1xf32> to vector<17x32xf32>
    %35 = arith.subf %5, %34 : vector<17x32xf32>
    %36 = arith.mulf %35, %35 : vector<17x32xf32>
    %cst_39 = arith.constant dense<0.000000e+00> : vector<17xf32>
    %37 = vector.multi_reduction <add>, %36, %cst_39 [1] : vector<17x32xf32> to vector<17xf32>
    %38 = vector.shape_cast %37 : vector<17xf32> to vector<17x1xf32>
    %cst_40 = arith.constant 3.200000e+01 : f32
    %39 = vector.broadcast %cst_40 : f32 to vector<17x1xf32>
    %40 = arith.divf %38, %39 : vector<17x1xf32>
    %41 = vector.broadcast %33 : vector<17x1xf32> to vector<17x32xf32>
    %42 = arith.subf %5, %41 : vector<17x32xf32>
    %cst_41 = arith.constant 9.99999997E-7 : f32
    %43 = vector.broadcast %cst_41 : f32 to vector<17x1xf32>
    %44 = arith.addf %40, %43 : vector<17x1xf32>
    %45 = math.rsqrt %44 : vector<17x1xf32>
    %46 = vector.broadcast %45 : vector<17x1xf32> to vector<17x32xf32>
    %47 = arith.mulf %42, %46 : vector<17x32xf32>
    %48 = vector.broadcast %7 : vector<1x32xf32> to vector<17x32xf32>
    %49 = arith.mulf %47, %48 : vector<17x32xf32>
    %50 = vector.broadcast %9 : vector<1x32xf32> to vector<17x32xf32>
    %51 = arith.addf %49, %50 : vector<17x32xf32>
    %52 = arith.truncf %51 : vector<17x32xf32> to vector<17x32xbf16>
    %cst_42 = arith.constant dense<0.000000e+00> : vector<17x96xf32>
    %53 = tpu.matmul %52, %11, %cst_42 {dimension_numbers = #tpu.dot_dimension_numbers<[1], [0], [0], [1], [0, 0, 1, 1], [], []>} : vector<17x32xbf16>, vector<32x96xbf16>, vector<17x96xf32> -> vector<17x96xf32>
    %54 = vector.broadcast %13 : vector<1x96xf32> to vector<17x96xf32>
    %55 = arith.addf %53, %54 : vector<17x96xf32>
    %56 = arith.truncf %55 : vector<17x96xf32> to vector<17x96xbf16>
    %57 = vector.shape_cast %56 : vector<17x96xbf16> to vector<17x12x8xbf16>
    %58 = tpu.transpose %57, [1, 0, 2] : vector<17x12x8xbf16> -> vector<12x17x8xbf16>
    %59 = vector.extract_strided_slice %58 {offsets = [0, 0, 0], sizes = [4, 17, 8], strides = [1, 1, 1]} : vector<12x17x8xbf16> to vector<4x17x8xbf16>
    %60 = vector.extract_strided_slice %58 {offsets = [4, 0, 0], sizes = [4, 17, 8], strides = [1, 1, 1]} : vector<12x17x8xbf16> to vector<4x17x8xbf16>
    %61 = vector.extract_strided_slice %58 {offsets = [8, 0, 0], sizes = [4, 17, 8], strides = [1, 1, 1]} : vector<12x17x8xbf16> to vector<4x17x8xbf16>
    "tpu.trace_start"() <{level = 10 : i32, message = "hqd,hkd->hqk"}> : () -> ()
    %cst_43 = arith.constant dense<0.000000e+00> : vector<4x17x17xf32>
    %62 = tpu.matmul %59, %60, %cst_43 {dimension_numbers = #tpu.dot_dimension_numbers<[2], [2], [1], [1], [0, 0, 0, 1, 1, 1], [0], [0]>} : vector<4x17x8xbf16>, vector<4x17x8xbf16>, vector<4x17x17xf32> -> vector<4x17x17xf32>
    "tpu.trace_stop"() : () -> ()
    %cst_44 = arith.constant dense<0xFF800000> : vector<4x17xf32>
    %63 = vector.multi_reduction <maximumf>, %62, %cst_44 [2] : vector<4x17x17xf32> to vector<4x17xf32>
    %64 = vector.shape_cast %63 : vector<4x17xf32> to vector<4x17x1xf32>
    %65 = vector.broadcast %64 : vector<4x17x1xf32> to vector<4x17x17xf32>
    %66 = arith.subf %62, %65 : vector<4x17x17xf32>
    %67 = math.exp %66 : vector<4x17x17xf32>
    %cst_45 = arith.constant dense<0.000000e+00> : vector<4x17xf32>
    %68 = vector.multi_reduction <add>, %67, %cst_45 [2] : vector<4x17x17xf32> to vector<4x17xf32>
    %69 = vector.shape_cast %68 : vector<4x17xf32> to vector<4x17x1xf32>
    %70 = tpu.reciprocal %69 {approx = true} : vector<4x17x1xf32> -> vector<4x17x1xf32>
    %71 = vector.broadcast %70 : vector<4x17x1xf32> to vector<4x17x17xf32>
    %72 = arith.mulf %67, %71 : vector<4x17x17xf32>
    %73 = vector.extract_strided_slice %72 {offsets = [0, 0, 1], sizes = [4, 1, 16], strides = [1, 1, 1]} : vector<4x17x17xf32> to vector<4x1x16xf32>
    %cst_46 = arith.constant dense<0.000000e+00> : vector<1x16xf32>
    %74 = vector.multi_reduction <add>, %73, %cst_46 [0] : vector<4x1x16xf32> to vector<1x16xf32>
    %75 = arith.truncf %72 : vector<4x17x17xf32> to vector<4x17x17xbf16>
    "tpu.trace_start"() <{level = 10 : i32, message = "hqk,hkd->hqd"}> : () -> ()
    %cst_47 = arith.constant dense<0.000000e+00> : vector<4x17x8xf32>
    %76 = tpu.matmul %75, %61, %cst_47 {dimension_numbers = #tpu.dot_dimension_numbers<[2], [1], [1], [2], [0, 0, 0, 1, 1, 2], [0], [0]>} : vector<4x17x17xbf16>, vector<4x17x8xbf16>, vector<4x17x8xf32> -> vector<4x17x8xf32>
    "tpu.trace_stop"() : () -> ()
    %77 = arith.truncf %76 : vector<4x17x8xf32> to vector<4x17x8xbf16>
    %78 = tpu.transpose %77, [1, 0, 2] : vector<4x17x8xbf16> -> vector<17x4x8xbf16>
    %79 = vector.shape_cast %78 : vector<17x4x8xbf16> to vector<17x32xbf16>
    %cst_48 = arith.constant dense<0.000000e+00> : vector<17x32xf32>
    %80 = tpu.matmul %79, %15, %cst_48 {dimension_numbers = #tpu.dot_dimension_numbers<[1], [0], [0], [1], [0, 0, 1, 1], [], []>} : vector<17x32xbf16>, vector<32x32xbf16>, vector<17x32xf32> -> vector<17x32xf32>
    %81 = vector.broadcast %17 : vector<1x32xf32> to vector<17x32xf32>
    %82 = arith.addf %80, %81 : vector<17x32xf32>
    %83 = arith.addf %5, %82 : vector<17x32xf32>
    %cst_49 = arith.constant dense<0.000000e+00> : vector<17xf32>
    %84 = vector.multi_reduction <add>, %83, %cst_49 [1] : vector<17x32xf32> to vector<17xf32>
    %85 = vector.shape_cast %84 : vector<17xf32> to vector<17x1xf32>
    %cst_50 = arith.constant 3.200000e+01 : f32
    %86 = vector.broadcast %cst_50 : f32 to vector<17x1xf32>
    %87 = arith.divf %85, %86 : vector<17x1xf32>
    %88 = vector.broadcast %87 : vector<17x1xf32> to vector<17x32xf32>
    %89 = arith.subf %83, %88 : vector<17x32xf32>
    %90 = arith.mulf %89, %89 : vector<17x32xf32>
    %cst_51 = arith.constant dense<0.000000e+00> : vector<17xf32>
    %91 = vector.multi_reduction <add>, %90, %cst_51 [1] : vector<17x32xf32> to vector<17xf32>
    %92 = vector.shape_cast %91 : vector<17xf32> to vector<17x1xf32>
    %cst_52 = arith.constant 3.200000e+01 : f32
    %93 = vector.broadcast %cst_52 : f32 to vector<17x1xf32>
    %94 = arith.divf %92, %93 : vector<17x1xf32>
    %95 = vector.broadcast %87 : vector<17x1xf32> to vector<17x32xf32>
    %96 = arith.subf %83, %95 : vector<17x32xf32>
    %cst_53 = arith.constant 9.99999997E-7 : f32
    %97 = vector.broadcast %cst_53 : f32 to vector<17x1xf32>
    %98 = arith.addf %94, %97 : vector<17x1xf32>
    %99 = math.rsqrt %98 : vector<17x1xf32>
    %100 = vector.broadcast %99 : vector<17x1xf32> to vector<17x32xf32>
    %101 = arith.mulf %96, %100 : vector<17x32xf32>
    %102 = vector.broadcast %19 : vector<1x32xf32> to vector<17x32xf32>
    %103 = arith.mulf %101, %102 : vector<17x32xf32>
    %104 = vector.broadcast %21 : vector<1x32xf32> to vector<17x32xf32>
    %105 = arith.addf %103, %104 : vector<17x32xf32>
    %106 = arith.truncf %105 : vector<17x32xf32> to vector<17x32xbf16>
    %cst_54 = arith.constant dense<0.000000e+00> : vector<17x128xf32>
    %107 = tpu.matmul %106, %23, %cst_54 {dimension_numbers = #tpu.dot_dimension_numbers<[1], [0], [0], [1], [0, 0, 1, 1], [], []>} : vector<17x32xbf16>, vector<32x128xbf16>, vector<17x128xf32> -> vector<17x128xf32>
    %108 = vector.broadcast %25 : vector<1x128xf32> to vector<17x128xf32>
    %109 = arith.addf %107, %108 : vector<17x128xf32>
    %cst_55 = arith.constant 5.000000e-01 : f32
    %110 = vector.broadcast %cst_55 : f32 to vector<17x128xf32>
    %111 = arith.mulf %110, %109 : vector<17x128xf32>
    %cst_56 = arith.constant 0.707106769 : f32
    %112 = vector.broadcast %cst_56 : f32 to vector<17x128xf32>
    %113 = arith.mulf %109, %112 : vector<17x128xf32>
    %114 = math.absf %113 : vector<17x128xf32>
    %cst_57 = arith.constant 0.327591091 : f32
    %115 = vector.broadcast %cst_57 : f32 to vector<17x128xf32>
    %116 = arith.mulf %115, %114 : vector<17x128xf32>
    %cst_58 = arith.constant 1.000000e+00 : f32
    %117 = vector.broadcast %cst_58 : f32 to vector<17x128xf32>
    %118 = arith.addf %117, %116 : vector<17x128xf32>
    %cst_59 = arith.constant 1.000000e+00 : f32
    %119 = vector.broadcast %cst_59 : f32 to vector<17x128xf32>
    %120 = arith.divf %119, %118 : vector<17x128xf32>
    %cst_60 = arith.constant 1.06140542 : f32
    %121 = vector.broadcast %cst_60 : f32 to vector<17x128xf32>
    %122 = arith.mulf %121, %120 : vector<17x128xf32>
    %cst_61 = arith.constant -1.45315206 : f32
    %123 = vector.broadcast %cst_61 : f32 to vector<17x128xf32>
    %124 = arith.addf %122, %123 : vector<17x128xf32>
    %125 = arith.mulf %124, %120 : vector<17x128xf32>
    %cst_62 = arith.constant 1.42141378 : f32
    %126 = vector.broadcast %cst_62 : f32 to vector<17x128xf32>
    %127 = arith.addf %125, %126 : vector<17x128xf32>
    %128 = arith.mulf %127, %120 : vector<17x128xf32>
    %cst_63 = arith.constant -0.284496725 : f32
    %129 = vector.broadcast %cst_63 : f32 to vector<17x128xf32>
    %130 = arith.addf %128, %129 : vector<17x128xf32>
    %131 = arith.mulf %130, %120 : vector<17x128xf32>
    %cst_64 = arith.constant 0.254829586 : f32
    %132 = vector.broadcast %cst_64 : f32 to vector<17x128xf32>
    %133 = arith.addf %131, %132 : vector<17x128xf32>
    %134 = arith.mulf %133, %120 : vector<17x128xf32>
    %cst_65 = arith.constant 0.000000e+00 : f32
    %135 = vector.broadcast %cst_65 : f32 to vector<17x128xf32>
    %136 = arith.subf %135, %114 : vector<17x128xf32>
    %137 = arith.mulf %136, %114 : vector<17x128xf32>
    %138 = math.exp %137 : vector<17x128xf32>
    %139 = arith.mulf %134, %138 : vector<17x128xf32>
    %cst_66 = arith.constant 1.000000e+00 : f32
    %140 = vector.broadcast %cst_66 : f32 to vector<17x128xf32>
    %141 = arith.subf %140, %139 : vector<17x128xf32>
    %cst_67 = arith.constant 0.000000e+00 : f32
    %142 = vector.broadcast %cst_67 : f32 to vector<17x128xf32>
    %143 = arith.cmpf oge, %113, %142 : vector<17x128xf32>
    %cst_68 = arith.constant 0.000000e+00 : f32
    %144 = vector.broadcast %cst_68 : f32 to vector<17x128xf32>
    %145 = arith.subf %144, %141 : vector<17x128xf32>
    %146 = arith.select %143, %141, %145 : vector<17x128xi1>, vector<17x128xf32>
    %cst_69 = arith.constant 1.000000e+00 : f32
    %147 = vector.broadcast %cst_69 : f32 to vector<17x128xf32>
    %148 = arith.addf %147, %146 : vector<17x128xf32>
    %149 = arith.mulf %111, %148 : vector<17x128xf32>
    %150 = arith.truncf %149 : vector<17x128xf32> to vector<17x128xbf16>
    %cst_70 = arith.constant dense<0.000000e+00> : vector<17x32xf32>
    %151 = tpu.matmul %150, %27, %cst_70 {dimension_numbers = #tpu.dot_dimension_numbers<[1], [0], [0], [1], [0, 0, 1, 1], [], []>} : vector<17x128xbf16>, vector<128x32xbf16>, vector<17x32xf32> -> vector<17x32xf32>
    %152 = vector.broadcast %29 : vector<1x32xf32> to vector<17x32xf32>
    %153 = arith.addf %151, %152 : vector<17x32xf32>
    %154 = arith.addf %83, %153 : vector<17x32xf32>
    %155 = arith.index_cast %arg1 : i32 to index
    %c0_71 = arith.constant 0 : index
    %c0_72 = arith.constant 0 : index
    %156 = vector.load %arg18[%155, %c0_71, %c0_72] : memref<2x17x32xf32, #tpu.memory_space<vmem>>, vector<1x17x32xf32>
    %157 = vector.shape_cast %156 : vector<1x17x32xf32> to vector<17x32xf32>
    %158 = vector.shape_cast %154 : vector<17x32xf32> to vector<1x17x32xf32>
    tpu.vector_store %arg18[%155, %c0_71, %c0_72], %158 {strides = array<i32>} : memref<2x17x32xf32, #tpu.memory_space<vmem>>, vector<1x17x32xf32>,
    %c0_73 = arith.constant 0 : index
    %c0_74 = arith.constant 0 : index
    %c0_75 = arith.constant 0 : index
    %159 = vector.load %arg16[%c0_73, %c0_74, %c0_75] : memref<1x17x32xf32, #tpu.memory_space<vmem>>, vector<1x17x32xf32>
    %160 = vector.shape_cast %159 : vector<1x17x32xf32> to vector<17x32xf32>
    %161 = vector.shape_cast %154 : vector<17x32xf32> to vector<1x17x32xf32>
    tpu.vector_store %arg16[%c0_73, %c0_74, %c0_75], %161 {strides = array<i32>} : memref<1x17x32xf32, #tpu.memory_space<vmem>>, vector<1x17x32xf32>,
    %cst_76 = arith.constant 0.000000e+00 : f32
    %162 = vector.broadcast %cst_76 : f32 to vector<1x112xf32>
    %163 = tpu.concatenate %74, %162 in 1 : vector<1x16xf32>, vector<1x112xf32> -> vector<1x128xf32>
    %c0_i32_77 = arith.constant 0 : i32
    %164 = arith.cmpi eq, %arg0, %c0_i32_77 : i32
    %165 = arith.extui %164 : i1 to i32
    %c0_i32_78 = arith.constant 0 : i32
    %166 = arith.cmpi ne, %165, %c0_i32_78 : i32
    scf.if %166 {
      %175 = arith.index_cast %arg1 : i32 to index
      %c0_85 = arith.constant 0 : index
      %176 = vector.load %arg19[%175, %c0_85] : memref<2x128xf32, #tpu.memory_space<vmem>>, vector<1x128xf32>
      tpu.vector_store %arg19[%175, %c0_85], %163 {strides = array<i32>} : memref<2x128xf32, #tpu.memory_space<vmem>>, vector<1x128xf32>,
    } else {
    }
    %c0_i32_79 = arith.constant 0 : i32
    %167 = arith.cmpi sgt, %arg0, %c0_i32_79 : i32
    %168 = arith.extui %167 : i1 to i32
    %c0_i32_80 = arith.constant 0 : i32
    %169 = arith.cmpi ne, %168, %c0_i32_80 : i32
    scf.if %169 {
      %175 = arith.index_cast %arg0 : i32 to index
      %176 = memref.load %arg3[%175] : memref<4xf32, #tpu.memory_space<smem>>
      %cst_85 = arith.constant 1.000000e+00 : f32
      %177 = arith.subf %cst_85, %176 : f32
      %178 = arith.index_cast %arg1 : i32 to index
      %c0_86 = arith.constant 0 : index
      %179 = vector.load %arg19[%178, %c0_86] : memref<2x128xf32, #tpu.memory_space<vmem>>, vector<1x128xf32>
      %180 = vector.broadcast %177 : f32 to vector<1x128xf32>
      %181 = arith.mulf %180, %179 : vector<1x128xf32>
      %182 = vector.broadcast %176 : f32 to vector<1x128xf32>
      %183 = arith.mulf %182, %163 : vector<1x128xf32>
      %184 = arith.addf %181, %183 : vector<1x128xf32>
      %185 = arith.index_cast %arg1 : i32 to index
      %c0_87 = arith.constant 0 : index
      %186 = vector.load %arg19[%185, %c0_87] : memref<2x128xf32, #tpu.memory_space<vmem>>, vector<1x128xf32>
      tpu.vector_store %arg19[%185, %c0_87], %184 {strides = array<i32>} : memref<2x128xf32, #tpu.memory_space<vmem>>, vector<1x128xf32>,
    } else {
    }
    %170 = arith.index_cast %arg1 : i32 to index
    %c0_81 = arith.constant 0 : index
    %171 = vector.load %arg19[%170, %c0_81] : memref<2x128xf32, #tpu.memory_space<vmem>>, vector<1x128xf32>
    %c0_82 = arith.constant 0 : index
    %c0_83 = arith.constant 0 : index
    %c0_84 = arith.constant 0 : index
    %172 = vector.load %arg17[%c0_82, %c0_83, %c0_84] : memref<1x1x128xf32, #tpu.memory_space<vmem>>, vector<1x1x128xf32>
    %173 = vector.shape_cast %172 : vector<1x1x128xf32> to vector<1x128xf32>
    %174 = vector.shape_cast %171 : vector<1x128xf32> to vector<1x1x128xf32>
    tpu.vector_store %arg17[%c0_82, %c0_83, %c0_84], %174 {strides = array<i32>} : memref<1x1x128xf32, #tpu.memory_space<vmem>>, vector<1x1x128xf32>,
    return
  }
  func.func @transform_0(%arg0: i32, %arg1: i32) -> (i32, i32, i32) {
    %c0_i32 = arith.constant 0 : i32
    %c0_i32_0 = arith.constant 0 : i32
    %c0_i32_1 = arith.constant 0 : i32
    return %arg1, %c0_i32, %c0_i32_0 : i32, i32, i32
  }
  func.func @transform_1(%arg0: i32, %arg1: i32) -> i32 {
    %c0_i32 = arith.constant 0 : i32
    %c0_i32_0 = arith.constant 0 : i32
    return %c0_i32 : i32
  }
  func.func @transform_2(%arg0: i32, %arg1: i32) -> (i32, i32, i32) {
    %c0_i32 = arith.constant 0 : i32
    %c0_i32_0 = arith.constant 0 : i32
    %c0_i32_1 = arith.constant 0 : i32
    return %arg0, %c0_i32, %c0_i32_0 : i32, i32, i32
  }
  func.func @transform_3(%arg0: i32, %arg1: i32) -> (i32, i32, i32) {
    %c0_i32 = arith.constant 0 : i32
    %c0_i32_0 = arith.constant 0 : i32
    %c0_i32_1 = arith.constant 0 : i32
    return %arg0, %c0_i32, %c0_i32_0 : i32, i32, i32
  }
  func.func @transform_4(%arg0: i32, %arg1: i32) -> (i32, i32, i32) {
    %c0_i32 = arith.constant 0 : i32
    %c0_i32_0 = arith.constant 0 : i32
    %c0_i32_1 = arith.constant 0 : i32
    return %arg0, %c0_i32, %c0_i32_0 : i32, i32, i32
  }
  func.func @transform_5(%arg0: i32, %arg1: i32) -> (i32, i32, i32) {
    %c0_i32 = arith.constant 0 : i32
    %c0_i32_0 = arith.constant 0 : i32
    %c0_i32_1 = arith.constant 0 : i32
    return %arg0, %c0_i32, %c0_i32_0 : i32, i32, i32
  }
  func.func @transform_6(%arg0: i32, %arg1: i32) -> (i32, i32, i32) {
    %c0_i32 = arith.constant 0 : i32
    %c0_i32_0 = arith.constant 0 : i32
    %c0_i32_1 = arith.constant 0 : i32
    return %arg0, %c0_i32, %c0_i32_0 : i32, i32, i32
  }
  func.func @transform_7(%arg0: i32, %arg1: i32) -> (i32, i32, i32) {
    %c0_i32 = arith.constant 0 : i32
    %c0_i32_0 = arith.constant 0 : i32
    %c0_i32_1 = arith.constant 0 : i32
    return %arg0, %c0_i32, %c0_i32_0 : i32, i32, i32
  }
  func.func @transform_8(%arg0: i32, %arg1: i32) -> (i32, i32, i32) {
    %c0_i32 = arith.constant 0 : i32
    %c0_i32_0 = arith.constant 0 : i32
    %c0_i32_1 = arith.constant 0 : i32
    return %arg0, %c0_i32, %c0_i32_0 : i32, i32, i32
  }
  func.func @transform_9(%arg0: i32, %arg1: i32) -> (i32, i32, i32) {
    %c0_i32 = arith.constant 0 : i32
    %c0_i32_0 = arith.constant 0 : i32
    %c0_i32_1 = arith.constant 0 : i32
    return %arg0, %c0_i32, %c0_i32_0 : i32, i32, i32
  }
  func.func @transform_10(%arg0: i32, %arg1: i32) -> (i32, i32, i32) {
    %c0_i32 = arith.constant 0 : i32
    %c0_i32_0 = arith.constant 0 : i32
    %c0_i32_1 = arith.constant 0 : i32
    return %arg0, %c0_i32, %c0_i32_0 : i32, i32, i32
  }
  func.func @transform_11(%arg0: i32, %arg1: i32) -> (i32, i32, i32) {
    %c0_i32 = arith.constant 0 : i32
    %c0_i32_0 = arith.constant 0 : i32
    %c0_i32_1 = arith.constant 0 : i32
    return %arg0, %c0_i32, %c0_i32_0 : i32, i32, i32
  }
  func.func @transform_12(%arg0: i32, %arg1: i32) -> (i32, i32, i32) {
    %c0_i32 = arith.constant 0 : i32
    %c0_i32_0 = arith.constant 0 : i32
    %c0_i32_1 = arith.constant 0 : i32
    return %arg0, %c0_i32, %c0_i32_0 : i32, i32, i32
  }
  func.func @transform_13(%arg0: i32, %arg1: i32) -> (i32, i32, i32) {
    %c0_i32 = arith.constant 0 : i32
    %c0_i32_0 = arith.constant 0 : i32
    %c0_i32_1 = arith.constant 0 : i32
    return %arg0, %c0_i32, %c0_i32_0 : i32, i32, i32
  }
  func.func @transform_14(%arg0: i32, %arg1: i32) -> (i32, i32, i32) {
    %c0_i32 = arith.constant 0 : i32
    %c0_i32_0 = arith.constant 0 : i32
    %c0_i32_1 = arith.constant 0 : i32
    return %arg1, %c0_i32, %c0_i32_0 : i32, i32, i32
  }
  func.func @transform_15(%arg0: i32, %arg1: i32) -> (i32, i32, i32) {
    %c0_i32 = arith.constant 0 : i32
    %c0_i32_0 = arith.constant 0 : i32
    %c0_i32_1 = arith.constant 0 : i32
    return %arg1, %c0_i32, %c0_i32_0 : i32, i32, i32
  }
}

module attributes {stable_mosaic.version = 11 : i64} {
  func.func @_evo_block_kernel(%arg0: i32, %arg1: memref<1x9x32xf32, #tpu.memory_space<vmem>>, %arg2: memref<1x32xf32, #tpu.memory_space<vmem>>, %arg3: memref<1x32xf32, #tpu.memory_space<vmem>>, %arg4: memref<32x96xbf16, #tpu.memory_space<vmem>>, %arg5: memref<1x96xf32, #tpu.memory_space<vmem>>, %arg6: memref<32x32xbf16, #tpu.memory_space<vmem>>, %arg7: memref<1x32xf32, #tpu.memory_space<vmem>>, %arg8: memref<1x32xf32, #tpu.memory_space<vmem>>, %arg9: memref<1x32xf32, #tpu.memory_space<vmem>>, %arg10: memref<32x128xbf16, #tpu.memory_space<vmem>>, %arg11: memref<1x128xf32, #tpu.memory_space<vmem>>, %arg12: memref<128x32xbf16, #tpu.memory_space<vmem>>, %arg13: memref<1x32xf32, #tpu.memory_space<vmem>>, %arg14: memref<1x9x32xf32, #tpu.memory_space<vmem>>, %arg15: memref<1x1x128xf32, #tpu.memory_space<vmem>>) attributes {dimension_semantics = [#tpu.dimension_semantics<parallel>], iteration_bounds = array<i64: 2>, scalar_prefetch = 0 : i64, scratch_operands = 0 : i64, tpu.core_type = #tpu.core_type<tc>, window_params = [{transform_indices = @transform_0, window_bounds = array<i64: 1, 9, 32>}, {pipeline_mode = #tpu.pipeline_mode<synchronous>, transform_indices = @transform_1, window_bounds = array<i64: 1, 32>}, {pipeline_mode = #tpu.pipeline_mode<synchronous>, transform_indices = @transform_2, window_bounds = array<i64: 1, 32>}, {pipeline_mode = #tpu.pipeline_mode<synchronous>, transform_indices = @transform_3, window_bounds = array<i64: 32, 96>}, {pipeline_mode = #tpu.pipeline_mode<synchronous>, transform_indices = @transform_4, window_bounds = array<i64: 1, 96>}, {pipeline_mode = #tpu.pipeline_mode<synchronous>, transform_indices = @transform_5, window_bounds = array<i64: 32, 32>}, {pipeline_mode = #tpu.pipeline_mode<synchronous>, transform_indices = @transform_6, window_bounds = array<i64: 1, 32>}, {pipeline_mode = #tpu.pipeline_mode<synchronous>, transform_indices = @transform_7, window_bounds = array<i64: 1, 32>}, {pipeline_mode = #tpu.pipeline_mode<synchronous>, transform_indices = @transform_8, window_bounds = array<i64: 1, 32>}, {pipeline_mode = #tpu.pipeline_mode<synchronous>, transform_indices = @transform_9, window_bounds = array<i64: 32, 128>}, {pipeline_mode = #tpu.pipeline_mode<synchronous>, transform_indices = @transform_10, window_bounds = array<i64: 1, 128>}, {pipeline_mode = #tpu.pipeline_mode<synchronous>, transform_indices = @transform_11, window_bounds = array<i64: 128, 32>}, {pipeline_mode = #tpu.pipeline_mode<synchronous>, transform_indices = @transform_12, window_bounds = array<i64: 1, 32>}, {transform_indices = @transform_13, window_bounds = array<i64: 1, 9, 32>}, {transform_indices = @transform_14, window_bounds = array<i64: 1, 1, 128>}]} {
    %c0 = arith.constant 0 : index
    %c0_0 = arith.constant 0 : index
    %c0_1 = arith.constant 0 : index
    %0 = vector.load %arg1[%c0, %c0_0, %c0_1] : memref<1x9x32xf32, #tpu.memory_space<vmem>>, vector<1x9x32xf32>
    %1 = vector.shape_cast %0 : vector<1x9x32xf32> to vector<9x32xf32>
    %c0_2 = arith.constant 0 : index
    %c0_3 = arith.constant 0 : index
    %2 = vector.load %arg2[%c0_2, %c0_3] : memref<1x32xf32, #tpu.memory_space<vmem>>, vector<1x32xf32>
    %c0_4 = arith.constant 0 : index
    %c0_5 = arith.constant 0 : index
    %3 = vector.load %arg3[%c0_4, %c0_5] : memref<1x32xf32, #tpu.memory_space<vmem>>, vector<1x32xf32>
    %c0_6 = arith.constant 0 : index
    %c0_7 = arith.constant 0 : index
    %4 = vector.load %arg4[%c0_6, %c0_7] : memref<32x96xbf16, #tpu.memory_space<vmem>>, vector<32x96xbf16>
    %c0_8 = arith.constant 0 : index
    %c0_9 = arith.constant 0 : index
    %5 = vector.load %arg5[%c0_8, %c0_9] : memref<1x96xf32, #tpu.memory_space<vmem>>, vector<1x96xf32>
    %c0_10 = arith.constant 0 : index
    %c0_11 = arith.constant 0 : index
    %6 = vector.load %arg6[%c0_10, %c0_11] : memref<32x32xbf16, #tpu.memory_space<vmem>>, vector<32x32xbf16>
    %c0_12 = arith.constant 0 : index
    %c0_13 = arith.constant 0 : index
    %7 = vector.load %arg7[%c0_12, %c0_13] : memref<1x32xf32, #tpu.memory_space<vmem>>, vector<1x32xf32>
    %c0_14 = arith.constant 0 : index
    %c0_15 = arith.constant 0 : index
    %8 = vector.load %arg8[%c0_14, %c0_15] : memref<1x32xf32, #tpu.memory_space<vmem>>, vector<1x32xf32>
    %c0_16 = arith.constant 0 : index
    %c0_17 = arith.constant 0 : index
    %9 = vector.load %arg9[%c0_16, %c0_17] : memref<1x32xf32, #tpu.memory_space<vmem>>, vector<1x32xf32>
    %c0_18 = arith.constant 0 : index
    %c0_19 = arith.constant 0 : index
    %10 = vector.load %arg10[%c0_18, %c0_19] : memref<32x128xbf16, #tpu.memory_space<vmem>>, vector<32x128xbf16>
    %c0_20 = arith.constant 0 : index
    %c0_21 = arith.constant 0 : index
    %11 = vector.load %arg11[%c0_20, %c0_21] : memref<1x128xf32, #tpu.memory_space<vmem>>, vector<1x128xf32>
    %c0_22 = arith.constant 0 : index
    %c0_23 = arith.constant 0 : index
    %12 = vector.load %arg12[%c0_22, %c0_23] : memref<128x32xbf16, #tpu.memory_space<vmem>>, vector<128x32xbf16>
    %c0_24 = arith.constant 0 : index
    %c0_25 = arith.constant 0 : index
    %13 = vector.load %arg13[%c0_24, %c0_25] : memref<1x32xf32, #tpu.memory_space<vmem>>, vector<1x32xf32>
    %cst = arith.constant dense<0.000000e+00> : vector<9xf32>
    %14 = vector.multi_reduction <add>, %1, %cst [1] : vector<9x32xf32> to vector<9xf32>
    %15 = vector.shape_cast %14 : vector<9xf32> to vector<9x1xf32>
    %cst_26 = arith.constant 3.200000e+01 : f32
    %16 = vector.broadcast %cst_26 : f32 to vector<9x1xf32>
    %17 = arith.divf %15, %16 : vector<9x1xf32>
    %18 = vector.broadcast %17 : vector<9x1xf32> to vector<9x32xf32>
    %19 = arith.subf %1, %18 : vector<9x32xf32>
    %20 = arith.mulf %19, %19 : vector<9x32xf32>
    %cst_27 = arith.constant dense<0.000000e+00> : vector<9xf32>
    %21 = vector.multi_reduction <add>, %20, %cst_27 [1] : vector<9x32xf32> to vector<9xf32>
    %22 = vector.shape_cast %21 : vector<9xf32> to vector<9x1xf32>
    %cst_28 = arith.constant 3.200000e+01 : f32
    %23 = vector.broadcast %cst_28 : f32 to vector<9x1xf32>
    %24 = arith.divf %22, %23 : vector<9x1xf32>
    %25 = vector.broadcast %17 : vector<9x1xf32> to vector<9x32xf32>
    %26 = arith.subf %1, %25 : vector<9x32xf32>
    %cst_29 = arith.constant 9.99999997E-7 : f32
    %27 = vector.broadcast %cst_29 : f32 to vector<9x1xf32>
    %28 = arith.addf %24, %27 : vector<9x1xf32>
    %29 = math.rsqrt %28 : vector<9x1xf32>
    %30 = vector.broadcast %29 : vector<9x1xf32> to vector<9x32xf32>
    %31 = arith.mulf %26, %30 : vector<9x32xf32>
    %32 = vector.broadcast %2 : vector<1x32xf32> to vector<9x32xf32>
    %33 = arith.mulf %31, %32 : vector<9x32xf32>
    %34 = vector.broadcast %3 : vector<1x32xf32> to vector<9x32xf32>
    %35 = arith.addf %33, %34 : vector<9x32xf32>
    %36 = arith.truncf %35 : vector<9x32xf32> to vector<9x32xbf16>
    %cst_30 = arith.constant dense<0.000000e+00> : vector<9x96xf32>
    %37 = tpu.matmul %36, %4, %cst_30 {dimension_numbers = #tpu.dot_dimension_numbers<[1], [0], [0], [1], [0, 0, 1, 1], [], []>} : vector<9x32xbf16>, vector<32x96xbf16>, vector<9x96xf32> -> vector<9x96xf32>
    %38 = vector.broadcast %5 : vector<1x96xf32> to vector<9x96xf32>
    %39 = arith.addf %37, %38 : vector<9x96xf32>
    %40 = arith.truncf %39 : vector<9x96xf32> to vector<9x96xbf16>
    %41 = vector.shape_cast %40 : vector<9x96xbf16> to vector<9x12x8xbf16>
    %42 = tpu.transpose %41, [1, 0, 2] : vector<9x12x8xbf16> -> vector<12x9x8xbf16>
    %43 = vector.extract_strided_slice %42 {offsets = [0, 0, 0], sizes = [4, 9, 8], strides = [1, 1, 1]} : vector<12x9x8xbf16> to vector<4x9x8xbf16>
    %44 = vector.extract_strided_slice %42 {offsets = [4, 0, 0], sizes = [4, 9, 8], strides = [1, 1, 1]} : vector<12x9x8xbf16> to vector<4x9x8xbf16>
    %45 = vector.extract_strided_slice %42 {offsets = [8, 0, 0], sizes = [4, 9, 8], strides = [1, 1, 1]} : vector<12x9x8xbf16> to vector<4x9x8xbf16>
    "tpu.trace_start"() <{level = 10 : i32, message = "hqd,hkd->hqk"}> : () -> ()
    %cst_31 = arith.constant dense<0.000000e+00> : vector<4x9x9xf32>
    %46 = tpu.matmul %43, %44, %cst_31 {dimension_numbers = #tpu.dot_dimension_numbers<[2], [2], [1], [1], [0, 0, 0, 1, 1, 1], [0], [0]>} : vector<4x9x8xbf16>, vector<4x9x8xbf16>, vector<4x9x9xf32> -> vector<4x9x9xf32>
    "tpu.trace_stop"() : () -> ()
    %cst_32 = arith.constant dense<0xFF800000> : vector<4x9xf32>
    %47 = vector.multi_reduction <maximumf>, %46, %cst_32 [2] : vector<4x9x9xf32> to vector<4x9xf32>
    %48 = vector.shape_cast %47 : vector<4x9xf32> to vector<4x9x1xf32>
    %49 = vector.broadcast %48 : vector<4x9x1xf32> to vector<4x9x9xf32>
    %50 = arith.subf %46, %49 : vector<4x9x9xf32>
    %51 = math.exp %50 : vector<4x9x9xf32>
    %cst_33 = arith.constant dense<0.000000e+00> : vector<4x9xf32>
    %52 = vector.multi_reduction <add>, %51, %cst_33 [2] : vector<4x9x9xf32> to vector<4x9xf32>
    %53 = vector.shape_cast %52 : vector<4x9xf32> to vector<4x9x1xf32>
    %54 = tpu.reciprocal %53 {approx = true} : vector<4x9x1xf32> -> vector<4x9x1xf32>
    %55 = vector.broadcast %54 : vector<4x9x1xf32> to vector<4x9x9xf32>
    %56 = arith.mulf %51, %55 : vector<4x9x9xf32>
    %57 = vector.extract_strided_slice %56 {offsets = [0, 0, 1], sizes = [4, 1, 8], strides = [1, 1, 1]} : vector<4x9x9xf32> to vector<4x1x8xf32>
    %cst_34 = arith.constant dense<0.000000e+00> : vector<1x8xf32>
    %58 = vector.multi_reduction <add>, %57, %cst_34 [0] : vector<4x1x8xf32> to vector<1x8xf32>
    %59 = arith.truncf %56 : vector<4x9x9xf32> to vector<4x9x9xbf16>
    "tpu.trace_start"() <{level = 10 : i32, message = "hqk,hkd->hqd"}> : () -> ()
    %cst_35 = arith.constant dense<0.000000e+00> : vector<4x9x8xf32>
    %60 = tpu.matmul %59, %45, %cst_35 {dimension_numbers = #tpu.dot_dimension_numbers<[2], [1], [1], [2], [0, 0, 0, 1, 1, 2], [0], [0]>} : vector<4x9x9xbf16>, vector<4x9x8xbf16>, vector<4x9x8xf32> -> vector<4x9x8xf32>
    "tpu.trace_stop"() : () -> ()
    %61 = arith.truncf %60 : vector<4x9x8xf32> to vector<4x9x8xbf16>
    %62 = tpu.transpose %61, [1, 0, 2] : vector<4x9x8xbf16> -> vector<9x4x8xbf16>
    %63 = vector.shape_cast %62 : vector<9x4x8xbf16> to vector<9x32xbf16>
    %cst_36 = arith.constant dense<0.000000e+00> : vector<9x32xf32>
    %64 = tpu.matmul %63, %6, %cst_36 {dimension_numbers = #tpu.dot_dimension_numbers<[1], [0], [0], [1], [0, 0, 1, 1], [], []>} : vector<9x32xbf16>, vector<32x32xbf16>, vector<9x32xf32> -> vector<9x32xf32>
    %65 = vector.broadcast %7 : vector<1x32xf32> to vector<9x32xf32>
    %66 = arith.addf %64, %65 : vector<9x32xf32>
    %67 = arith.addf %1, %66 : vector<9x32xf32>
    %cst_37 = arith.constant dense<0.000000e+00> : vector<9xf32>
    %68 = vector.multi_reduction <add>, %67, %cst_37 [1] : vector<9x32xf32> to vector<9xf32>
    %69 = vector.shape_cast %68 : vector<9xf32> to vector<9x1xf32>
    %cst_38 = arith.constant 3.200000e+01 : f32
    %70 = vector.broadcast %cst_38 : f32 to vector<9x1xf32>
    %71 = arith.divf %69, %70 : vector<9x1xf32>
    %72 = vector.broadcast %71 : vector<9x1xf32> to vector<9x32xf32>
    %73 = arith.subf %67, %72 : vector<9x32xf32>
    %74 = arith.mulf %73, %73 : vector<9x32xf32>
    %cst_39 = arith.constant dense<0.000000e+00> : vector<9xf32>
    %75 = vector.multi_reduction <add>, %74, %cst_39 [1] : vector<9x32xf32> to vector<9xf32>
    %76 = vector.shape_cast %75 : vector<9xf32> to vector<9x1xf32>
    %cst_40 = arith.constant 3.200000e+01 : f32
    %77 = vector.broadcast %cst_40 : f32 to vector<9x1xf32>
    %78 = arith.divf %76, %77 : vector<9x1xf32>
    %79 = vector.broadcast %71 : vector<9x1xf32> to vector<9x32xf32>
    %80 = arith.subf %67, %79 : vector<9x32xf32>
    %cst_41 = arith.constant 9.99999997E-7 : f32
    %81 = vector.broadcast %cst_41 : f32 to vector<9x1xf32>
    %82 = arith.addf %78, %81 : vector<9x1xf32>
    %83 = math.rsqrt %82 : vector<9x1xf32>
    %84 = vector.broadcast %83 : vector<9x1xf32> to vector<9x32xf32>
    %85 = arith.mulf %80, %84 : vector<9x32xf32>
    %86 = vector.broadcast %8 : vector<1x32xf32> to vector<9x32xf32>
    %87 = arith.mulf %85, %86 : vector<9x32xf32>
    %88 = vector.broadcast %9 : vector<1x32xf32> to vector<9x32xf32>
    %89 = arith.addf %87, %88 : vector<9x32xf32>
    %90 = arith.truncf %89 : vector<9x32xf32> to vector<9x32xbf16>
    %cst_42 = arith.constant dense<0.000000e+00> : vector<9x128xf32>
    %91 = tpu.matmul %90, %10, %cst_42 {dimension_numbers = #tpu.dot_dimension_numbers<[1], [0], [0], [1], [0, 0, 1, 1], [], []>} : vector<9x32xbf16>, vector<32x128xbf16>, vector<9x128xf32> -> vector<9x128xf32>
    %92 = vector.broadcast %11 : vector<1x128xf32> to vector<9x128xf32>
    %93 = arith.addf %91, %92 : vector<9x128xf32>
    %cst_43 = arith.constant 5.000000e-01 : f32
    %94 = vector.broadcast %cst_43 : f32 to vector<9x128xf32>
    %95 = arith.mulf %94, %93 : vector<9x128xf32>
    %cst_44 = arith.constant 0.707106769 : f32
    %96 = vector.broadcast %cst_44 : f32 to vector<9x128xf32>
    %97 = arith.mulf %93, %96 : vector<9x128xf32>
    %98 = math.absf %97 : vector<9x128xf32>
    %cst_45 = arith.constant 0.327591091 : f32
    %99 = vector.broadcast %cst_45 : f32 to vector<9x128xf32>
    %100 = arith.mulf %99, %98 : vector<9x128xf32>
    %cst_46 = arith.constant 1.000000e+00 : f32
    %101 = vector.broadcast %cst_46 : f32 to vector<9x128xf32>
    %102 = arith.addf %101, %100 : vector<9x128xf32>
    %cst_47 = arith.constant 1.000000e+00 : f32
    %103 = vector.broadcast %cst_47 : f32 to vector<9x128xf32>
    %104 = arith.divf %103, %102 : vector<9x128xf32>
    %cst_48 = arith.constant 1.06140542 : f32
    %105 = vector.broadcast %cst_48 : f32 to vector<9x128xf32>
    %106 = arith.mulf %105, %104 : vector<9x128xf32>
    %cst_49 = arith.constant -1.45315206 : f32
    %107 = vector.broadcast %cst_49 : f32 to vector<9x128xf32>
    %108 = arith.addf %106, %107 : vector<9x128xf32>
    %109 = arith.mulf %108, %104 : vector<9x128xf32>
    %cst_50 = arith.constant 1.42141378 : f32
    %110 = vector.broadcast %cst_50 : f32 to vector<9x128xf32>
    %111 = arith.addf %109, %110 : vector<9x128xf32>
    %112 = arith.mulf %111, %104 : vector<9x128xf32>
    %cst_51 = arith.constant -0.284496725 : f32
    %113 = vector.broadcast %cst_51 : f32 to vector<9x128xf32>
    %114 = arith.addf %112, %113 : vector<9x128xf32>
    %115 = arith.mulf %114, %104 : vector<9x128xf32>
    %cst_52 = arith.constant 0.254829586 : f32
    %116 = vector.broadcast %cst_52 : f32 to vector<9x128xf32>
    %117 = arith.addf %115, %116 : vector<9x128xf32>
    %118 = arith.mulf %117, %104 : vector<9x128xf32>
    %cst_53 = arith.constant 0.000000e+00 : f32
    %119 = vector.broadcast %cst_53 : f32 to vector<9x128xf32>
    %120 = arith.subf %119, %98 : vector<9x128xf32>
    %121 = arith.mulf %120, %98 : vector<9x128xf32>
    %122 = math.exp %121 : vector<9x128xf32>
    %123 = arith.mulf %118, %122 : vector<9x128xf32>
    %cst_54 = arith.constant 1.000000e+00 : f32
    %124 = vector.broadcast %cst_54 : f32 to vector<9x128xf32>
    %125 = arith.subf %124, %123 : vector<9x128xf32>
    %cst_55 = arith.constant 0.000000e+00 : f32
    %126 = vector.broadcast %cst_55 : f32 to vector<9x128xf32>
    %127 = arith.cmpf oge, %97, %126 : vector<9x128xf32>
    %cst_56 = arith.constant 0.000000e+00 : f32
    %128 = vector.broadcast %cst_56 : f32 to vector<9x128xf32>
    %129 = arith.subf %128, %125 : vector<9x128xf32>
    %130 = arith.select %127, %125, %129 : vector<9x128xi1>, vector<9x128xf32>
    %cst_57 = arith.constant 1.000000e+00 : f32
    %131 = vector.broadcast %cst_57 : f32 to vector<9x128xf32>
    %132 = arith.addf %131, %130 : vector<9x128xf32>
    %133 = arith.mulf %95, %132 : vector<9x128xf32>
    %134 = arith.truncf %133 : vector<9x128xf32> to vector<9x128xbf16>
    %cst_58 = arith.constant dense<0.000000e+00> : vector<9x32xf32>
    %135 = tpu.matmul %134, %12, %cst_58 {dimension_numbers = #tpu.dot_dimension_numbers<[1], [0], [0], [1], [0, 0, 1, 1], [], []>} : vector<9x128xbf16>, vector<128x32xbf16>, vector<9x32xf32> -> vector<9x32xf32>
    %136 = vector.broadcast %13 : vector<1x32xf32> to vector<9x32xf32>
    %137 = arith.addf %135, %136 : vector<9x32xf32>
    %138 = arith.addf %67, %137 : vector<9x32xf32>
    %c0_59 = arith.constant 0 : index
    %c0_60 = arith.constant 0 : index
    %c0_61 = arith.constant 0 : index
    %139 = vector.load %arg14[%c0_59, %c0_60, %c0_61] : memref<1x9x32xf32, #tpu.memory_space<vmem>>, vector<1x9x32xf32>
    %140 = vector.shape_cast %139 : vector<1x9x32xf32> to vector<9x32xf32>
    %141 = vector.shape_cast %138 : vector<9x32xf32> to vector<1x9x32xf32>
    tpu.vector_store %arg14[%c0_59, %c0_60, %c0_61], %141 {strides = array<i32>} : memref<1x9x32xf32, #tpu.memory_space<vmem>>, vector<1x9x32xf32>,
    %cst_62 = arith.constant 0.000000e+00 : f32
    %142 = vector.broadcast %cst_62 : f32 to vector<1x120xf32>
    %143 = tpu.concatenate %58, %142 in 1 : vector<1x8xf32>, vector<1x120xf32> -> vector<1x128xf32>
    %c0_63 = arith.constant 0 : index
    %c0_64 = arith.constant 0 : index
    %c0_65 = arith.constant 0 : index
    %144 = vector.load %arg15[%c0_63, %c0_64, %c0_65] : memref<1x1x128xf32, #tpu.memory_space<vmem>>, vector<1x1x128xf32>
    %145 = vector.shape_cast %144 : vector<1x1x128xf32> to vector<1x128xf32>
    %146 = vector.shape_cast %143 : vector<1x128xf32> to vector<1x1x128xf32>
    tpu.vector_store %arg15[%c0_63, %c0_64, %c0_65], %146 {strides = array<i32>} : memref<1x1x128xf32, #tpu.memory_space<vmem>>, vector<1x1x128xf32>,
    return
  }
  func.func @transform_0(%arg0: i32) -> (i32, i32, i32) {
    %c0_i32 = arith.constant 0 : i32
    %c0_i32_0 = arith.constant 0 : i32
    %c0_i32_1 = arith.constant 0 : i32
    return %arg0, %c0_i32, %c0_i32_0 : i32, i32, i32
  }
  func.func @transform_1(%arg0: i32) -> (i32, i32) {
    %c0_i32 = arith.constant 0 : i32
    %c0_i32_0 = arith.constant 0 : i32
    %c0_i32_1 = arith.constant 0 : i32
    return %c0_i32, %c0_i32_0 : i32, i32
  }
  func.func @transform_2(%arg0: i32) -> (i32, i32) {
    %c0_i32 = arith.constant 0 : i32
    %c0_i32_0 = arith.constant 0 : i32
    %c0_i32_1 = arith.constant 0 : i32
    return %c0_i32, %c0_i32_0 : i32, i32
  }
  func.func @transform_3(%arg0: i32) -> (i32, i32) {
    %c0_i32 = arith.constant 0 : i32
    %c0_i32_0 = arith.constant 0 : i32
    %c0_i32_1 = arith.constant 0 : i32
    return %c0_i32, %c0_i32_0 : i32, i32
  }
  func.func @transform_4(%arg0: i32) -> (i32, i32) {
    %c0_i32 = arith.constant 0 : i32
    %c0_i32_0 = arith.constant 0 : i32
    %c0_i32_1 = arith.constant 0 : i32
    return %c0_i32, %c0_i32_0 : i32, i32
  }
  func.func @transform_5(%arg0: i32) -> (i32, i32) {
    %c0_i32 = arith.constant 0 : i32
    %c0_i32_0 = arith.constant 0 : i32
    %c0_i32_1 = arith.constant 0 : i32
    return %c0_i32, %c0_i32_0 : i32, i32
  }
  func.func @transform_6(%arg0: i32) -> (i32, i32) {
    %c0_i32 = arith.constant 0 : i32
    %c0_i32_0 = arith.constant 0 : i32
    %c0_i32_1 = arith.constant 0 : i32
    return %c0_i32, %c0_i32_0 : i32, i32
  }
  func.func @transform_7(%arg0: i32) -> (i32, i32) {
    %c0_i32 = arith.constant 0 : i32
    %c0_i32_0 = arith.constant 0 : i32
    %c0_i32_1 = arith.constant 0 : i32
    return %c0_i32, %c0_i32_0 : i32, i32
  }
  func.func @transform_8(%arg0: i32) -> (i32, i32) {
    %c0_i32 = arith.constant 0 : i32
    %c0_i32_0 = arith.constant 0 : i32
    %c0_i32_1 = arith.constant 0 : i32
    return %c0_i32, %c0_i32_0 : i32, i32
  }
  func.func @transform_9(%arg0: i32) -> (i32, i32) {
    %c0_i32 = arith.constant 0 : i32
    %c0_i32_0 = arith.constant 0 : i32
    %c0_i32_1 = arith.constant 0 : i32
    return %c0_i32, %c0_i32_0 : i32, i32
  }
  func.func @transform_10(%arg0: i32) -> (i32, i32) {
    %c0_i32 = arith.constant 0 : i32
    %c0_i32_0 = arith.constant 0 : i32
    %c0_i32_1 = arith.constant 0 : i32
    return %c0_i32, %c0_i32_0 : i32, i32
  }
  func.func @transform_11(%arg0: i32) -> (i32, i32) {
    %c0_i32 = arith.constant 0 : i32
    %c0_i32_0 = arith.constant 0 : i32
    %c0_i32_1 = arith.constant 0 : i32
    return %c0_i32, %c0_i32_0 : i32, i32
  }
  func.func @transform_12(%arg0: i32) -> (i32, i32) {
    %c0_i32 = arith.constant 0 : i32
    %c0_i32_0 = arith.constant 0 : i32
    %c0_i32_1 = arith.constant 0 : i32
    return %c0_i32, %c0_i32_0 : i32, i32
  }
  func.func @transform_13(%arg0: i32) -> (i32, i32, i32) {
    %c0_i32 = arith.constant 0 : i32
    %c0_i32_0 = arith.constant 0 : i32
    %c0_i32_1 = arith.constant 0 : i32
    return %arg0, %c0_i32, %c0_i32_0 : i32, i32, i32
  }
  func.func @transform_14(%arg0: i32) -> (i32, i32, i32) {
    %c0_i32 = arith.constant 0 : i32
    %c0_i32_0 = arith.constant 0 : i32
    %c0_i32_1 = arith.constant 0 : i32
    return %arg0, %c0_i32, %c0_i32_0 : i32, i32, i32
  }
}

module attributes {stable_mosaic.version = 11 : i64} {
  func.func @_head_kernel(%arg0: i32, %arg1: memref<2x17x32xf32, #tpu.memory_space<vmem>>, %arg2: memref<1x32xf32, #tpu.memory_space<vmem>>, %arg3: memref<1x32xf32, #tpu.memory_space<vmem>>, %arg4: memref<32x10xf32, #tpu.memory_space<vmem>>, %arg5: memref<1x10xf32, #tpu.memory_space<vmem>>, %arg6: memref<2x10xf32, #tpu.memory_space<vmem>>) attributes {dimension_semantics = [#tpu.dimension_semantics<arbitrary>], iteration_bounds = array<i64: 1>, scalar_prefetch = 0 : i64, scratch_operands = 0 : i64, tpu.core_type = #tpu.core_type<tc>, window_params = [{pipeline_mode = #tpu.pipeline_mode<synchronous>, transform_indices = @transform_0, window_bounds = array<i64: 2, 17, 32>}, {pipeline_mode = #tpu.pipeline_mode<synchronous>, transform_indices = @transform_1, window_bounds = array<i64: 1, 32>}, {pipeline_mode = #tpu.pipeline_mode<synchronous>, transform_indices = @transform_2, window_bounds = array<i64: 1, 32>}, {pipeline_mode = #tpu.pipeline_mode<synchronous>, transform_indices = @transform_3, window_bounds = array<i64: 32, 10>}, {pipeline_mode = #tpu.pipeline_mode<synchronous>, transform_indices = @transform_4, window_bounds = array<i64: 1, 10>}, {pipeline_mode = #tpu.pipeline_mode<synchronous>, transform_indices = @transform_5, window_bounds = array<i64: 2, 10>}]} {
    %c0 = arith.constant 0 : index
    %c0_0 = arith.constant 0 : index
    %c0_1 = arith.constant 0 : index
    %0 = vector.load %arg1[%c0, %c0_0, %c0_1] : memref<2x17x32xf32, #tpu.memory_space<vmem>>, vector<2x17x32xf32>
    %1 = vector.extract_strided_slice %0 {offsets = [0, 1, 0], sizes = [2, 16, 32], strides = [1, 1, 1]} : vector<2x17x32xf32> to vector<2x16x32xf32>
    %cst = arith.constant dense<0.000000e+00> : vector<2x32xf32>
    %2 = vector.multi_reduction <add>, %1, %cst [1] : vector<2x16x32xf32> to vector<2x32xf32>
    %cst_2 = arith.constant 1.600000e+01 : f32
    %3 = vector.broadcast %cst_2 : f32 to vector<2x32xf32>
    %4 = arith.divf %2, %3 : vector<2x32xf32>
    %c0_3 = arith.constant 0 : index
    %c0_4 = arith.constant 0 : index
    %5 = vector.load %arg2[%c0_3, %c0_4] : memref<1x32xf32, #tpu.memory_space<vmem>>, vector<1x32xf32>
    %c0_5 = arith.constant 0 : index
    %c0_6 = arith.constant 0 : index
    %6 = vector.load %arg3[%c0_5, %c0_6] : memref<1x32xf32, #tpu.memory_space<vmem>>, vector<1x32xf32>
    %cst_7 = arith.constant dense<0.000000e+00> : vector<2xf32>
    %7 = vector.multi_reduction <add>, %4, %cst_7 [1] : vector<2x32xf32> to vector<2xf32>
    %8 = vector.shape_cast %7 : vector<2xf32> to vector<2x1xf32>
    %cst_8 = arith.constant 3.200000e+01 : f32
    %9 = vector.broadcast %cst_8 : f32 to vector<2x1xf32>
    %10 = arith.divf %8, %9 : vector<2x1xf32>
    %11 = vector.broadcast %10 : vector<2x1xf32> to vector<2x32xf32>
    %12 = arith.subf %4, %11 : vector<2x32xf32>
    %13 = arith.mulf %12, %12 : vector<2x32xf32>
    %cst_9 = arith.constant dense<0.000000e+00> : vector<2xf32>
    %14 = vector.multi_reduction <add>, %13, %cst_9 [1] : vector<2x32xf32> to vector<2xf32>
    %15 = vector.shape_cast %14 : vector<2xf32> to vector<2x1xf32>
    %cst_10 = arith.constant 3.200000e+01 : f32
    %16 = vector.broadcast %cst_10 : f32 to vector<2x1xf32>
    %17 = arith.divf %15, %16 : vector<2x1xf32>
    %18 = vector.broadcast %10 : vector<2x1xf32> to vector<2x32xf32>
    %19 = arith.subf %4, %18 : vector<2x32xf32>
    %cst_11 = arith.constant 9.99999997E-7 : f32
    %20 = vector.broadcast %cst_11 : f32 to vector<2x1xf32>
    %21 = arith.addf %17, %20 : vector<2x1xf32>
    %22 = math.rsqrt %21 : vector<2x1xf32>
    %23 = vector.broadcast %22 : vector<2x1xf32> to vector<2x32xf32>
    %24 = arith.mulf %19, %23 : vector<2x32xf32>
    %25 = vector.broadcast %5 : vector<1x32xf32> to vector<2x32xf32>
    %26 = arith.mulf %24, %25 : vector<2x32xf32>
    %27 = vector.broadcast %6 : vector<1x32xf32> to vector<2x32xf32>
    %28 = arith.addf %26, %27 : vector<2x32xf32>
    %c0_12 = arith.constant 0 : index
    %c0_13 = arith.constant 0 : index
    %29 = vector.load %arg4[%c0_12, %c0_13] : memref<32x10xf32, #tpu.memory_space<vmem>>, vector<32x10xf32>
    %cst_14 = arith.constant dense<0.000000e+00> : vector<2x10xf32>
    %30 = tpu.matmul %28, %29, %cst_14 {dimension_numbers = #tpu.dot_dimension_numbers<[1], [0], [0], [1], [0, 0, 1, 1], [], []>} : vector<2x32xf32>, vector<32x10xf32>, vector<2x10xf32> -> vector<2x10xf32>
    %c0_15 = arith.constant 0 : index
    %c0_16 = arith.constant 0 : index
    %31 = vector.load %arg5[%c0_15, %c0_16] : memref<1x10xf32, #tpu.memory_space<vmem>>, vector<1x10xf32>
    %32 = vector.broadcast %31 : vector<1x10xf32> to vector<2x10xf32>
    %33 = arith.addf %30, %32 : vector<2x10xf32>
    %c0_17 = arith.constant 0 : index
    %c0_18 = arith.constant 0 : index
    %34 = vector.load %arg6[%c0_17, %c0_18] : memref<2x10xf32, #tpu.memory_space<vmem>>, vector<2x10xf32>
    tpu.vector_store %arg6[%c0_17, %c0_18], %33 {strides = array<i32>} : memref<2x10xf32, #tpu.memory_space<vmem>>, vector<2x10xf32>,
    return
  }
  func.func @transform_0(%arg0: i32) -> (i32, i32, i32) {
    %c0_i32 = arith.constant 0 : i32
    %c0_i32_0 = arith.constant 0 : i32
    %c0_i32_1 = arith.constant 0 : i32
    %c0_i32_2 = arith.constant 0 : i32
    return %c0_i32, %c0_i32_0, %c0_i32_1 : i32, i32, i32
  }
  func.func @transform_1(%arg0: i32) -> (i32, i32) {
    %c0_i32 = arith.constant 0 : i32
    %c0_i32_0 = arith.constant 0 : i32
    %c0_i32_1 = arith.constant 0 : i32
    return %c0_i32, %c0_i32_0 : i32, i32
  }
  func.func @transform_2(%arg0: i32) -> (i32, i32) {
    %c0_i32 = arith.constant 0 : i32
    %c0_i32_0 = arith.constant 0 : i32
    %c0_i32_1 = arith.constant 0 : i32
    return %c0_i32, %c0_i32_0 : i32, i32
  }
  func.func @transform_3(%arg0: i32) -> (i32, i32) {
    %c0_i32 = arith.constant 0 : i32
    %c0_i32_0 = arith.constant 0 : i32
    %c0_i32_1 = arith.constant 0 : i32
    return %c0_i32, %c0_i32_0 : i32, i32
  }
  func.func @transform_4(%arg0: i32) -> (i32, i32) {
    %c0_i32 = arith.constant 0 : i32
    %c0_i32_0 = arith.constant 0 : i32
    %c0_i32_1 = arith.constant 0 : i32
    return %c0_i32, %c0_i32_0 : i32, i32
  }
  func.func @transform_5(%arg0: i32) -> (i32, i32) {
    %c0_i32 = arith.constant 0 : i32
    %c0_i32_0 = arith.constant 0 : i32
    %c0_i32_1 = arith.constant 0 : i32
    return %c0_i32, %c0_i32_0 : i32, i32
  }
}

</mosaic_0001>

<bundles_post_ra>
// kernel: evo_vit_forward.11
= control target key start
LH: loop header
LB: loop body
LE: loop exit
PB: predicated region body
PF: predicated region fallthrough
CT: control target
= control target key end

     0   :  { %8 = vsyncpa [#allocation3], 0  ;;  %s379_s0 = inlined_call_operand.hbm [shape: f32[32,48], index: 0, kind: input, shape index: {}]   ;;  %s380_s1 = inlined_call_operand.hbm [shape: bf16[48,32], index: 1, kind: input, shape index: {}]   ;;  %s381_s2 = inlined_call_operand.hbm [shape: f32[1,32], index: 2, kind: input, shape index: {}]   ;;  %s382_s3 = inlined_call_operand.hbm [shape: f32[32,32], index: 3, kind: output, shape index: {}]  }
   0x1   :  { %9 = vsyncpa [#allocation6], 0 }
   0x2   :  { %10 = vsyncpa [#allocation4], 0  ;;  %s297_s12 = smov [#allocation5]   ;;  %s203_s16 = scalar_lea.hbm %s380_s1, 384 }
   0x3   :  { %s28_s13 = sshll.u32 %s297_s12, 4  ;;  %p204_p0 = scmp.ne.s32.totalorder %s380_s1, %s203_s16  ;;  %s29_s13 = int_to_ptr.vmem [resolvable:$true] %s28_s13 }
   0x4   :  { %p207_p1 = scmp.lt.u32.totalorder %s203_s16, %s380_s1 }
   0x6   :  { %p209_p2 = pnand %p207_p1, %p204_p0 }
   0x8   :  { %212 = shalt.err (!%p209_p2)
}
   0x9   :  { %s213_s21 = scalar_lea.vmem %s29_s13, 384  ;;  %p218_p4 = scmp.lt.s32.totalorder %s29_s13, %s29_s13 }
   0xa   :  { %p214_p3 = scmp.ne.s32.totalorder %s29_s13, %s213_s21  ;;  %p219_p5 = scmp.lt.s32.totalorder %s213_s21, %s213_s21 }
   0xc   :  { %p220_p6 = por %p219_p5, %p218_p4 }
   0xe   :  { %p221_p7 = pnand %p220_p6, %p214_p3 }
  0x10   :  { %224 = shalt.err (!%p221_p7)
}
  0x11   :  { %s298_s22 = smov 64   ;;  %s299_s23 = smov 4  }
  0x12   :  { %34 = dma.hbm_to_vmem [thread:$0]  %s380_s1, 384, %s29_s13, [#allocation6], %s298_s22, %s298_s22, %s299_s23  }
  0x13   :  { %s300_s26 = smov [#allocation2]   ;;  %s225_s30 = scalar_lea.hbm %s379_s0, 512 }
  0x14   :  { %s16_s27 = sshll.u32 %s300_s26, 4  ;;  %p226_p8 = scmp.ne.s32.totalorder %s379_s0, %s225_s30  ;;  %s17_s27 = int_to_ptr.vmem [resolvable:$true] %s16_s27 }
  0x15   :  { %p229_p9 = scmp.lt.u32.totalorder %s225_s30, %s379_s0 }
  0x17   :  { %p231_p10 = pnand %p229_p9, %p226_p8 }
  0x19   :  { %234 = shalt.err (!%p231_p10)
}
  0x1a   :  { %s235_s8 = scalar_lea.vmem %s17_s27, 512  ;;  %p240_p12 = scmp.lt.s32.totalorder %s17_s27, %s17_s27 }
  0x1b   :  { %p236_p11 = scmp.ne.s32.totalorder %s17_s27, %s235_s8  ;;  %p241_p13 = scmp.lt.s32.totalorder %s235_s8, %s235_s8 }
  0x1d   :  { %p242_p0 = por %p241_p13, %p240_p12 }
  0x1f   :  { %p243_p1 = pnand %p242_p0, %p236_p11 }
  0x21   :  { %246 = shalt.err (!%p243_p1)
}
  0x22   :  { %s301_s1 = smov 128   ;;  %s302_s9 = smov 8  }
  0x23   :  { %22 = dma.hbm_to_vmem [thread:$0]  %s379_s0, 512, %s17_s27, [#allocation3], %s301_s1, %s301_s1, %s302_s9  }
  0x24   :  { %s303_s12 = smov [#allocation7]   ;;  %s247_s16 = scalar_lea.hbm %s381_s2, 16 }
  0x25   :  { %s41_s13 = sshll.u32 %s303_s12, 4  ;;  %p248_p2 = scmp.ne.s32.totalorder %s381_s2, %s247_s16  ;;  %s42_s13 = int_to_ptr.vmem [resolvable:$true] %s41_s13 }
  0x26   :  { %p251_p3 = scmp.lt.u32.totalorder %s247_s16, %s381_s2 }
  0x28   :  { %p253_p4 = pnand %p251_p3, %p248_p2 }
  0x2a   :  { %256 = shalt.err (!%p253_p4)
}
  0x2b   :  { %s257_s21 = scalar_lea.vmem %s42_s13, 16  ;;  %s261_s0 = scalar_lea.vmem %s42_s13, 32 }
  0x2c   :  { %p258_p5 = scmp.ne.s32.totalorder %s42_s13, %s257_s21  ;;  %p262_p6 = scmp.lt.s32.totalorder %s42_s13, %s42_s13 }
  0x2d   :  { %p263_p7 = scmp.lt.s32.totalorder %s261_s0, %s257_s21 }
  0x2f   :  { %p264_p8 = por %p263_p7, %p262_p6 }
  0x31   :  { %p265_p9 = pnand %p264_p8, %p258_p5 }
  0x33   :  { %268 = shalt.err (!%p265_p9)
}
  0x34   :  { %44 = dma.hbm_to_vmem [thread:$0]  %s381_s2, 16, %s42_s13, [#allocation6]  }
  0x35   :  { %291 = dma.done.wait [#allocation3], 512  }
  0x36   :  { %292 = vsyncadd [#allocation3], 4294966784 }
  0x37   :  { %293 = dma.done.wait [#allocation6], 400  }
  0x38   :  { %294 = vsyncadd [#allocation6], 4294966896  ;;  %v200_v0 = vld [vmem:[#allocation5] sm:$0xff]   ;;  %v201_v1 = vld [vmem:[#allocation5 + $0x8] sm:$0xff]   ;;  %vm92_vm0 = vcmask 392192   ;;  %vm148_vm1 = vcmask 261120  }
  0x39   :  { %182 = vmatprep.subr.bf16.mxu0 %v200_v0  ;;  %v55_v2 = vld [vmem:[#allocation2] sm:$0xff]  ;;  %v56_v3 = vld [vmem:[#allocation2 + $0x8] sm:$0xff]  ;;  %v202_v4 = vld [vmem:[#allocation5 + $0x10] sm:$0xff]   ;;  %s304_s2 = smov [#allocation8]  }
  0x3a   :  { %183 = vmatpush3.bf16.msra.mxu0 %v200_v0  ;;  %v59_v5 = vpack.c.bf16 %v56_v3, %v55_v2  ;;  %v57_v6 = vld [vmem:[#allocation2 + $0x10] sm:$0xff]  ;;  %v58_v7 = vld [vmem:[#allocation2 + $0x18] sm:$0xff]  ;;  %s158_s24 = sshll.u32 %s304_s2, 4  ;;  %s159_s24 = int_to_ptr.vmem [resolvable:$true] %s158_s24 }
  0x3b   :  { %184 = vmatprep.subr.bf16.mxu0 %v201_v1  ;;  %v60_v8 = vpack.c.bf16 %v58_v7, %v57_v6  ;;  %v171_v9 = vld [vmem:[#allocation7] ss:$0 sm:$0xff]  ;;  %s269_s25 = scalar_lea.vmem %s159_s24, 512  ;;  %p274_p11 = scmp.lt.s32.totalorder %s159_s24, %s159_s24 }
  0x3c   :  { %188 = vmatprep.mubr.msk.bf16.mxu0 %vm92_vm0, %v59_v5  ;;  %p270_p10 = scmp.ne.s32.totalorder %s159_s24, %s269_s25  ;;  %p275_p12 = scmp.lt.s32.totalorder %s269_s25, %s269_s25 }
  0x3e   :  { %185 = vmatpush3.bf16.msra.mxu0 %v201_v1  ;;  %p276_p13 = por %p275_p12, %p274_p11 }
  0x3f   :  { %186 = vmatprep.subr.bf16.mxu0 %v202_v4 }
  0x40   :  { %p277_p0 = pnand %p276_p13, %p270_p10 }
  0x42   :  { %187 = vmatpush3.bf16.msra.mxu0 %v202_v4 }
  0x45   :  { %189 = vmatmul.mubr.msk.bf16.vlgmr.msra.gmra.mrb[0].mxu0 %vm92_vm0, %v60_v8 }
 0x118   :  { %v190_v10 = vpop.f32.mrb[0].mxu0 }
 0x119   :  { %v142_v11 = vadd.f32 %v190_v10, %v171_v9  ;;  %v133_v12 = vpop.f32.mrb[1].mxu0 }
 0x11a   :  { %v134_v13 = vadd.f32 %v171_v9, %v133_v12  ;;  %v191_v14 = vpop.f32.mrb[2].mxu0 }
 0x11b   :  { %151 = vst.msk [vmem:[#allocation8 + $0x10] sm:$0xff] %vm148_vm1, %v142_v11  ;;  %v145_v15 = vadd.f32 %v191_v14, %v171_v9  ;;  %v136_v16 = vpop.f32.mrb[3].mxu0 }
 0x11c   :  { %149 = vst.msk [vmem:[#allocation8] sm:$0xff] %vm148_vm1, %v134_v13  ;;  %v137_v17 = vadd.f32 %v171_v9, %v136_v16 }
 0x11d   :  { %152 = vst.msk [vmem:[#allocation8 + $0x18] sm:$0xff] %vm148_vm1, %v145_v15 }
 0x11e   :  { %150 = vst.msk [vmem:[#allocation8 + $0x8] sm:$0xff] %vm148_vm1, %v137_v17 }
 0x11f   :  { %280 = shalt.err (!%p277_p0)
}
 0x120   :  { %s281_s28 = scalar_lea.hbm %s382_s3, 512 }
 0x121   :  { %p282_p1 = scmp.ne.s32.totalorder %s382_s3, %s281_s28  ;;  %p285_p2 = scmp.lt.u32.totalorder %s281_s28, %s382_s3 }
 0x123   :  { %p287_p3 = pnand %p285_p2, %p282_p1 }
 0x125   :  { %290 = shalt.err (!%p287_p3)
}
 0x126   :  { %164 = dma.vmem_to_hbm [thread:$0]  %s159_s24, 512, %s382_s3, [#allocation4], %s301_s1, %s301_s1, %s302_s9  }
 0x127   :  { %295 = dma.done.wait [#allocation4], 512  }
 0x128   :  { %296 = vsyncadd [#allocation4], 4294966784 }
 0x129   :  { %168 = vsyncpa [#allocation3], 1 }
 0x12a   :  { %169 = vsyncpa [#allocation6], 1 }
 0x12b   :  { %170 = vsyncpa [#allocation4], 1 }

// kernel: evo_vit_forward.12
= control target key start
LH: loop header
LB: loop body
LE: loop exit
PB: predicated region body
PF: predicated region fallthrough
CT: control target
= control target key end

     0   :  { %s6386_s0 = inlined_call_operand.hbm [shape: f32[2,17,32], index: 0, kind: input, shape index: {}]   ;;  %s6387_s1 = inlined_call_operand.hbm [shape: f32[4], index: 1, kind: input, shape index: {}]   ;;  %s6388_s2 = inlined_call_operand.hbm [shape: f32[4,1,32], index: 2, kind: input, shape index: {}]   ;;  %s6389_s3 = inlined_call_operand.hbm [shape: f32[4,1,32], index: 3, kind: input, shape index: {}]   ;;  %s6390_s4 = inlined_call_operand.hbm [shape: bf16[4,32,96], index: 4, kind: input, shape index: {}]   ;;  %s6391_s5 = inlined_call_operand.hbm [shape: f32[4,1,96], index: 5, kind: input, shape index: {}]   ;;  %s6392_s6 = inlined_call_operand.hbm [shape: bf16[4,32,32], index: 6, kind: input, shape index: {}]   ;;  %s6393_s7 = inlined_call_operand.hbm [shape: f32[4,1,32], index: 7, kind: input, shape index: {}]   ;;  %s6394_s8 = inlined_call_operand.hbm [shape: f32[4,1,32], index: 8, kind: input, shape index: {}]   ;;  %s6395_s9 = inlined_call_operand.hbm [shape: f32[4,1,32], index: 9, kind: input, shape index: {}]   ;;  %s6396_s10 = inlined_call_operand.hbm [shape: bf16[4,32,128], index: 10, kind: input, shape index: {}]   ;;  %s6397_s11 = inlined_call_operand.hbm [shape: f32[4,1,128], index: 11, kind: input, shape index: {}]   ;;  %s6398_s12 = inlined_call_operand.hbm [shape: bf16[4,128,32], index: 12, kind: input, shape index: {}]   ;;  %s6399_s13 = inlined_call_operand.hbm [shape: f32[4,1,32], index: 13, kind: input, shape index: {}]   ;;  %s6400_s14 = inlined_call_operand.hbm [shape: f32[2,17,32], index: 14, kind: output, shape index: {0}]   ;;  %s6401_s15 = inlined_call_operand.hbm [shape: f32[2,1,128], index: 15, kind: output, shape index: {1}]  }
   0x1   :  { %6452 = sst [smem:[#allocation49_spill]] %s6386_s0 }
   0x2   :  { %6453 = sst [smem:[#allocation50_spill]] %s6387_s1 }
   0x3   :  { %6454 = sst [smem:[#allocation51_spill]] %s6388_s2 }
   0x4   :  { %6455 = sst [smem:[#allocation52_spill]] %s6389_s3 }
   0x5   :  { %6456 = sst [smem:[#allocation53_spill]] %s6390_s4 }
   0x6   :  { %6457 = sst [smem:[#allocation54_spill]] %s6391_s5 }
   0x7   :  { %6458 = sst [smem:[#allocation55_spill]] %s6392_s6 }
   0x8   :  { %6459 = sst [smem:[#allocation56_spill]] %s6393_s7 }
   0x9   :  { %6460 = sst [smem:[#allocation57_spill]] %s6394_s8 }
   0xa   :  { %6461 = sst [smem:[#allocation58_spill]] %s6395_s9 }
   0xb   :  { %6462 = sst [smem:[#allocation59_spill]] %s6396_s10 }
   0xc   :  { %6463 = sst [smem:[#allocation60_spill]] %s6397_s11 }
   0xd   :  { %6464 = sst [smem:[#allocation61_spill]] %s6398_s12 }
   0xe   :  { %6465 = sst [smem:[#allocation62_spill]] %s6399_s13 }
   0xf   :  { %6466 = sst [smem:[#allocation63_spill]] %s6400_s14 }
  0x10   :  { %6467 = sst [smem:[#allocation64_spill]] %s6401_s15 }
  0x11   :  { %21 = vsyncpa [#allocation5], 0 }
  0x12   :  { %23 = vsyncpa [#allocation5 + $0x1], 0 }
  0x13   :  { %24 = vsyncpa [#allocation7], 0 }
  0x14   :  { %25 = vsyncpa [#allocation10], 0 }
  0x15   :  { %27 = vsyncpa [#allocation10 + $0x1], 0 }
  0x16   :  { %28 = vsyncpa [#allocation13], 0 }
  0x17   :  { %30 = vsyncpa [#allocation13 + $0x1], 0 }
  0x18   :  { %31 = vsyncpa [#allocation16], 0 }
  0x19   :  { %33 = vsyncpa [#allocation16 + $0x1], 0 }
  0x1a   :  { %34 = vsyncpa [#allocation19], 0 }
  0x1b   :  { %36 = vsyncpa [#allocation19 + $0x1], 0 }
  0x1c   :  { %37 = vsyncpa [#allocation22], 0 }
  0x1d   :  { %39 = vsyncpa [#allocation22 + $0x1], 0 }
  0x1e   :  { %40 = vsyncpa [#allocation25], 0 }
  0x1f   :  { %42 = vsyncpa [#allocation25 + $0x1], 0 }
  0x20   :  { %43 = vsyncpa [#allocation6], 0 }
  0x21   :  { %45 = vsyncpa [#allocation6 + $0x1], 0 }
  0x22   :  { %46 = vsyncpa [#allocation29], 0 }
  0x23   :  { %48 = vsyncpa [#allocation29 + $0x1], 0  ;;  %s5040_s18 = smov 0   ;;  %s5042_s19 = smov 0  }
  0x24   :  { %s5044_s20 = smov 0   ;;  %s5046_s21 = smov 0  }
  0x25   :  { %s5048_s22 = smov 0   ;;  %s5050_s23 = smov 0  }
  0x26   :  { %s5052_s24 = smov 0   ;;  %s5054_s25 = smov 0  }
  0x27   :  { %s5056_s26 = smov 0   ;;  %s5058_s27 = smov 0  }
  0x28   :  { %s5060_s28 = smov 0  }
  0x29 LB: > { %6468 = sst [smem:[#allocation40_spill]] %s4883_s19  ;;  %p6414_p0 = scmp.eq.s32.totalorder %s4919_s28, 0  ;;  %s4919_s28 = sphi %s5060_s28, %s54_s28   ;;  %s4915_s27 = sphi %s5058_s27, %s6568_s27   ;;  %s4911_s26 = sphi %s5056_s26, %s6567_s26   ;;  %s4907_s25 = sphi %s5054_s25, %s6566_s25   ;;  %s4903_s24 = sphi %s5052_s24, %s6565_s24   ;;  %s4899_s23 = sphi %s5050_s23, %s6564_s23   ;;  %s4895_s22 = sphi %s5048_s22, %s6563_s22   ;;  %s4891_s21 = sphi %s5046_s21, %s6562_s21   ;;  %s4887_s20 = sphi %s5044_s20, %s6561_s20   ;;  %s4883_s19 = sphi %s5042_s19, %s6558_s19   ;;  %s4879_s18 = sphi %s5040_s18, %s6557_s18  }
  0x2a   : > { %6469 = sst [smem:[#allocation41_spill]] %s4887_s20  ;;  %p127_p1 = scmp.ne.s32.totalorder %s4887_s20, %s4883_s19 }
  0x2b   : > { %6470 = sst [smem:[#allocation42_spill]] %s4891_s21  ;;  %p6413_p2 = scmp.lt.s32.totalorder %s4919_s28, 8 }
  0x2c   : > { %6471 = sst [smem:[#allocation43_spill]] %s4903_s24  ;;  %p129_p3 = por %p127_p1, %p6414_p0 }
  0x2d   : > { %6472 = sst [smem:[#allocation44_spill]] %s4907_s25  ;;  %s5102_s29 = sand.u32 1, %s4919_s28  }
  0x2e   : > { %s5105_s30 = sand.u32 1, %s4887_s20   ;;  %s5108_s16 = sshll.u32 %s4915_s27, 4 }
  0x2f   : > { %s6473_s2 = sld [smem:[#allocation51_spill]]  ;;  %s528_s24 = scalar_lea.vmem [#allocation9], %s5105_s30 }
  0x30   : > { %s535_s25 = sshll.u32 %s528_s24, 4  ;;  %p5121_p4 = pnand %p6413_p2, %p129_p3  ;;  %s5117_s25 = int_to_ptr.vmem [resolvable:$true] %s535_s25 }
  0x31   : > { %s5126_s11 = sshll.u32 %s5105_s30, 4 }
  0x32   : > { %s6474_s13 = scalar_select %p5121_p4, 1, 0 }
  0x33   : > { %p5133_p6 = pneg %p5121_p4 }
  0x35   : > { %s5114_s14 = scalar_lea.hbm %s6473_s2, %s5108_s16  ;;  %s4339_s5 = scalar_lea.hbm %s6473_s2, 64 }
  0x36   : > { %s4334_s15 = scalar_lea.hbm %s5114_s14, 16  ;;  %p4340_p9 = scmp.lt.u32.totalorder %s5114_s14, %s6473_s2 }
  0x37   : > { %p4335_p5 = scmp.ne.s32.totalorder %s5114_s14, %s4334_s15  ;;  %p4341_p10 = scmp.lt.u32.totalorder %s4339_s5, %s4334_s15 }
  0x38   : > { %s6475_s17 = scalar_select %p5133_p6, 1, 0 }
  0x39   : > { %p4337_p7 = pnand %p5133_p6, %p4335_p5  ;;  %p4342_p11 = por %p4341_p10, %p4340_p9 }
  0x3a   : > { %p4343_p12 = scmp.lt.u32.totalorder %s4334_s15, %s5114_s14 }
  0x3b   : > { %p4338_p8 = pneg %p4337_p7 }
  0x3c   : > { %p4344_p13 = por %p4343_p12, %p4342_p11 }
  0x3e   : > { %p4345_p1 = pnand %p4344_p13, %p4338_p8 }
  0x40   : > { %4348 = shalt.err (!%p4345_p1)
}
  0x41   : > { %s4349_s9 = scalar_lea.vmem %s5117_s25, 16  ;;  %s4921_s7 = smov [#allocation9]  }
  0x42   : > { %p4350_p3 = scmp.ne.s32.totalorder %s5117_s25, %s4349_s9  ;;  %s4354_s24 = sshll.u32 %s4921_s7, 4  ;;  %s4355_s24 = int_to_ptr.vmem [resolvable:$false] %s4354_s24 }
  0x43   : > { %s4356_s0 = scalar_lea.vmem %s4355_s24, 32  ;;  %p4357_p2 = scmp.lt.s32.totalorder %s5117_s25, %s4355_s24 }
  0x44   : > { %p4352_p5 = pnand %p4350_p3, %p5133_p6  ;;  %p4358_p0 = scmp.lt.s32.totalorder %s4356_s0, %s4349_s9 }
  0x46   : > { %p4353_p7 = pneg %p4352_p5  ;;  %p4359_p9 = por %p4358_p0, %p4357_p2 }
  0x48   : > { %p4360_p10 = pnand %p4359_p9, %p4353_p7 }
  0x4a   : > { %4363 = shalt.err (!%p4360_p10)
}
  0x4b   : > { %s6476_s3 = scalar_lea.sflag [#allocation10], %s5102_s29  ;;  %s5159_s5 = sshll.u32 %s4915_s27, 8 }
  0x4c   : > { %4088 = dma.hbm_to_vmem [thread:$0]  (!%p5121_p4), %s5114_s14, 16, %s5117_s25, %s6476_s3  }
  0x4d   : > { %s563_s15 = scalar_lea.vmem [#allocation12], %s5126_s11  ;;  %s6477_s4 = sld [smem:[#allocation53_spill]] }
  0x4e   : > { %s570_s7 = sshll.u32 %s563_s15, 4  ;;  %s6418_s2 = scalar_lea.sflag [#allocation13], %s5102_s29  ;;  %s5168_s7 = int_to_ptr.vmem [resolvable:$true] %s570_s7 }
  0x53   : > { %s5166_s0 = scalar_lea.hbm %s6477_s4, %s5159_s5  ;;  %s4369_s3 = scalar_lea.hbm %s6477_s4, 1024 }
  0x54   : > { %s4364_s1 = scalar_lea.hbm %s5166_s0, 256  ;;  %p4370_p11 = scmp.lt.u32.totalorder %s5166_s0, %s6477_s4 }
  0x55   : > { %p4365_p0 = scmp.ne.s32.totalorder %s5166_s0, %s4364_s1  ;;  %p4371_p12 = scmp.lt.u32.totalorder %s4369_s3, %s4364_s1 }
  0x56   : > { %p4373_p1 = scmp.lt.u32.totalorder %s4364_s1, %s5166_s0 }
  0x57   : > { %p4367_p2 = pnand %p4365_p0, %p5133_p6  ;;  %p4372_p13 = por %p4371_p12, %p4370_p11 }
  0x59   : > { %p4368_p8 = pneg %p4367_p2  ;;  %p4374_p3 = por %p4373_p1, %p4372_p13 }
  0x5b   : > { %p4375_p5 = pnand %p4374_p3, %p4368_p8 }
  0x5d   : > { %4378 = shalt.err (!%p4375_p5)
}
  0x5e   : > { %s4379_s24 = scalar_lea.vmem %s5168_s7, 256  ;;  %s4922_s14 = smov [#allocation12]  }
  0x5f   : > { %p4380_p7 = scmp.ne.s32.totalorder %s5168_s7, %s4379_s24  ;;  %s4384_s25 = sshll.u32 %s4922_s14, 4  ;;  %s4385_s25 = int_to_ptr.vmem [resolvable:$false] %s4384_s25 }
  0x60   : > { %s4386_s15 = scalar_lea.vmem %s4385_s25, 512  ;;  %p4387_p0 = scmp.lt.s32.totalorder %s5168_s7, %s4385_s25 }
  0x61   : > { %p4382_p9 = pnand %p4380_p7, %p5133_p6  ;;  %p4388_p2 = scmp.lt.s32.totalorder %s4386_s15, %s4379_s24 }
  0x63   : > { %p4383_p10 = pneg %p4382_p9  ;;  %p4389_p11 = por %p4388_p2, %p4387_p0 }
  0x65   : > { %p4390_p12 = pnand %p4389_p11, %p4383_p10 }
  0x67   : > { %4393 = shalt.err (!%p4390_p12)
}
  0x68   : > { %s6420_s1 = smov 64   ;;  %s4924_s3 = smov 4  }
  0x69   : > { %4094 = dma.hbm_to_vmem [thread:$0]  (!%p5121_p4), %s5166_s0, 256, %s5168_s7, %s6418_s2, %s6420_s1, %s6420_s1, %s4924_s3  }
  0x6a   : > { %s6478_s6 = sld [smem:[#allocation55_spill]]  ;;  %s601_s25 = scalar_lea.vmem [#allocation15], %s5126_s11 }
  0x6b   : > { %s608_s15 = sshll.u32 %s601_s25, 4  ;;  %s6419_s4 = scalar_lea.sflag [#allocation16], %s5102_s29  ;;  %s5204_s15 = int_to_ptr.vmem [resolvable:$true] %s608_s15 }
  0x70   : > { %s5201_s14 = scalar_lea.hbm %s6478_s6, %s5159_s5  ;;  %s4399_s9 = scalar_lea.hbm %s6478_s6, 1024 }
  0x71   : > { %s4394_s20 = scalar_lea.hbm %s5201_s14, 256  ;;  %p4400_p3 = scmp.lt.u32.totalorder %s5201_s14, %s6478_s6 }
  0x72   : > { %p4395_p8 = scmp.ne.s32.totalorder %s5201_s14, %s4394_s20  ;;  %p4401_p5 = scmp.lt.u32.totalorder %s4399_s9, %s4394_s20 }
  0x73   : > { %p4403_p9 = scmp.lt.u32.totalorder %s4394_s20, %s5201_s14 }
  0x74   : > { %p4397_p13 = pnand %p4395_p8, %p5133_p6  ;;  %p4402_p7 = por %p4401_p5, %p4400_p3 }
  0x76   : > { %p4398_p1 = pneg %p4397_p13  ;;  %p4404_p10 = por %p4403_p9, %p4402_p7 }
  0x78   : > { %p4405_p0 = pnand %p4404_p10, %p4398_p1 }
  0x7a   : > { %4408 = shalt.err (!%p4405_p0)
}
  0x7b   : > { %s4409_s25 = scalar_lea.vmem %s5204_s15, 256  ;;  %s4925_s7 = smov [#allocation15]  }
  0x7c   : > { %p4410_p2 = scmp.ne.s32.totalorder %s5204_s15, %s4409_s25  ;;  %s4414_s0 = sshll.u32 %s4925_s7, 4  ;;  %s4415_s0 = int_to_ptr.vmem [resolvable:$false] %s4414_s0 }
  0x7d   : > { %s4416_s2 = scalar_lea.vmem %s4415_s0, 512  ;;  %p4417_p8 = scmp.lt.s32.totalorder %s5204_s15, %s4415_s0 }
  0x7e   : > { %p4412_p11 = pnand %p4410_p2, %p5133_p6  ;;  %p4418_p13 = scmp.lt.s32.totalorder %s4416_s2, %s4409_s25 }
  0x80   : > { %p4413_p12 = pneg %p4412_p11  ;;  %p4419_p3 = por %p4418_p13, %p4417_p8 }
  0x82   : > { %p4420_p5 = pnand %p4419_p3, %p4413_p12 }
  0x84   : > { %4423 = shalt.err (!%p4420_p5)
}
  0x85   : > { %4100 = dma.hbm_to_vmem [thread:$0]  (!%p5121_p4), %s5201_s14, 256, %s5204_s15, %s6419_s4, %s6420_s1, %s6420_s1, %s4924_s3  }
  0x86   : > { %s6479_s8 = sld [smem:[#allocation57_spill]]  ;;  %s638_s25 = scalar_lea.vmem [#allocation18], %s5105_s30 }
  0x87   : > { %s645_s7 = sshll.u32 %s638_s25, 4  ;;  %s6429_s0 = scalar_lea.sflag [#allocation19], %s5102_s29  ;;  %s646_s7 = int_to_ptr.vmem [resolvable:$true] %s645_s7 }
  0x8c   : > { %s5237_s24 = scalar_lea.hbm %s6479_s8, %s5108_s16  ;;  %s4429_s15 = scalar_lea.hbm %s6479_s8, 64 }
  0x8d   : > { %s4424_s2 = scalar_lea.hbm %s5237_s24, 16  ;;  %p4430_p10 = scmp.lt.u32.totalorder %s5237_s24, %s6479_s8 }
  0x8e   : > { %p4425_p1 = scmp.ne.s32.totalorder %s5237_s24, %s4424_s2  ;;  %p4431_p0 = scmp.lt.u32.totalorder %s4429_s15, %s4424_s2 }
  0x8f   : > { %p4433_p11 = scmp.lt.u32.totalorder %s4424_s2, %s5237_s24 }
  0x90   : > { %p4427_p7 = pnand %p4425_p1, %p5133_p6  ;;  %p4432_p2 = por %p4431_p0, %p4430_p10 }
  0x92   : > { %p4428_p9 = pneg %p4427_p7  ;;  %p4434_p12 = por %p4433_p11, %p4432_p2 }
  0x94   : > { %p4435_p8 = pnand %p4434_p12, %p4428_p9 }
  0x96   : > { %4438 = shalt.err (!%p4435_p8)
}
  0x97   : > { %s4439_s25 = scalar_lea.vmem %s646_s7, 16  ;;  %s4926_s4 = smov [#allocation18]  }
  0x98   : > { %p4440_p13 = scmp.ne.s32.totalorder %s646_s7, %s4439_s25  ;;  %s4444_s1 = sshll.u32 %s4926_s4, 4  ;;  %s4445_s1 = int_to_ptr.vmem [resolvable:$false] %s4444_s1 }
  0x99   : > { %s4446_s6 = scalar_lea.vmem %s4445_s1, 32  ;;  %p4447_p1 = scmp.lt.s32.totalorder %s646_s7, %s4445_s1 }
  0x9a   : > { %p4442_p3 = pnand %p4440_p13, %p5133_p6  ;;  %p4448_p7 = scmp.lt.s32.totalorder %s4446_s6, %s4439_s25 }
  0x9c   : > { %p4443_p5 = pneg %p4442_p3  ;;  %p4449_p4 = por %p4448_p7, %p4447_p1 }
  0x9e   : > { %p4450_p0 = pnand %p4449_p4, %p4443_p5 }
  0xa0   : > { %4453 = shalt.err (!%p4450_p0)
}
  0xa1   : > { %p6480_p10 = scmp.ne.s32.totalorder %s6474_s13, 0  ;;  %s6481_s10 = sld [smem:[#allocation59_spill]] }
  0xa2   : > { %s673_s1 = scalar_lea.vmem [#allocation21], %s5126_s11  ;;  %s6428_s20 = scalar_lea.sflag [#allocation22], %s5102_s29 }
  0xa3   : > { %4106 = dma.hbm_to_vmem [thread:$0]  (!%p6480_p10), %s5237_s24, 16, %s646_s7, %s6429_s0  }
  0xa4   : > { %s680_s15 = sshll.u32 %s673_s1, 4  ;;  %s5267_s15 = int_to_ptr.vmem [resolvable:$true] %s680_s15 }
  0xa7   : > { %s5264_s4 = scalar_lea.hbm %s6481_s10, %s5159_s5  ;;  %s4459_s25 = scalar_lea.hbm %s6481_s10, 1024 }
  0xa8   : > { %s4454_s9 = scalar_lea.hbm %s5264_s4, 256  ;;  %p4460_p11 = scmp.lt.u32.totalorder %s5264_s4, %s6481_s10 }
  0xa9   : > { %p4455_p4 = scmp.ne.s32.totalorder %s5264_s4, %s4454_s9  ;;  %p4461_p12 = scmp.lt.u32.totalorder %s4459_s25, %s4454_s9 }
  0xaa   : > { %p4463_p13 = scmp.lt.u32.totalorder %s4454_s9, %s5264_s4 }
  0xab   : > { %p4457_p9 = pnand %p4455_p4, %p5133_p6  ;;  %p4462_p8 = por %p4461_p12, %p4460_p11 }
  0xad   : > { %p4458_p2 = pneg %p4457_p9  ;;  %p4464_p3 = por %p4463_p13, %p4462_p8 }
  0xaf   : > { %p4465_p5 = pnand %p4464_p3, %p4458_p2 }
  0xb1   : > { %4468 = shalt.err (!%p4465_p5)
}
  0xb2   : > { %s4469_s11 = scalar_lea.vmem %s5267_s15, 256  ;;  %s4927_s2 = smov [#allocation21]  }
  0xb3   : > { %p4470_p1 = scmp.ne.s32.totalorder %s5267_s15, %s4469_s11  ;;  %s4474_s14 = sshll.u32 %s4927_s2, 4  ;;  %s4475_s14 = int_to_ptr.vmem [resolvable:$false] %s4474_s14 }
  0xb4   : > { %s4476_s1 = scalar_lea.vmem %s4475_s14, 512  ;;  %p4477_p4 = scmp.lt.s32.totalorder %s5267_s15, %s4475_s14 }
  0xb5   : > { %p4472_p7 = pnand %p4470_p1, %p5133_p6  ;;  %p4478_p9 = scmp.lt.s32.totalorder %s4476_s1, %s4469_s11 }
  0xb7   : > { %p4473_p0 = pneg %p4472_p7  ;;  %p4479_p11 = por %p4478_p9, %p4477_p4 }
  0xb9   : > { %p4480_p12 = pnand %p4479_p11, %p4473_p0 }
  0xbb   : > { %4483 = shalt.err (!%p4480_p12)
}
  0xbc   : > { %s6482_s9 = smov 64   ;;  %s3803_s24 = sshll.u32 %s5105_s30, 6 }
  0xbd   : > { %4112 = dma.hbm_to_vmem [thread:$0]  (!%p6480_p10), %s5264_s4, 256, %s5267_s15, %s6428_s20, %s6482_s9, %s6482_s9, %s4924_s3  }
  0xbe   : > { %s3869_s7 = sshll.u32 %s4915_s27, 10  ;;  %s6483_s12 = sld [smem:[#allocation61_spill]] }
  0xbf   : > { %s711_s11 = scalar_lea.vmem [#allocation24], %s3803_s24  ;;  %s6427_s14 = scalar_lea.sflag [#allocation25], %s5102_s29 }
  0xc0   : > { %s718_s2 = sshll.u32 %s711_s11, 4  ;;  %s5303_s2 = int_to_ptr.vmem [resolvable:$true] %s718_s2 }
  0xc4   : > { %s5301_s6 = scalar_lea.hbm %s6483_s12, %s3869_s7  ;;  %s4489_s25 = scalar_lea.hbm %s6483_s12, 4096 }
  0xc5   : > { %s4484_s1 = scalar_lea.hbm %s5301_s6, 1024  ;;  %p4490_p3 = scmp.lt.u32.totalorder %s5301_s6, %s6483_s12 }
  0xc6   : > { %p4485_p2 = scmp.ne.s32.totalorder %s5301_s6, %s4484_s1  ;;  %p4491_p5 = scmp.lt.u32.totalorder %s4489_s25, %s4484_s1 }
  0xc7   : > { %p4493_p7 = scmp.lt.u32.totalorder %s4484_s1, %s5301_s6 }
  0xc8   : > { %p4487_p8 = pnand %p4485_p2, %p5133_p6  ;;  %p4492_p1 = por %p4491_p5, %p4490_p3 }
  0xca   : > { %p4488_p13 = pneg %p4487_p8  ;;  %p4494_p0 = por %p4493_p7, %p4492_p1 }
  0xcc   : > { %p4495_p4 = pnand %p4494_p0, %p4488_p13 }
  0xce   : > { %4498 = shalt.err (!%p4495_p4)
}
  0xcf   : > { %s4499_s24 = scalar_lea.vmem %s5303_s2, 1024  ;;  %s4928_s11 = smov [#allocation24]  }
  0xd0   : > { %p4500_p9 = scmp.ne.s32.totalorder %s5303_s2, %s4499_s24  ;;  %s4504_s4 = sshll.u32 %s4928_s11, 4  ;;  %s4505_s4 = int_to_ptr.vmem [resolvable:$false] %s4504_s4 }
  0xd1   : > { %s4506_s15 = scalar_lea.vmem %s4505_s4, 2048  ;;  %p4507_p2 = scmp.lt.s32.totalorder %s5303_s2, %s4505_s4 }
  0xd2   : > { %p4502_p11 = pnand %p4500_p9, %p5133_p6  ;;  %p4508_p8 = scmp.lt.s32.totalorder %s4506_s15, %s4499_s24 }
  0xd4   : > { %p4503_p12 = pneg %p4502_p11  ;;  %p4509_p3 = por %p4508_p8, %p4507_p2 }
  0xd6   : > { %p4510_p5 = pnand %p4509_p3, %p4503_p12 }
  0xd8   : > { %4513 = shalt.err (!%p4510_p5)
}
  0xd9   : > { %4118 = dma.hbm_to_vmem [thread:$0]  (!%p6480_p10), %s5301_s6, 1024, %s5303_s2, %s6427_s14, %s6482_s9, %s6482_s9, %s4924_s3  }
  0xda   : > { %s5333_s1 = sadd.s32 4294967295, %s4919_s28   ;;  %s3782_s25 = sadd.s32 4294967294, %s4919_s28  }
  0xdb   : > { %6484 = sst [smem:[#allocation45_spill]] %s5333_s1  ;;  %p80_p13 = scmp.ne.s32.totalorder %s4899_s23, %s4895_s22 }
  0xdc   : > { %p86_p1 = scmp.ne.s32.totalorder %s4895_s22, %s4891_s21  ;;  %p6434_p7 = scmp.eq.s32.totalorder %s5333_s1, 0 }
  0xdd   : > { %p133_p0 = scmp.ne.s32.totalorder %s4883_s19, %s4879_s18  ;;  %p6485_p4 = scmp.eq.s32.totalorder %s4919_s28, 0 }
  0xde   : > { %s6487_s3 = sld [smem:[#allocation41_spill]]  ;;  %p443_p11 = scmp.eq.s32.totalorder %s5333_s1, 7 }
  0xdf   : > { %p5345_p9 = por %p6485_p4, %p80_p13  ;;  %p5352_p12 = por %p6434_p7, %p86_p1 }
  0xe0   : > { %p5358_p2 = por %p133_p0, %p6434_p7  ;;  %p5362_p8 = por %p443_p11, %p80_p13 }
  0xe1   : > { %s6488_s9 = scalar_select %p5352_p12, 1, 0 }
  0xe2   : > { %s6489_s6 = scalar_select %p5358_p2, 1, 0 }
  0xe3   : > { %s6491_s18 = scalar_select %p5362_p8, 1, 0 }
  0xe4   : > { %6490 = sst [smem:[#allocation46_spill]] %s6489_s6  ;;  %p449_p3 = scmp.eq.s32.totalorder %s3782_s25, 7 }
  0xe5   : > { %6492 = sst [smem:[#allocation47_spill]] %s6491_s18  ;;  %p3783_p5 = scmp.ge.s32.totalorder %s4919_s28, 1 }
  0xe6   : > { %p482_p4 = scmp.lt.s32.totalorder %s4919_s28, 9  ;;  %p5368_p10 = por %p449_p3, %p86_p1 }
  0xe7   : > { %s66_s24 = sadd.s32 1, %s4915_s27  ;;  %s63_s11 = sadd.s32 1, %s4911_s26 }
  0xe8   : > { %s6493_s2 = scalar_select %p5368_p10, 1, 0 }
  0xe9   : > { %p5372_p6 = pnand %p3783_p5, %p482_p4  ;;  %s73_s4 = sadd.s32 1, %s4899_s23 }
  0xea   : > { %6494 = sst [smem:[#allocation48_spill]] %s6493_s2  ;;  %p5383_p11 = scmp.ge.s32.totalorder %s63_s11, 2 }
  0xeb   : > { %s6495_s5 = scalar_select %p5372_p6, 1, 0 }
  0xec   : > { %p4078_p0 = pneg %p5372_p6  ;;  %s120_s25 = sadd.s32 1, %s6487_s3 }
  0xed   : > { %s504_s14 = sand.u32 1, %s4899_s23   ;;  %s6497_s8 = sld [smem:[#allocation50_spill]] }
  0xee   : > { %p4079_p13 = pnand %p4078_p0, %p6434_p7 }
  0xf0   : > { %p4516_p3 = pneg %p4079_p13 }
  0xf3   : > { %s4514_s10 = scalar_lea.hbm %s6497_s8, 16 }
  0xf4   : > { %p4515_p1 = scmp.ne.s32.totalorder %s6497_s8, %s4514_s10  ;;  %p4521_p0 = scmp.lt.u32.totalorder %s4514_s10, %s6497_s8 }
  0xf6   : > { %p4517_p5 = pnand %p4516_p3, %p4515_p1 }
  0xf8   : > { %p4518_p4 = pneg %p4517_p5 }
  0xfa   : > { %p4523_p7 = pnand %p4521_p0, %p4518_p4 }
  0xfc   : > { %4526 = shalt.err (!%p4523_p7)
}
  0xfd   : > { %s4929_s6 = smov [#allocation8]   ;;  %s6570_s11 = smov (%p5383_p11, %s63_s11), 0 }
  0xfe   : > { %4081 = dma.hbm_to_smem (!%p4079_p13), %s6497_s8, 16, %s4929_s6, [#allocation7]  }
  0xff   : > { %s6572_s24 = smov (!%p5383_p11, %s66_s24), %s4915_s27  ;;  %s70_s10 = ssub.s32 %s4911_s26, %s6570_s11 }
 0x100   : > { %s4040_s12 = smul.u32 24, %s504_s14  ;;  %p68_p7 = scmp.ge.s32.totalorder %s6572_s24, 4 }
 0x101   : > { %p71_p1 = scmp.eq.s32.totalorder %s70_s10, 0  ;;  %s4041_s19 = smul.u32 384, %s4911_s26 }
 0x102   : > { %s6574_s24 = smov (%p68_p7, %s6572_s24), 0  ;;  %s6498_s6 = sld [smem:[#allocation49_spill]] }
 0x103   : > { %s5414_s21 = scalar_select %p71_p1, %s4899_s23, %s73_s4  }
 0x104   : > { %s117_s0 = ssub.s32 %s4915_s27, %s6574_s24  ;;  %s508_s2 = scalar_lea.vmem [#allocation4], %s4040_s12 }
 0x105   : > { %p118_p13 = scmp.eq.s32.totalorder %s117_s0, 0  ;;  %s515_s15 = sshll.u32 %s508_s2, 4  ;;  %s5423_s15 = int_to_ptr.vmem [resolvable:$true] %s515_s15 }
 0x106   : > { %p6499_p11 = scmp.lt.s32.totalorder %s4919_s28, 8  ;;  %s5436_s10 = scalar_lea.sflag [#allocation5], %s504_s14 }
 0x107   : > { %s6576_s3 = smov (!%p118_p13, %s6487_s3), %s120_s25 }
 0x108   : > { %s5421_s18 = scalar_lea.hbm %s6498_s6, %s4041_s19  ;;  %p5429_p3 = pnand %p6499_p11, %p5345_p9 }
 0x109   : > { %s4527_s19 = scalar_lea.hbm %s5421_s18, 384  ;;  %s4532_s0 = scalar_lea.hbm %s6498_s6, 768 }
 0x10a   : > { %p4528_p5 = scmp.ne.s32.totalorder %s5421_s18, %s4527_s19  ;;  %p4529_p4 = pneg %p5429_p3 }
 0x10b   : > { %p4533_p9 = scmp.lt.u32.totalorder %s5421_s18, %s6498_s6  ;;  %p4534_p1 = scmp.lt.u32.totalorder %s4532_s0, %s4527_s19 }
 0x10c   : > { %p4530_p0 = pnand %p4529_p4, %p4528_p5  ;;  %p4536_p11 = scmp.lt.u32.totalorder %s4527_s19, %s5421_s18 }
 0x10d   : > { %p4535_p13 = por %p4534_p1, %p4533_p9 }
 0x10e   : > { %p4531_p7 = pneg %p4530_p0 }
 0x10f   : > { %p4537_p10 = por %p4536_p11, %p4535_p13 }
 0x111   : > { %p4538_p8 = pnand %p4537_p10, %p4531_p7 }
 0x113   : > { %4541 = shalt.err (!%p4538_p8)
}
 0x114   : > { %s4542_s14 = scalar_lea.vmem %s5423_s15, 384  ;;  %s4930_s25 = smov [#allocation4]  }
 0x115   : > { %p4543_p5 = scmp.ne.s32.totalorder %s5423_s15, %s4542_s14  ;;  %s4547_s2 = sshll.u32 %s4930_s25, 4  ;;  %s4548_s2 = int_to_ptr.vmem [resolvable:$false] %s4547_s2 }
 0x116   : > { %s4549_s7 = scalar_lea.vmem %s4548_s2, 768  ;;  %p4550_p12 = scmp.lt.s32.totalorder %s5423_s15, %s4548_s2 }
 0x117   : > { %p4545_p0 = pnand %p4543_p5, %p4529_p4  ;;  %p4551_p9 = scmp.lt.s32.totalorder %s4549_s7, %s4542_s14 }
 0x119   : > { %p4546_p2 = pneg %p4545_p0  ;;  %p4552_p1 = por %p4551_p9, %p4550_p12 }
 0x11b   : > { %p4553_p13 = pnand %p4552_p1, %p4546_p2 }
 0x11d   : > { %4556 = shalt.err (!%p4553_p13)
}
 0x11e   : > { %s4931_s19 = smov 128   ;;  %s4932_s12 = smov 8  }
 0x11f   : > { %4085 = dma.hbm_to_vmem [thread:$0]  (!%p5429_p3), %s5421_s18, 384, %s5423_s15, %s5436_s10, %s4931_s19, %s4931_s19, %s4932_s12  }
 0x120   : > { %s6501_s1 = sld [smem:[#allocation52_spill]]  ;;  %s545_s14 = scalar_lea.vmem [#allocation11], %s5105_s30 }
 0x121   : > { %s552_s2 = sshll.u32 %s545_s14, 4  ;;  %p6502_p12 = scmp.ne.s32.totalorder %s6475_s17, 0  ;;  %s553_s2 = int_to_ptr.vmem [resolvable:$true] %s552_s2 }
 0x126   : > { %s5468_s25 = scalar_lea.hbm %s6501_s1, %s5108_s16  ;;  %s4562_s18 = scalar_lea.hbm %s6501_s1, 64 }
 0x127   : > { %s4557_s7 = scalar_lea.hbm %s5468_s25, 16  ;;  %p4563_p3 = scmp.lt.u32.totalorder %s5468_s25, %s6501_s1 }
 0x128   : > { %p4558_p10 = scmp.ne.s32.totalorder %s5468_s25, %s4557_s7  ;;  %p4564_p4 = scmp.lt.u32.totalorder %s4562_s18, %s4557_s7 }
 0x129   : > { %p4566_p11 = scmp.lt.u32.totalorder %s4557_s7, %s5468_s25 }
 0x12a   : > { %p4560_p2 = pnand %p4558_p10, %p6502_p12  ;;  %p4565_p7 = por %p4564_p4, %p4563_p3 }
 0x12c   : > { %p4561_p8 = pneg %p4560_p2  ;;  %p4567_p5 = por %p4566_p11, %p4565_p7 }
 0x12e   : > { %p4568_p0 = pnand %p4567_p5, %p4561_p8 }
 0x130   : > { %4571 = shalt.err (!%p4568_p0)
}
 0x131   : > { %s4572_s19 = scalar_lea.vmem %s553_s2, 16  ;;  %s4933_s12 = smov [#allocation11]  }
 0x132   : > { %p4573_p9 = scmp.ne.s32.totalorder %s553_s2, %s4572_s19  ;;  %s4577_s0 = sshll.u32 %s4933_s12, 4  ;;  %s4578_s0 = int_to_ptr.vmem [resolvable:$false] %s4577_s0 }
 0x133   : > { %s4579_s6 = scalar_lea.vmem %s4578_s0, 32  ;;  %p4580_p10 = scmp.lt.s32.totalorder %s553_s2, %s4578_s0 }
 0x134   : > { %p4575_p1 = pnand %p4573_p9, %p6502_p12  ;;  %p4581_p2 = scmp.lt.s32.totalorder %s4579_s6, %s4572_s19 }
 0x136   : > { %p4576_p13 = pneg %p4575_p1  ;;  %p4582_p6 = por %p4581_p2, %p4580_p10 }
 0x138   : > { %p4583_p3 = pnand %p4582_p6, %p4576_p13 }
 0x13a   : > { %4586 = shalt.err (!%p4583_p3)
}
 0x13b   : > { %p6503_p4 = scmp.ne.s32.totalorder %s6474_s13, 0  ;;  %s6504_s20 = scalar_lea.sflag [#allocation10], %s5102_s29 }
 0x13c   : > { %s6505_s4 = sld [smem:[#allocation54_spill]]  ;;  %s583_s15 = scalar_lea.vmem [#allocation14], %s5105_s30 }
 0x13d   : > { %4091 = dma.hbm_to_vmem [thread:$0]  (!%p6503_p4), %s5468_s25, 16, %s553_s2, %s6504_s20  }
 0x13e   : > { %s590_s10 = sshll.u32 %s583_s15, 4  ;;  %s591_s10 = int_to_ptr.vmem [resolvable:$true] %s590_s10 }
 0x142   : > { %s5494_s18 = scalar_lea.hbm %s6505_s4, %s5108_s16  ;;  %s4592_s25 = scalar_lea.hbm %s6505_s4, 64 }
 0x143   : > { %s4587_s19 = scalar_lea.hbm %s5494_s18, 16  ;;  %p4593_p11 = scmp.lt.u32.totalorder %s5494_s18, %s6505_s4 }
 0x144   : > { %p4588_p6 = scmp.ne.s32.totalorder %s5494_s18, %s4587_s19  ;;  %p4594_p5 = scmp.lt.u32.totalorder %s4592_s25, %s4587_s19 }
 0x145   : > { %p4596_p9 = scmp.lt.u32.totalorder %s4587_s19, %s5494_s18 }
 0x146   : > { %p4590_p8 = pnand %p4588_p6, %p6502_p12  ;;  %p4595_p0 = por %p4594_p5, %p4593_p11 }
 0x148   : > { %p4591_p7 = pneg %p4590_p8  ;;  %p4597_p1 = por %p4596_p9, %p4595_p0 }
 0x14a   : > { %p4598_p13 = pnand %p4597_p1, %p4591_p7 }
 0x14c   : > { %4601 = shalt.err (!%p4598_p13)
}
 0x14d   : > { %s4602_s20 = scalar_lea.vmem %s591_s10, 16  ;;  %s4934_s14 = smov [#allocation14]  }
 0x14e   : > { %p4603_p10 = scmp.ne.s32.totalorder %s591_s10, %s4602_s20  ;;  %s4607_s7 = sshll.u32 %s4934_s14, 4  ;;  %s4608_s7 = int_to_ptr.vmem [resolvable:$false] %s4607_s7 }
 0x14f   : > { %s4609_s15 = scalar_lea.vmem %s4608_s7, 32  ;;  %p4610_p6 = scmp.lt.s32.totalorder %s591_s10, %s4608_s7 }
 0x150   : > { %p4605_p2 = pnand %p4603_p10, %p6502_p12  ;;  %p4611_p8 = scmp.lt.s32.totalorder %s4609_s15, %s4602_s20 }
 0x152   : > { %p4606_p3 = pneg %p4605_p2  ;;  %p4612_p4 = por %p4611_p8, %p4610_p6 }
 0x154   : > { %p4613_p5 = pnand %p4612_p4, %p4606_p3 }
 0x156   : > { %4616 = shalt.err (!%p4613_p5)
}
 0x157   : > { %p6506_p11 = scmp.ne.s32.totalorder %s6474_s13, 0  ;;  %s6507_s19 = scalar_lea.sflag [#allocation13], %s5102_s29 }
 0x158   : > { %s6508_s25 = sld [smem:[#allocation56_spill]]  ;;  %s621_s20 = scalar_lea.vmem [#allocation17], %s5105_s30 }
 0x159   : > { %4097 = dma.hbm_to_vmem [thread:$0]  (!%p6506_p11), %s5494_s18, 16, %s591_s10, %s6507_s19  }
 0x15a   : > { %s628_s14 = sshll.u32 %s621_s20, 4  ;;  %s629_s14 = int_to_ptr.vmem [resolvable:$true] %s628_s14 }
 0x15e   : > { %s6509_s2 = smov %s6508_s25  ;;  %s5520_s6 = scalar_lea.hbm %s6508_s25, %s5108_s16 }
 0x15f   : > { %s4617_s7 = scalar_lea.hbm %s5520_s6, 16  ;;  %s4622_s18 = scalar_lea.hbm %s6509_s2, 64 }
 0x160   : > { %p4618_p4 = scmp.ne.s32.totalorder %s5520_s6, %s4617_s7  ;;  %p4623_p9 = scmp.lt.u32.totalorder %s5520_s6, %s6509_s2 }
 0x161   : > { %p4624_p1 = scmp.lt.u32.totalorder %s4622_s18, %s4617_s7  ;;  %p4626_p10 = scmp.lt.u32.totalorder %s4617_s7, %s5520_s6 }
 0x162   : > { %p4620_p7 = pnand %p4618_p4, %p6502_p12 }
 0x163   : > { %p4625_p13 = por %p4624_p1, %p4623_p9 }
 0x164   : > { %p4621_p0 = pneg %p4620_p7 }
 0x165   : > { %p4627_p2 = por %p4626_p10, %p4625_p13 }
 0x167   : > { %p4628_p3 = pnand %p4627_p2, %p4621_p0 }
 0x169   : > { %4631 = shalt.err (!%p4628_p3)
}
 0x16a   : > { %s4632_s12 = scalar_lea.vmem %s629_s14, 16  ;;  %s4935_s0 = smov [#allocation17]  }
 0x16b   : > { %p4633_p6 = scmp.ne.s32.totalorder %s629_s14, %s4632_s12  ;;  %s4637_s25 = sshll.u32 %s4935_s0, 4  ;;  %s4638_s25 = int_to_ptr.vmem [resolvable:$false] %s4637_s25 }
 0x16c   : > { %s4639_s1 = scalar_lea.vmem %s4638_s25, 32  ;;  %p4640_p4 = scmp.lt.s32.totalorder %s629_s14, %s4638_s25 }
 0x16d   : > { %p4635_p8 = pnand %p4633_p6, %p6502_p12  ;;  %p4641_p7 = scmp.lt.s32.totalorder %s4639_s1, %s4632_s12 }
 0x16f   : > { %p4636_p5 = pneg %p4635_p8  ;;  %p4642_p11 = por %p4641_p7, %p4640_p4 }
 0x171   : > { %p4643_p1 = pnand %p4642_p11, %p4636_p5 }
 0x173   : > { %4646 = shalt.err (!%p4643_p1)
}
 0x174   : > { %p6510_p9 = scmp.ne.s32.totalorder %s6474_s13, 0  ;;  %s6511_s20 = scalar_lea.sflag [#allocation16], %s5102_s29 }
 0x175   : > { %s6512_s18 = sld [smem:[#allocation58_spill]]  ;;  %s655_s12 = scalar_lea.vmem [#allocation20], %s5105_s30 }
 0x176   : > { %4103 = dma.hbm_to_vmem [thread:$0]  (!%p6510_p9), %s5520_s6, 16, %s629_s14, %s6511_s20  }
 0x177   : > { %s662_s0 = sshll.u32 %s655_s12, 4  ;;  %s663_s0 = int_to_ptr.vmem [resolvable:$true] %s662_s0 }
 0x17b   : > { %s6513_s10 = smov %s6512_s18  ;;  %s5546_s19 = scalar_lea.hbm %s6512_s18, %s5108_s16 }
 0x17c   : > { %s4647_s25 = scalar_lea.hbm %s5546_s19, 16  ;;  %s4652_s6 = scalar_lea.hbm %s6513_s10, 64 }
 0x17d   : > { %p4648_p11 = scmp.ne.s32.totalorder %s5546_s19, %s4647_s25  ;;  %p4653_p10 = scmp.lt.u32.totalorder %s5546_s19, %s6513_s10 }
 0x17e   : > { %p4654_p2 = scmp.lt.u32.totalorder %s4652_s6, %s4647_s25  ;;  %p4656_p6 = scmp.lt.u32.totalorder %s4647_s25, %s5546_s19 }
 0x17f   : > { %p4650_p0 = pnand %p4648_p11, %p6502_p12 }
 0x180   : > { %p4655_p3 = por %p4654_p2, %p4653_p10 }
 0x181   : > { %p4651_p13 = pneg %p4650_p0 }
 0x182   : > { %p4657_p8 = por %p4656_p6, %p4655_p3 }
 0x184   : > { %p4658_p5 = pnand %p4657_p8, %p4651_p13 }
 0x186   : > { %4661 = shalt.err (!%p4658_p5)
}
 0x187   : > { %s4662_s7 = scalar_lea.vmem %s663_s0, 16  ;;  %s4936_s15 = smov [#allocation20]  }
 0x188   : > { %p4663_p4 = scmp.ne.s32.totalorder %s663_s0, %s4662_s7  ;;  %s4667_s18 = sshll.u32 %s4936_s15, 4  ;;  %s4668_s18 = int_to_ptr.vmem [resolvable:$false] %s4667_s18 }
 0x189   : > { %s4669_s2 = scalar_lea.vmem %s4668_s18, 32  ;;  %p4670_p11 = scmp.lt.s32.totalorder %s663_s0, %s4668_s18 }
 0x18a   : > { %p4665_p7 = pnand %p4663_p4, %p6502_p12  ;;  %p4671_p0 = scmp.lt.s32.totalorder %s4669_s2, %s4662_s7 }
 0x18c   : > { %p4666_p1 = pneg %p4665_p7  ;;  %p4672_p9 = por %p4671_p0, %p4670_p11 }
 0x18e   : > { %p4673_p2 = pnand %p4672_p9, %p4666_p1 }
 0x190   : > { %4676 = shalt.err (!%p4673_p2)
}
 0x191   : > { %p6514_p10 = scmp.ne.s32.totalorder %s6474_s13, 0  ;;  %s6515_s12 = scalar_lea.sflag [#allocation19], %s5102_s29 }
 0x192   : > { %s6516_s6 = sld [smem:[#allocation60_spill]]  ;;  %s693_s20 = scalar_lea.vmem [#allocation23], %s5105_s30 }
 0x193   : > { %4109 = dma.hbm_to_vmem [thread:$0]  (!%p6514_p10), %s5546_s19, 16, %s663_s0, %s6515_s12  }
 0x194   : > { %s700_s7 = sshll.u32 %s693_s20, 4  ;;  %s701_s7 = int_to_ptr.vmem [resolvable:$true] %s700_s7 }
 0x198   : > { %s5572_s14 = scalar_lea.hbm %s6516_s6, %s5108_s16  ;;  %s4682_s19 = scalar_lea.hbm %s6516_s6, 64 }
 0x199   : > { %s4677_s15 = scalar_lea.hbm %s5572_s14, 16  ;;  %p4683_p6 = scmp.lt.u32.totalorder %s5572_s14, %s6516_s6 }
 0x19a   : > { %p4678_p9 = scmp.ne.s32.totalorder %s5572_s14, %s4677_s15  ;;  %p4684_p8 = scmp.lt.u32.totalorder %s4682_s19, %s4677_s15 }
 0x19b   : > { %p4686_p4 = scmp.lt.u32.totalorder %s4677_s15, %s5572_s14 }
 0x19c   : > { %p4680_p13 = pnand %p4678_p9, %p6502_p12  ;;  %p4685_p5 = por %p4684_p8, %p4683_p6 }
 0x19e   : > { %p4681_p3 = pneg %p4680_p13  ;;  %p4687_p7 = por %p4686_p4, %p4685_p5 }
 0x1a0   : > { %p4688_p1 = pnand %p4687_p7, %p4681_p3 }
 0x1a2   : > { %4691 = shalt.err (!%p4688_p1)
}
 0x1a3   : > { %s4692_s25 = scalar_lea.vmem %s701_s7, 16  ;;  %s4937_s1 = smov [#allocation23]  }
 0x1a4   : > { %p4693_p11 = scmp.ne.s32.totalorder %s701_s7, %s4692_s25  ;;  %s4697_s20 = sshll.u32 %s4937_s1, 4  ;;  %s4698_s20 = int_to_ptr.vmem [resolvable:$false] %s4697_s20 }
 0x1a5   : > { %s4699_s18 = scalar_lea.vmem %s4698_s20, 32  ;;  %p4700_p9 = scmp.lt.s32.totalorder %s701_s7, %s4698_s20 }
 0x1a6   : > { %p4695_p0 = pnand %p4693_p11, %p6502_p12  ;;  %p4701_p13 = scmp.lt.s32.totalorder %s4699_s18, %s4692_s25 }
 0x1a8   : > { %p4696_p2 = pneg %p4695_p0  ;;  %p4702_p10 = por %p4701_p13, %p4700_p9 }
 0x1aa   : > { %p4703_p6 = pnand %p4702_p10, %p4696_p2 }
 0x1ac   : > { %4706 = shalt.err (!%p4703_p6)
}
 0x1ad   : > { %p6517_p8 = scmp.ne.s32.totalorder %s6474_s13, 0  ;;  %s6518_s15 = scalar_lea.sflag [#allocation22], %s5102_s29 }
 0x1ae   : > { %s6519_s0 = sld [smem:[#allocation62_spill]]  ;;  %s731_s25 = scalar_lea.vmem [#allocation26], %s5105_s30 }
 0x1af   : > { %4115 = dma.hbm_to_vmem [thread:$0]  (!%p6517_p8), %s5572_s14, 16, %s701_s7, %s6518_s15  }
 0x1b0   : > { %s738_s1 = sshll.u32 %s731_s25, 4  ;;  %s739_s1 = int_to_ptr.vmem [resolvable:$true] %s738_s1 }
 0x1b4   : > { %s5598_s12 = scalar_lea.hbm %s6519_s0, %s5108_s16  ;;  %s4712_s14 = scalar_lea.hbm %s6519_s0, 64 }
 0x1b5   : > { %s4707_s20 = scalar_lea.hbm %s5598_s12, 16  ;;  %p4713_p4 = scmp.lt.u32.totalorder %s5598_s12, %s6519_s0 }
 0x1b6   : > { %p4708_p10 = scmp.ne.s32.totalorder %s5598_s12, %s4707_s20  ;;  %p4714_p7 = scmp.lt.u32.totalorder %s4712_s14, %s4707_s20 }
 0x1b7   : > { %p4716_p11 = scmp.lt.u32.totalorder %s4707_s20, %s5598_s12 }
 0x1b8   : > { %p4710_p3 = pnand %p4708_p10, %p6502_p12  ;;  %p4715_p1 = por %p4714_p7, %p4713_p4 }
 0x1ba   : > { %p4711_p5 = pneg %p4710_p3  ;;  %p4717_p0 = por %p4716_p11, %p4715_p1 }
 0x1bc   : > { %p4718_p2 = pnand %p4717_p0, %p4711_p5 }
 0x1be   : > { %4721 = shalt.err (!%p4718_p2)
}
 0x1bf   : > { %s4722_s30 = scalar_lea.vmem %s739_s1, 16  ;;  %s4938_s16 = smov [#allocation26]  }
 0x1c0   : > { %p4723_p9 = scmp.ne.s32.totalorder %s739_s1, %s4722_s30  ;;  %s4727_s2 = sshll.u32 %s4938_s16, 4  ;;  %s4728_s2 = int_to_ptr.vmem [resolvable:$false] %s4727_s2 }
 0x1c1   : > { %s4729_s4 = scalar_lea.vmem %s4728_s2, 32  ;;  %p4730_p10 = scmp.lt.s32.totalorder %s739_s1, %s4728_s2 }
 0x1c2   : > { %p4725_p13 = pnand %p4723_p9, %p6502_p12  ;;  %p4731_p3 = scmp.lt.s32.totalorder %s4729_s4, %s4722_s30 }
 0x1c4   : > { %p4726_p6 = pneg %p4725_p13  ;;  %p4732_p8 = por %p4731_p3, %p4730_p10 }
 0x1c6   : > { %p4733_p4 = pnand %p4732_p8, %p4726_p6 }
 0x1c8   : > { %4736 = shalt.err (!%p4733_p4)
}
 0x1c9   : > { %p6520_p7 = scmp.ne.s32.totalorder %s6474_s13, 0  ;;  %s6521_s19 = scalar_lea.sflag [#allocation25], %s5102_s29 }
 0x1ca   : > { %p6522_p5 = scmp.ne.s32.totalorder %s6495_s5, 0 }
 0x1cb   : > { %4121 = dma.hbm_to_vmem [thread:$0]  (!%p6520_p7), %s5598_s12, 16, %s739_s1, %s6521_s19  }
 0x1cc   : > { %747 = sbr.rel (%p6522_p5) target bundleno = 3299 (0xce3), region = 76  ;;  %s5623_s17 = sand.u32 (!%p6522_p5), 1, %s4895_s22  }
 0x1cd   : > { %s4042_s25 = smul.u32 (!%p6522_p5), 24, %s5623_s17  ;;  %s750_s20 = scalar_lea.sflag (!%p6522_p5), [#allocation5], %s5623_s17 }
 0x1ce   : > { %p6523_p12 = scmp.ne.s32.totalorder (!%p6522_p5), %s6488_s9, 0 }
 0x1cf   : > { %s5629_s18 = scalar_lea.vmem (!%p6522_p5), [#allocation4], %s4042_s25 }
 0x1d3   : > { %4838 = dma.done.wait (%p6523_p12), %s750_s20, 384  }
 0x1d4   : > { %4840 = vsyncadd (%p6523_p12), %s750_s20, 4294966912  ;;  %s6524_s13 = sld [smem:[#allocation45_spill]] }
 0x1da   : > { %p6525_p8 = scmp.eq.s32.totalorder %s6524_s13, 0 }
 0x1dc   : > { %4842 = dma.done.wait (%p6525_p8), [#allocation7], 16   ;;  %p6526_p1 = pmov %p6525_p8 }
 0x1dd   : > { %s6527_s29 = sld [smem:[#allocation40_spill]]  ;;  %s6528_s5 = sld [smem:[#allocation46_spill]] }
 0x1de   : > { %4844 = vsyncadd (%p6526_p1), [#allocation7], 4294967280  ;;  %s5640_s12 = sand.u32 1, %s6524_s13  }
 0x1df   : > { %s763_s14 = scalar_lea.sflag [#allocation10], %s5640_s12 }
 0x1e3   : > { %s5643_s1 = sand.u32 1, %s6527_s29   ;;  %p6529_p11 = scmp.ne.s32.totalorder %s6528_s5, 0 }
 0x1e4   : > { %s765_s7 = scalar_lea.vmem [#allocation9], %s5643_s1 }
 0x1e5   : > { %4846 = dma.done.wait (%p6529_p11), %s763_s14, 32  }
 0x1e6   : > { %4848 = vsyncadd (%p6529_p11), %s763_s14, 4294967264  ;;  %s5652_s9 = sshll.u32 %s5643_s1, 4  ;;  %s773_s15 = scalar_lea.vmem [#allocation11], %s5643_s1 }
 0x1e7   : > { %s779_s30 = scalar_lea.sflag [#allocation13], %s5640_s12  ;;  %s782_s16 = scalar_lea.vmem [#allocation12], %s5652_s9 }
 0x1e8   : > { %4850 = dma.done.wait (%p6529_p11), %s779_s30, 272  }
 0x1e9   : > { %4852 = vsyncadd (%p6529_p11), %s779_s30, 4294967024  ;;  %s796_s4 = scalar_lea.sflag [#allocation16], %s5640_s12 }
 0x1ea   : > { %4854 = dma.done.wait (%p6529_p11), %s796_s4, 272  }
 0x1eb   : > { %4856 = vsyncadd (%p6529_p11), %s796_s4, 4294967024  ;;  %s813_s13 = scalar_lea.sflag [#allocation19], %s5640_s12 }
 0x1ec   : > { %4858 = dma.done.wait (%p6529_p11), %s813_s13, 32  }
 0x1ed   : > { %4860 = vsyncadd (%p6529_p11), %s813_s13, 4294967264  ;;  %s829_s30 = scalar_lea.sflag [#allocation22], %s5640_s12 }
 0x1ee   : > { %4862 = dma.done.wait (%p6529_p11), %s829_s30, 272  }
 0x1ef   : > { %4864 = vsyncadd (%p6529_p11), %s829_s30, 4294967024  ;;  %s3812_s4 = sshll.u32 %s5643_s1, 6  ;;  %s840_s29 = scalar_lea.vmem [#allocation23], %s5643_s1 }
 0x1f0   : > { %s846_s20 = scalar_lea.sflag [#allocation25], %s5640_s12  ;;  %s5685_s13 = scalar_lea.vmem [#allocation24], %s3812_s4 }
 0x1f1   : > { %4866 = dma.done.wait (%p6529_p11), %s846_s20, 1040  }
 0x1f2   : > { %4868 = vsyncadd (%p6529_p11), %s846_s20, 4294966256  ;;  %s857_s14 = scalar_lea.vmem [#allocation26], %s5643_s1 }
 0x1f3   : > { %862 = sfence }
 0x1f4   : > { %s5694_s30 = scalar_lea.vmem [#allocation27], %s4042_s25  ;;  %s6530_s2 = sld [smem:[#allocation44_spill]] }
 0x1fa   : > { %p3813_p0 = scmp.ne.s32.totalorder %s6530_s2, 0 }
 0x1fb   : > { %s6531_s12 = sld [smem:[#allocation43_spill]] (!%p3813_p0)  ;;  %v966_v0 = vld [vmem:[%s5629_s18] sm:$0xff] (!%p3813_p0)  ;;  %vm971_vm0 = vcmask (!%p3813_p0), 261120   ;;  %v967_v1 = vld [vmem:[%s5629_s18 + $0x8] sm:$0xff] (!%p3813_p0)  ;;  %v968_v2 = vld [vmem:[%s5629_s18 + $0x10] sm:$0x1] (!%p3813_p0) }
 0x1fc   : > { %965 = sbr.rel (%p3813_p0) target bundleno = 518 (0x206), region = 136  ;;  %vm974_vm1 = vcmask (!%p3813_p0), 253952  }
 0x201   : > { %s969_s5 = smul.u32 (!%p3813_p0), 24, %s6531_s12 }
 0x203   : > { %s970_s20 = scalar_lea.vmem [#allocation2], %s969_s5 }
 0x204   : > { %972 = vst.msk [vmem:[%s970_s20] sm:$0xff] %vm971_vm0, %v966_v0  ;;  %973 = vst.msk [vmem:[%s970_s20 + $0x8] sm:$0xff] %vm971_vm0, %v967_v1 }
 0x205   : > { %975 = vst.msk [vmem:[%s970_s20 + $0x10] sm:$0x1] %vm974_vm1, %v968_v2 }
 0x206 PF: > { %s6532_s25 = sld [smem:[#allocation43_spill]]  ;;  %vm1017_vm2 = vcmask 261120   ;;  %vm1024_vm3 = vcmask 253952   ;;  %v4245_v24 = vld [vmem:[%s782_s16] sm:$0xff]   ;;  %v4246_v25 = vld [vmem:[%s782_s16 + $0x8] sm:$0xff]   ;;  %s6533_s18 = scalar_lea.vmem [#allocation14], %s5643_s1  ;;  %v1222_v0 = vlaneseq }
 0x207   : > { %3924 = vmatprep.subr.bf16.mxu0 %v4245_v24  ;;  %v3814_v37 = vld [vmem:[%s765_s7] ss:$0 sm:$0xff]  ;;  %s4939_s7 = smov 120   ;;  %s4941_s16 = smov 88   ;;  %v4950_v62 = vmov 1983009808  }
 0x208   : > { %3925 = vmatpush3.bf16.msra.mxu0 %v4245_v24  ;;  %v3815_v43 = vld [vmem:[%s773_s15] ss:$0 sm:$0xff]  ;;  %s4940_s15 = smov 112   ;;  %s4942_s12 = smov 104   ;;  %v1220_v63 = vunpack.c.l.s4 %v4950_v62  ;;  %vm1958_vm4 = vcmask 64512   ;;  %vm2355_vm5 = vcmask 1040384  }
 0x209   : > { %3926 = vmatprep.subr.bf16.mxu0 %v4246_v25  ;;  %v3816_v51 = vld [vmem:[%s6533_s18] ss:$0 sm:$0xff]  ;;  %s4943_s5 = smov 72   ;;  %s4944_s20 = smov 96   ;;  %vm2206_vm6 = vcmask 131072   ;;  %vm2199_vm7 = vcmask 138240  }
 0x20a   : > { %s4947_s18 = smov 40   ;;  %s4949_s19 = smov 48   ;;  %vm2333_vm8 = vcmask 131080   ;;  %vm2950_vm9 = vcmask 130048   ;;  %vm2955_vm10 = vcmask 195584  }
 0x20c   : > { %s976_s4 = smul.u32 24, %s6532_s25  ;;  %3927 = vmatpush3.bf16.msra.mxu0 %v4246_v25  ;;  %s4945_s25 = smov 56  }
 0x20e   : > { %s5705_s2 = scalar_lea.vmem [#allocation2], %s976_s4  ;;  %s4946_s4 = smov 80  }
 0x20f   : > { %v978_v3 = vld [vmem:[%s5705_s2] sm:$0xff]  ;;  %v980_v4 = vld [vmem:[%s5705_s2 + $0x10] sm:$0x1]  ;;  %v979_v5 = vld [vmem:[%s5705_s2 + $0x8] sm:$0xff] }
 0x210   : > { %v1018_v6 = vsel %vm1017_vm2, %v978_v3, 0.0  ;;  %v1025_v7 = vsel %vm1024_vm3, %v980_v4, 0.0  ;;  %v1021_v8 = vsel %vm1017_vm2, %v979_v5, 0.0 }
 0x211   : > { %1019 = vadd.xlane.f32.xlu0 %v1018_v6  ;;  %1026 = vadd.xlane.f32.xlu1 %v1025_v7  ;;  %v4951_v7 = vmov 1934713408  }
 0x215   : > { %1022 = vadd.xlane.f32.xlu0 %v1021_v8  ;;  %v1282_v8 = vunpack.c.l.s4 %v4951_v7 }
 0x29e   : > { %v1020_v9 = vpop.xlane.xlu0 %1019  ;;  %v1027_v10 = vpop.xlane.xlu1 %1026 }
 0x29f   : > { %v1029_v11 = vmul.f32 0.03125, %v1020_v9  ;;  %v1031_v12 = vmul.f32 0.03125, %v1027_v10 }
 0x2a1   : > { %v1032_v13 = vsub.f32 %v978_v3, %v1029_v11  ;;  %v1034_v14 = vsub.f32 %v980_v4, %v1031_v12  ;;  %v1221_v3 = vunpack.c.0.s8 %v1220_v63  ;;  %v1223_v4 = vshrl.u32 %v1222_v0, 7 }
 0x2a2   : > { %v1023_v15 = vpop.xlane.xlu0 %1022 }
 0x2a3   : > { %v1030_v16 = vmul.f32 0.03125, %v1023_v15  ;;  %v1035_v17 = vmul.f32 %v1032_v13, %v1032_v13  ;;  %v1037_v18 = vmul.f32 %v1034_v14, %v1034_v14  ;;  %v5756_v9 = vsub.s32 %v1221_v3, %v1223_v4 }
 0x2a5   : > { %v1033_v19 = vsub.f32 %v979_v5, %v1030_v16  ;;  %v1038_v20 = vsel %vm1017_vm2, %v1035_v17, 0.0  ;;  %v1044_v21 = vsel %vm1024_vm3, %v1037_v18, 0.0 }
 0x2a6   : > { %1039 = vadd.xlane.f32.xlu1 %v1038_v20 }
 0x2a7   : > { %v1036_v22 = vmul.f32 %v1033_v19, %v1033_v19 }
 0x2a9   : > { %v1041_v23 = vsel %vm1017_vm2, %v1036_v22, 0.0 }
 0x2aa   : > { %1045 = vadd.xlane.f32.xlu1 %v1044_v21  ;;  %1042 = vadd.xlane.f32.xlu0 %v1041_v23 }
 0x333   : > { %v1040_v26 = vpop.xlane.xlu1 %1039 }
 0x334   : > { %v1047_v27 = vmul.f32 0.03125, %v1040_v26 }
 0x336   : > { %v1050_v28 = vadd.f32 1e-06, %v1047_v27 }
 0x337   : > { %v1046_v29 = vpop.xlane.xlu1 %1045  ;;  %v1043_v30 = vpop.xlane.xlu0 %1042 }
 0x338   : > { %4259 = vrsqrt.f32 %v1050_v28  ;;  %v1049_v31 = vmul.f32 0.03125, %v1046_v29  ;;  %v1048_v32 = vmul.f32 0.03125, %v1043_v30 }
 0x33a   : > { %v1052_v33 = vadd.f32 1e-06, %v1049_v31  ;;  %v1051_v34 = vadd.f32 1e-06, %v1048_v32  ;;  %v4952_v32 = vmov 0  }
 0x33c   : > { %4261 = vrsqrt.f32 %v1052_v33 }
 0x33d   : > { %4263 = vrsqrt.f32 %v1051_v34 }
 0x342   : > { %v4260_v35 = vpop.eup %4259 }
 0x343   : > { %v1056_v36 = vmul.f32 %v4260_v35, %v1032_v13  ;;  %v1283_v13 = vunpack.c.0.s8 %v1282_v8 }
 0x345   : > { %v1065_v42 = vmul.f32 %v3814_v37, %v1056_v36  ;;  %v5763_v23 = vsub.s32 %v1283_v13, %v1223_v4 }
 0x346   : > { %v4262_v38 = vpop.eup %4261 }
 0x347   : > { %v4264_v39 = vpop.eup %4263  ;;  %v1058_v40 = vmul.f32 %v4262_v38, %v1034_v14  ;;  %v1074_v47 = vadd.f32 %v3815_v43, %v1065_v42 }
 0x348   : > { %v1057_v41 = vmul.f32 %v4264_v39, %v1033_v19 }
 0x349   : > { %v1067_v44 = vmul.f32 %v3814_v37, %v1058_v40 }
 0x34a   : > { %v1066_v45 = vmul.f32 %v3814_v37, %v1057_v41 }
 0x34b   : > { %v1076_v46 = vadd.f32 %v3815_v43, %v1067_v44 }
 0x34c   : > { %v1075_v48 = vadd.f32 %v3815_v43, %v1066_v45 }
 0x34d   : > { %v1078_v49 = vpack.c.bf16 %v1076_v46, %v1076_v46 }
 0x34e   : > { %v1077_v50 = vpack.c.bf16 %v1075_v48, %v1074_v47 }
 0x350   : > { %3928 = vmatprep.mubr.msk.bf16.mxu0 %vm1017_vm2, %v1077_v50 }
 0x351   : > { %3929 = vmatmul.mubr.msk.bf16.vlgmr.msra.gmra.mrb[0].mxu0 %vm1017_vm2, %v1078_v49 }
 0x424   : > { %v3930_v52 = vpop.f32.mrb[0].mxu0 }
 0x425   : > { %v1146_v53 = vadd.f32 %v3930_v52, %v3816_v51  ;;  %v1137_v54 = vpop.f32.mrb[1].mxu0 }
 0x426   : > { %v3931_v55 = vpop.f32.mrb[2].mxu0  ;;  %v1138_v58 = vadd.f32 %v3816_v51, %v1137_v54 }
 0x427   : > { %v5728_v56 = vpack.c.bf16 %v1146_v53, %v1146_v53  ;;  %v1140_v57 = vpop.f32.mrb[3].mxu0 }
 0x428   : > { %v1141_v59 = vadd.f32 %v3816_v51, %v1140_v57 }
 0x429   : > { %1157 = vrot.lane.b32.xlu1 %v5728_v56, %s4939_s7 }
 0x42a   : > { %v5731_v60 = vpack.c.bf16 %v1141_v59, %v1138_v58 }
 0x42c   : > { %1155 = vrot.lane.b32.xlu0 %v5731_v60, %s4939_s7  ;;  %s4948_s7 = smov 64  }
 0x42d   : > { %1161 = vrot.lane.b32.xlu1 %v5731_v60, %s4940_s15 }
 0x430   : > { %1179 = vrot.lane.b32.xlu0 %v5731_v60, %s4941_s16 }
 0x431   : > { %1167 = vrot.lane.b32.xlu1 %v5731_v60, %s4942_s12 }
 0x434   : > { %1191 = vrot.lane.b32.xlu0 %v5731_v60, %s4943_s5 }
 0x435   : > { %1173 = vrot.lane.b32.xlu1 %v5731_v60, %s4944_s20 }
 0x438   : > { %1202 = vrot.lane.b32.xlu0 %v5731_v60, %s4945_s25 }
 0x439   : > { %1185 = vrot.lane.b32.xlu1 %v5731_v60, %s4946_s4 }
 0x43c   : > { %1212 = vrot.lane.b32.xlu0 %v5731_v60, %s4947_s18 }
 0x43d   : > { %1197 = vrot.lane.b32.xlu1 %v5731_v60, %s4948_s7 }
 0x440   : > { %1163 = vrot.lane.b32.xlu0 %v5728_v56, %s4940_s15  ;;  %s4953_s15 = smov 8  }
 0x441   : > { %1207 = vrot.lane.b32.xlu1 %v5731_v60, %s4949_s19 }
 0x444   : > { %1175 = vrot.lane.b32.xlu0 %v5728_v56, %s4944_s20  ;;  %s6536_s20 = scalar_lea.vmem [#allocation17], %s5643_s1 }
 0x445   : > { %1169 = vrot.lane.b32.xlu1 %v5728_v56, %s4942_s12  ;;  %s4954_s12 = smov 16  }
 0x448   : > { %1187 = vrot.lane.b32.xlu0 %v5728_v56, %s4946_s4  ;;  %s6537_s4 = scalar_lea.vmem [#allocation21], %s5652_s9 }
 0x449   : > { %1181 = vrot.lane.b32.xlu1 %v5728_v56, %s4941_s16 }
 0x44c   : > { %1199 = vrot.lane.b32.xlu0 %v5728_v56, %s4948_s7  ;;  %s6540_s7 = scalar_lea.vmem [#allocation20], %s5643_s1 }
 0x44d   : > { %1193 = vrot.lane.b32.xlu1 %v5728_v56, %s4943_s5  ;;  %s4955_s5 = smov 24  }
 0x450   : > { %1209 = vrot.lane.b32.xlu0 %v5728_v56, %s4949_s19  ;;  %s6534_s19 = scalar_lea.vmem [#allocation15], %s5652_s9  ;;  %s6539_s9 = scalar_lea.vmem [#allocation18], %s5643_s1 }
 0x451   : > { %1204 = vrot.lane.b32.xlu1 %v5728_v56, %s4945_s25  ;;  %s6535_s16 = smov %s6534_s19  ;;  %s4956_s25 = smov 127  }
 0x455   : > { %1214 = vrot.lane.b32.xlu1 %v5728_v56, %s4947_s18  ;;  %s6538_s18 = smov %s6537_s4 }
 0x49b   : > { %v5754_v61 = vpop.permute.xlu1 %1157 }
 0x49e   : > { %v1156_v1 = vpop.permute.xlu0 %1155 }
 0x49f   : > { %v1162_v2 = vpop.permute.xlu1 %1161 }
 0x4a2   : > { %v1180_v5 = vpop.permute.xlu0 %1179 }
 0x4a3   : > { %v1168_v6 = vpop.permute.xlu1 %1167  ;;  %v1351_v10 = vcombine.low %v1156_v1, %v1180_v5  ;;  %v1352_v11 = vcombine.high %v1156_v1, %v1180_v5 }
 0x4a5   : > { %v1359_v17 = vrot.slane %v1351_v10, %v5756_v9  ;;  %v1366_v20 = vrot.slane %v1352_v11, %v5756_v9 }
 0x4a6   : > { %v1192_v12 = vpop.permute.xlu0 %1191 }
 0x4a7   : > { %v1367_v14 = vcombine.low %v1168_v6, %v1192_v12  ;;  %v1368_v15 = vcombine.high %v1168_v6, %v1192_v12  ;;  %v1174_v16 = vpop.permute.xlu1 %1173 }
 0x4a8   : > { %v1217_v21 = vcombine.low %v5731_v60, %v1174_v16  ;;  %v1218_v26 = vcombine.high %v5731_v60, %v1174_v16 }
 0x4a9   : > { %v1375_v18 = vrot.slane %v1367_v14, %v5756_v9  ;;  %v1382_v19 = vrot.slane %v1368_v15, %v5756_v9 }
 0x4aa   : > { %v1203_v22 = vpop.permute.xlu0 %1202  ;;  %v1225_v34 = vrot.slane %v1217_v21, %v5756_v9  ;;  %v1232_v38 = vrot.slane %v1218_v26, %v5756_v9 }
 0x4ab   : > { %v1413_v24 = vcombine.low %v1359_v17, %v1375_v18  ;;  %v1414_v25 = vcombine.high %v1359_v17, %v1375_v18  ;;  %v1186_v27 = vpop.permute.xlu1 %1185  ;;  %v1429_v28 = vcombine.low %v1366_v20, %v1382_v19  ;;  %v1430_v29 = vcombine.high %v1366_v20, %v1382_v19 }
 0x4ac   : > { %v1233_v30 = vcombine.low %v1162_v2, %v1186_v27  ;;  %v1234_v31 = vcombine.high %v1162_v2, %v1186_v27  ;;  %v1383_v33 = vcombine.high %v1203_v22, %v4952_v32  ;;  %v1390_v39 = vrot.slane %v1203_v22, %v5756_v9 }
 0x4ad   : > { %v1421_v43 = vrot.slane %v1413_v24, %v5763_v23  ;;  %v1428_v44 = vrot.slane %v1414_v25, %v5763_v23  ;;  %v1437_v45 = vrot.slane %v1429_v28, %v5763_v23  ;;  %v1444_v46 = vrot.slane %v1430_v29, %v5763_v23 }
 0x4ae   : > { %v1241_v35 = vrot.slane %v1233_v30, %v5756_v9  ;;  %v1248_v36 = vrot.slane %v1234_v31, %v5756_v9  ;;  %v1213_v37 = vpop.permute.xlu0 %1212  ;;  %v1397_v47 = vrot.slane %v1383_v33, %v5756_v9 }
 0x4af   : > { %v1398_v40 = vcombine.high %v1213_v37, %v4952_v32  ;;  %v1405_v41 = vrot.slane %v1213_v37, %v5756_v9  ;;  %v1198_v42 = vpop.permute.xlu1 %1197 }
 0x4b0   : > { %v1279_v51 = vcombine.low %v1225_v34, %v1241_v35  ;;  %v1280_v52 = vcombine.high %v1225_v34, %v1241_v35  ;;  %v1295_v53 = vcombine.low %v1232_v38, %v1248_v36  ;;  %v1296_v54 = vcombine.high %v1232_v38, %v1248_v36 }
 0x4b1   : > { %v1412_v48 = vrot.slane %v1398_v40, %v5756_v9  ;;  %v1445_v49 = vcombine.low %v1390_v39, %v1405_v41  ;;  %v1446_v50 = vcombine.high %v1390_v39, %v1405_v41  ;;  %v1249_v63 = vcombine.high %v1198_v42, %v4952_v32 }
 0x4b2   : > { %v1164_v55 = vpop.permute.xlu0 %1163  ;;  %v1256_v0 = vrot.slane %v1198_v42, %v5756_v9  ;;  %v1287_v7 = vrot.slane %v1279_v51, %v5763_v23  ;;  %v1294_v13 = vrot.slane %v1280_v52, %v5763_v23  ;;  %v1303_v18 = vrot.slane %v1295_v53, %v5763_v23 }
 0x4b3   : > { %v1453_v57 = vrot.slane %v1445_v49, %v5763_v23  ;;  %v1460_v58 = vrot.slane %v1446_v50, %v5763_v23  ;;  %v1461_v59 = vcombine.low %v1397_v47, %v1412_v48  ;;  %v1462_v60 = vcombine.high %v1397_v47, %v1412_v48  ;;  %v1208_v62 = vpop.permute.xlu1 %1207 }
 0x4b4   : > { %v1264_v1 = vcombine.high %v1208_v62, %v4952_v32  ;;  %v1271_v2 = vrot.slane %v1208_v62, %v5756_v9  ;;  %v1310_v19 = vrot.slane %v1296_v54, %v5763_v23  ;;  %v1263_v21 = vrot.slane %v1249_v63, %v5756_v9 }
 0x4b5   : > { %v1469_v3 = vrot.slane %v1461_v59, %v5763_v23  ;;  %v1476_v4 = vrot.slane %v1462_v60, %v5763_v23  ;;  %v1477_v5 = vcombine.low %v1421_v43, %v1453_v57  ;;  %v1478_v6 = vcombine.high %v1421_v43, %v1453_v57 }
 0x4b6   : > { %v1479_v8 = vcombine.low %v1428_v44, %v1460_v58  ;;  %v1278_v10 = vrot.slane %v1264_v1, %v5756_v9  ;;  %v1311_v11 = vcombine.low %v1256_v0, %v1271_v2  ;;  %v5790_v12 = vpop.permute.xlu0 %1175  ;;  %v1480_v14 = vcombine.high %v1428_v44, %v1460_v58 }
 0x4b7   : > { %v1481_v15 = vcombine.low %v1437_v45, %v1469_v3  ;;  %v1482_v16 = vcombine.high %v1437_v45, %v1469_v3  ;;  %v5793_v17 = vpop.permute.xlu1 %1169  ;;  %v1483_v20 = vcombine.low %v1444_v46, %v1476_v4  ;;  %v1484_v22 = vcombine.high %v1444_v46, %v1476_v4 }
 0x4b8   : > { %v1560_v24 = vshrl.u32 %v1477_v5, 16  ;;  %v1568_v25 = vshrl.u32 %v1478_v6, 16  ;;  %v1576_v26 = vshrl.u32 %v1479_v8, 16  ;;  %v1312_v27 = vcombine.high %v1256_v0, %v1271_v2 }
 0x4b9   : > { %v1319_v28 = vrot.slane %v1311_v11, %v5763_v23  ;;  %v1327_v29 = vcombine.low %v1263_v21, %v1278_v10  ;;  %v1328_v30 = vcombine.high %v1263_v21, %v1278_v10  ;;  %v1584_v33 = vshrl.u32 %v1480_v14, 16 }
 0x4ba   : > { %v1188_v31 = vpop.permute.xlu0 %1187  ;;  %v1592_v34 = vshrl.u32 %v1481_v15, 16  ;;  %v1600_v35 = vshrl.u32 %v1482_v16, 16  ;;  %v1326_v38 = vrot.slane %v1312_v27, %v5763_v23  ;;  %v1608_v42 = vshrl.u32 %v1483_v20, 16 }
 0x4bb   : > { %v1493_v36 = vcombine.low %v1164_v55, %v1188_v31  ;;  %v5799_v37 = vpop.permute.xlu1 %1181  ;;  %v1335_v39 = vrot.slane %v1327_v29, %v5763_v23  ;;  %v1342_v40 = vrot.slane %v1328_v30, %v5763_v23  ;;  %v1343_v41 = vcombine.low %v1287_v7, %v1319_v28 }
 0x4bc   : > { %v1616_v43 = vshrl.u32 %v1484_v22, 16  ;;  %v1344_v44 = vcombine.high %v1287_v7, %v1319_v28  ;;  %v1485_v45 = vcombine.low %v5728_v56, %v5790_v12  ;;  %v1345_v46 = vcombine.low %v1294_v13, %v1326_v38 }
 0x4bd   : > { %v1346_v47 = vcombine.high %v1294_v13, %v1326_v38  ;;  %v1347_v48 = vcombine.low %v1303_v18, %v1335_v39  ;;  %v1500_v49 = vrot.slane %v1493_v36, %v5756_v9  ;;  %v1348_v50 = vcombine.high %v1303_v18, %v1335_v39 }
 0x4be   : > { %v1349_v51 = vcombine.low %v1310_v19, %v1342_v40  ;;  %v1350_v52 = vcombine.high %v1310_v19, %v1342_v40  ;;  %v1559_v53 = vshrl.u32 %v1343_v41, 16  ;;  %v5807_v55 = vpack.i.b16 %v1477_v5, %v1343_v41  ;;  %v1200_v0 = vpop.permute.xlu0 %1199 }
 0x4bf   : > { %v1194_v54 = vpop.permute.xlu1 %1193  ;;  %v1567_v57 = vshrl.u32 %v1344_v44, 16  ;;  %v5809_v58 = vpack.i.b16 %v1479_v8, %v1345_v46  ;;  %v1575_v59 = vshrl.u32 %v1345_v46, 16  ;;  %v5813_v62 = vpack.i.b16 %v1478_v6, %v1344_v44 }
 0x4c0   : > { %v5811_v60 = vpack.i.b16 %v1560_v24, %v1559_v53  ;;  %v5815_v56 = vpack.i.b16 %v1480_v14, %v1346_v47  ;;  %v1583_v63 = vshrl.u32 %v1346_v47, 16  ;;  %v5821_v3 = vpack.i.b16 %v1481_v15, %v1347_v48 }
 0x4c1   : > { %v5817_v1 = vpack.i.b16 %v1568_v25, %v1567_v57  ;;  %v5819_v2 = vpack.i.b16 %v1576_v26, %v1575_v59  ;;  %v1591_v4 = vshrl.u32 %v1347_v48, 16  ;;  %v5823_v5 = vpack.i.b16 %v1482_v16, %v1348_v50 }
 0x4c2   : > { %v1599_v7 = vshrl.u32 %v1348_v50, 16  ;;  %v5825_v8 = vpack.i.b16 %v1483_v20, %v1349_v51  ;;  %v1607_v10 = vshrl.u32 %v1349_v51, 16  ;;  %v5827_v6 = vpack.i.b16 %v1584_v33, %v1583_v63  ;;  %v1210_v27 = vpop.permute.xlu0 %1209 }
 0x4c3   : > { %v1205_v11 = vpop.permute.xlu1 %1204  ;;  %v5829_v12 = vpack.i.b16 %v1484_v22, %v1350_v52  ;;  %v1615_v13 = vshrl.u32 %v1350_v52, 16  ;;  %v1623_v14 = vcombine.low %v5807_v55, %v5809_v58  ;;  %v5833_v18 = vpack.i.b16 %v1592_v34, %v1591_v4 }
 0x4c4   : > { %v5835_v15 = vpack.i.b16 %v1600_v35, %v1599_v7  ;;  %v5837_v19 = vpack.i.b16 %v1608_v42, %v1607_v10  ;;  %v1639_v16 = vcombine.low %v5813_v62, %v5815_v56  ;;  %v1655_v21 = vcombine.low %v5821_v3, %v5825_v8 }
 0x4c5   : > { %v5841_v20 = vpack.i.b16 %v1616_v43, %v1615_v13  ;;  %v1624_v22 = vcombine.high %v5807_v55, %v5809_v58  ;;  %v1671_v24 = vcombine.low %v5823_v5, %v5829_v12  ;;  %v1492_v25 = vrot.slane %v1485_v45, %v5756_v9 }
 0x4c6   : > { %v1520_v26 = vcombine.low %v5754_v61, %v5799_v37  ;;  %v1631_v29 = vrot.slane %v1623_v14, %v5756_v9  ;;  %v1647_v30 = vrot.slane %v1639_v16, %v5756_v9  ;;  %v1741_v31 = vcombine.low %v5811_v60, %v5819_v2 }
 0x4c7   : > { %v1215_v28 = vpop.permute.xlu1 %1214  ;;  %v1757_v33 = vcombine.low %v5817_v1, %v5827_v6  ;;  %v1640_v34 = vcombine.high %v5813_v62, %v5815_v56  ;;  %v1773_v35 = vcombine.low %v5833_v18, %v5837_v19  ;;  %v1789_v61 = vcombine.low %v5835_v15, %v5841_v20 }
 0x4c8   : > { %v1503_v36 = vcombine.low %v1492_v25, %v1500_v49  ;;  %v1528_v37 = vcombine.low %v5793_v17, %v1194_v54  ;;  %v1511_v38 = vcombine.low %v1200_v0, %v1210_v27  ;;  %v1546_v39 = vcombine.low %v1205_v11, %v1215_v28 }
 0x4c9   : > { %v1663_v40 = vrot.slane %v1655_v21, %v5756_v9  ;;  %v1656_v41 = vcombine.high %v5821_v3, %v5825_v8  ;;  %v1527_v42 = vrot.slane %v1520_v26, %v5756_v9  ;;  %v1679_v43 = vrot.slane %v1671_v24, %v5756_v9 }
 0x4ca   : > { %v1749_v44 = vrot.slane %v1741_v31, %v5756_v9  ;;  %v1535_v45 = vrot.slane %v1528_v37, %v5756_v9  ;;  %v1518_v46 = vrot.slane %v1511_v38, %v5763_v23  ;;  %v1688_v47 = vcombine.high %v1631_v29, %v1647_v30 }
 0x4cb   : > { %v1765_v17 = vrot.slane %v1757_v33, %v5756_v9  ;;  %v1510_v48 = vrot.slane %v1503_v36, %v5763_v23  ;;  %v1712_v49 = vcombine.high %v1663_v40, %v1679_v43  ;;  %v1781_v50 = vrot.slane %v1773_v35, %v5756_v9 }
 0x4cc   : > { %v1797_v51 = vrot.slane %v1789_v61, %v5756_v9  ;;  %v1538_v52 = vcombine.low %v1527_v42, %v1535_v45  ;;  %v1553_v53 = vrot.slane %v1546_v39, %v5763_v23  ;;  %v1687_v57 = vcombine.low %v1631_v29, %v1647_v30 }
 0x4cd   : > { %v1806_v54 = vcombine.high %v1749_v44, %v1765_v17  ;;  %v1726_v59 = vrot.slane %v1712_v49, %v5763_v23  ;;  %v1711_v0 = vcombine.low %v1663_v40, %v1679_v43  ;;  %v1805_v3 = vcombine.low %v1749_v44, %v1765_v17 }
 0x4ce   : > { %v1830_v63 = vcombine.high %v1781_v50, %v1797_v51  ;;  %v1519_v4 = vcombine.low %v1510_v48, %v1518_v46  ;;  %v1545_v7 = vrot.slane %v1538_v52, %v5763_v23  ;;  %v1702_v8 = vrot.slane %v1688_v47, %v5763_v23 }
 0x4cf   : > { %v1829_v10 = vcombine.low %v1781_v50, %v1797_v51  ;;  %v1820_v11 = vrot.slane %v1806_v54, %v5763_v23  ;;  %v1695_v14 = vrot.slane %v1687_v57, %v5763_v23  ;;  %v1719_v16 = vrot.slane %v1711_v0, %v5763_v23 }
 0x4d0   : > { %v1844_v13 = vrot.slane %v1830_v63, %v5763_v23  ;;  %v1554_v21 = vcombine.low %v1545_v7, %v1553_v53  ;;  %v1737_v24 = vcombine.low %v1702_v8, %v1726_v59  ;;  %v1813_v25 = vrot.slane %v1805_v3, %v5763_v23 }
 0x4d1   : > { %v1837_v26 = vrot.slane %v1829_v10, %v5763_v23  ;;  %v5887_v28 = vcombine.low %v1695_v14, %v1719_v16  ;;  %v5889_v29 = vcombine.high %v1702_v8, %v1726_v59  ;;  %v5895_v35 = vcombine.high %v1695_v14, %v1719_v16 }
 0x4d2   : > { %v1855_v27 = vcombine.low %v1820_v11, %v1844_v13  ;;  %v5891_v30 = vcombine.high %v1820_v11, %v1844_v13  ;;  %v1621_v31 = vpack.i.b16 %v1554_v21, %v1519_v4  ;;  %v1672_v36 = vcombine.high %v5823_v5, %v5829_v12 }
 0x4d3   : > { %v5893_v33 = vcombine.low %v1813_v25, %v1837_v26  ;;  %v5897_v61 = vcombine.high %v1813_v25, %v1837_v26  ;;  %v1742_v37 = vcombine.high %v5811_v60, %v5819_v2  ;;  %v1758_v40 = vcombine.high %v5817_v1, %v5827_v6 }
 0x4d4   : > { %v1906_v38 = vpack.i.b16 %v1855_v27, %v1737_v24  ;;  %v1912_v39 = vpack.i.b16 %v5891_v30, %v5889_v29  ;;  %v1865_v42 = vrot.slane %v1621_v31, %v5756_v9  ;;  %v1638_v1 = vrot.slane %v1624_v22, %v5756_v9 }
 0x4d5   : > { %v1894_v43 = vpack.i.b16 %v5893_v33, %v5887_v28  ;;  %v1900_v44 = vpack.i.b16 %v5897_v61, %v5895_v35  ;;  %v1654_v6 = vrot.slane %v1640_v34, %v5756_v9  ;;  %v1670_v12 = vrot.slane %v1656_v41, %v5756_v9 }
 0x4d6   : > { %4032 = vmatprep.subr.msk.bf16.mxu0 %vm1958_vm4, %v1906_v38  ;;  %4036 = vmatprep.subr.msk.bf16.mxu1 %vm1958_vm4, %v1912_v39  ;;  %v1966_v60 = vsel %vm1958_vm4, %v1906_v38, 0  ;;  %v2086_v2 = vsel %vm1958_vm4, %v1912_v39, 0  ;;  %v1866_v5 = vcombine.high %v1865_v42, %v4952_v32  ;;  %v1686_v45 = vrot.slane %v1672_v36, %v5756_v9 }
 0x4d7   : > { %3936 = vmatprep.mubr.msk.bf16.mxu0 %vm1958_vm4, %v1894_v43  ;;  %3952 = vmatprep.mubr.msk.bf16.mxu1 %vm1958_vm4, %v1900_v44  ;;  %v1756_v46 = vrot.slane %v1742_v37, %v5756_v9  ;;  %v1772_v17 = vrot.slane %v1758_v40, %v5756_v9  ;;  %v1774_v55 = vcombine.high %v5833_v18, %v5837_v19  ;;  %v1908_v56 = vshrl.u32 %v1855_v27, 16 }
 0x4d8   : > { %3933 = vmatpush3.bf16.xpose.msra.mxu0 %v1966_v60  ;;  %3949 = vmatpush3.bf16.xpose.msra.mxu1 %v2086_v2  ;;  %v1880_v47 = vrot.slane %v1866_v5, %v5763_v23  ;;  %v1727_v48 = vcombine.low %v1670_v12, %v1686_v45  ;;  %v1790_v58 = vcombine.high %v5835_v15, %v5841_v20  ;;  %v1907_v15 = vshrl.u32 %v1737_v24, 16 }
 0x4d9   : > { %v1703_v34 = vcombine.low %v1638_v1, %v1654_v6  ;;  %v1881_v41 = vcombine.high %v1621_v31, %v4952_v32  ;;  %v1788_v49 = vrot.slane %v1774_v55, %v5756_v9  ;;  %v1821_v51 = vcombine.low %v1756_v46, %v1772_v17 }
 0x4da   : > { %v1943_v62 = vpack.i.b16 %v4952_v32, %v1880_v47  ;;  %v5938_v22 = vcombine.high %v1880_v47, %v4952_v32  ;;  %v1804_v50 = vrot.slane %v1790_v58, %v5756_v9  ;;  %v5944_v52 = vrot.slane %v1865_v42, %v5763_v23 }
 0x4db   : > { %v1734_v20 = vrot.slane %v1727_v48, %v5763_v23  ;;  %v1909_v54 = vpack.i.b16 %v1908_v56, %v1907_v15  ;;  %v1710_v59 = vrot.slane %v1703_v34, %v5763_v23  ;;  %v1828_v63 = vrot.slane %v1821_v51, %v5763_v23 }
 0x4dc   : > { %4033 = vmatprep.subr.msk.bf16.mxu0 %vm1958_vm4, %v1943_v62  ;;  %v1969_v18 = vsel %vm1958_vm4, %v1943_v62, 0  ;;  %v1947_v19 = vpack.i.b16 %v4952_v32, %v5938_v22  ;;  %v1845_v53 = vcombine.low %v1788_v49, %v1804_v50  ;;  %v5957_v3 = vrot.slane %v1881_v41, %v5763_v23 }
 0x4dd   : > { %v5962_v4 = vcombine.high %v5944_v52, %v4952_v32  ;;  %v1739_v7 = vcombine.low %v1710_v59, %v1734_v20  ;;  %v1896_v10 = vshrl.u32 %v5893_v33, 16  ;;  %v1944_v11 = vshrl.u32 %v1880_v47, 16 }
 0x4de   : > { %4037 = vmatprep.subr.msk.bf16.mxu1 %vm1958_vm4, %v1947_v19  ;;  %v2089_v57 = vsel %vm1958_vm4, %v1947_v19, 0  ;;  %v1852_v0 = vrot.slane %v1845_v53, %v5763_v23  ;;  %v1895_v14 = vshrl.u32 %v5887_v28, 16  ;;  %v1951_v16 = vpack.i.b16 %v4952_v32, %v5957_v3 }
 0x4df   : > { %v1934_v21 = vpack.i.b16 %v4952_v32, %v5944_v52  ;;  %v1939_v24 = vpack.i.b16 %v4952_v32, %v5962_v4  ;;  %v2357_v25 = vsel %vm2355_vm5, 65535, %v4952_v32  ;;  %v1891_v27 = vcombine.high %v5957_v3, %v4952_v32 }
 0x4e0   : > { %3935 = vmatpush3.bf16.xpose.msra.mxu0 %v1969_v18  ;;  %3951 = vmatpush3.bf16.xpose.msra.mxu1 %v2089_v57  ;;  %v1857_v8 = vcombine.low %v1828_v63, %v1852_v0  ;;  %v1897_v26 = vpack.i.b16 %v1896_v10, %v1895_v14  ;;  %v2026_v28 = vsel %vm1958_vm4, %v1909_v54, 0  ;;  %v1945_v31 = vpack.i.b16 %v4952_v32, %v1944_v11 }
 0x4e1   : > { %4034 = vmatprep.subr.msk.bf16.mxu0 %vm1958_vm4, %v1909_v54  ;;  %v2359_v33 = vand.u32 %v2357_v25, %v1951_v16  ;;  %v1858_v36 = vcombine.high %v1828_v63, %v1852_v0  ;;  %v1955_v37 = vpack.i.b16 %v4952_v32, %v1891_v27  ;;  %v1956_v38 = vshrl.u32 %v1891_v27, 16 }
 0x4e2   : > { %v1918_v13 = vpack.i.b16 %v1857_v8, %v1739_v7  ;;  %v1740_v39 = vcombine.high %v1710_v59, %v1734_v20  ;;  %v1914_v43 = vshrl.u32 %v5891_v30, 16  ;;  %v1913_v2 = vshrl.u32 %v5889_v29, 16 }
 0x4e3   : > { %v5982_v40 = vand.u32 %v2357_v25, %v1955_v37  ;;  %v1957_v42 = vpack.i.b16 %v4952_v32, %v1956_v38  ;;  %v2029_v5 = vsel %vm1958_vm4, %v1945_v31, 0  ;;  %v1935_v6 = vshrl.u32 %v5944_v52, 16 }
 0x4e4   : > { %3964 = vmatprep.subr.bf16.mxu1 %v1918_v13  ;;  %v5986_v44 = vpack.i.b16 %v1858_v36, %v1740_v39  ;;  %v1915_v1 = vpack.i.b16 %v1914_v43, %v1913_v2  ;;  %v1902_v12 = vshrl.u32 %v5897_v61, 16  ;;  %v1948_v30 = vshrl.u32 %v5938_v22, 16 }
 0x4e5   : > { %v5988_v60 = vand.u32 %v2357_v25, %v1957_v42  ;;  %v1901_v45 = vshrl.u32 %v5895_v35, 16  ;;  %v1937_v46 = vpack.i.b16 %v4952_v32, %v1935_v6  ;;  %v1921_v48 = vshrl.u32 %v1857_v8, 16 }
 0x4e6   : > { %v2146_v47 = vsel %vm1958_vm4, %v1915_v1, 0  ;;  %v1949_v17 = vpack.i.b16 %v4952_v32, %v1948_v30  ;;  %v1920_v61 = vshrl.u32 %v1739_v7, 16  ;;  %v1952_v35 = vshrl.u32 %v5957_v3, 16 }
 0x4e7   : > { %3937 = vmatmul.mubr.msk.bf16.vlgmr.msra.gmra.mrb[4].mxu0 %vm1958_vm4, %v1934_v21  ;;  %3953 = vmatmul.mubr.msk.bf16.vlgmr.msra.gmra.mrb[0].mxu1 %vm1958_vm4, %v1939_v24  ;;  %v1903_v29 = vpack.i.b16 %v1902_v12, %v1901_v45  ;;  %v1940_v62 = vshrl.u32 %v5962_v4, 16  ;;  %v1929_v41 = vshrl.u32 %v1858_v36, 16  ;;  %v1928_v49 = vshrl.u32 %v1740_v39, 16 }
 0x4e8   : > { %3941 = vmatpush3.bf16.xpose.msra.mxu0 %v2026_v28  ;;  %3944 = vmatprep.mubr.msk.bf16.mxu0 %vm1958_vm4, %v1897_v26  ;;  %v2149_v55 = vsel %vm1958_vm4, %v1949_v17, 0  ;;  %v1922_v58 = vpack.i.b16 %v1921_v48, %v1920_v61  ;;  %v1953_v56 = vpack.i.b16 %v4952_v32, %v1952_v35 }
 0x4e9   : > { %4035 = vmatprep.subr.msk.bf16.mxu0 %vm1958_vm4, %v1945_v31  ;;  %3965 = vmatpush3.bf16.msra.mxu1 %v1918_v13  ;;  %v1941_v22 = vpack.i.b16 %v4952_v32, %v1940_v62  ;;  %v6010_v50 = vpack.i.b16 %v1929_v41, %v1928_v49 }
 0x4ea   : > { %3966 = vmatprep.subr.bf16.mxu1 %v2359_v33  ;;  %v2416_v34 = vand.u32 %v2357_v25, %v1953_v56 }
 0x4ed   : > { %3967 = vmatpush3.bf16.msra.mxu1 %v2359_v33 }
 0x4ee   : > { %3980 = vmatprep.subr.bf16.mxu1 %v5986_v44 }
 0x4f0   : > { %3943 = vmatpush3.bf16.xpose.msra.mxu0 %v2029_v5 }
 0x4f1   : > { %4038 = vmatprep.subr.msk.bf16.mxu0 %vm1958_vm4, %v1915_v1 }
 0x4f7   : > { %3945 = vmatmul.mubr.msk.bf16.vlgmr.msra.gmra.mrb[8].mxu0 %vm1958_vm4, %v1937_v46 }
 0x4f8   : > { %3957 = vmatpush3.bf16.xpose.msra.mxu0 %v2146_v47  ;;  %3960 = vmatprep.mubr.msk.bf16.mxu0 %vm1958_vm4, %v1903_v29 }
 0x4f9   : > { %4039 = vmatprep.subr.msk.bf16.mxu0 %vm1958_vm4, %v1949_v17 }
 0x500   : > { %3959 = vmatpush3.bf16.xpose.msra.mxu0 %v2149_v55 }
 0x501   : > { %3972 = vmatprep.subr.bf16.mxu0 %v1922_v58 }
 0x507   : > { %3961 = vmatmul.mubr.msk.bf16.vlgmr.msra.gmra.mrb[12].mxu0 %vm1958_vm4, %v1941_v22 }
 0x508   : > { %3973 = vmatpush3.bf16.msra.mxu0 %v1922_v58 }
 0x509   : > { %3974 = vmatprep.subr.bf16.mxu0 %v2416_v34 }
 0x50c   : > { %3975 = vmatpush3.bf16.msra.mxu0 %v2416_v34 }
 0x50d   : > { %3988 = vmatprep.subr.bf16.mxu0 %v6010_v50 }
 0x5ba   : > { %v3938_v51 = vpop.f32.mrb[4].mxu0  ;;  %v6013_v52 = vpop.f32.mrb[0].mxu1 }
 0x5bb   : > { %v2005_v18 = vpop.f32.mrb[5].mxu0  ;;  %v2207_v15 = vsel %vm2206_vm6, %v3938_v51, -inf  ;;  %v6016_v19 = vpop.f32.mrb[1].mxu1  ;;  %v2225_v28 = vsel %vm2206_vm6, %v6013_v52, -inf }
 0x5bc   : > { %2208 = vmax.xlane.f32.xlu0 %v2207_v15  ;;  %v3939_v20 = vpop.f32.mrb[6].mxu0  ;;  %v3955_v53 = vpop.f32.mrb[2].mxu1  ;;  %v2200_v63 = vsel %vm2199_vm7, %v2005_v18, -inf  ;;  %v2219_v14 = vsel %vm2199_vm7, %v6016_v19, -inf }
 0x5bd   : > { %v2008_v54 = vpop.f32.mrb[7].mxu0  ;;  %v6018_v57 = vpop.f32.mrb[3].mxu1 }
 0x5be   : > { %v2203_v59 = vsel %vm2199_vm7, %v2008_v54, -inf  ;;  %v2222_v11 = vsel %vm2199_vm7, %v6018_v57, -inf }
 0x5bf   : > { %2204 = vmax.xlane.f32.xlu1 %v2203_v59 }
 0x5c0   : > { %2201 = vmax.xlane.f32.xlu0 %v2200_v63 }
 0x5ca   : > { %v3946_v0 = vpop.f32.mrb[8].mxu0 }
 0x5cb   : > { %v2065_v3 = vpop.f32.mrb[9].mxu0  ;;  %v2216_v4 = vsel %vm2206_vm6, %v3946_v0, -inf }
 0x5cc   : > { %2217 = vmax.xlane.f32.xlu1 %v2216_v4  ;;  %v3947_v7 = vpop.f32.mrb[10].mxu0  ;;  %v2210_v8 = vsel %vm2199_vm7, %v2065_v3, -inf }
 0x5cd   : > { %2211 = vmax.xlane.f32.xlu0 %v2210_v8  ;;  %v2068_v10 = vpop.f32.mrb[11].mxu0 }
 0x5ce   : > { %v2213_v13 = vsel %vm2199_vm7, %v2068_v10, -inf }
 0x5d0   : > { %2223 = vmax.xlane.f32.xlu1 %v2222_v11 }
 0x5d1   : > { %2214 = vmax.xlane.f32.xlu0 %v2213_v13 }
 0x5d5   : > { %2220 = vmax.xlane.f32.xlu0 %v2219_v14 }
 0x5da   : > { %v6029_v16 = vpop.f32.mrb[12].mxu0 }
 0x5db   : > { %v2185_v21 = vpop.f32.mrb[13].mxu0  ;;  %v2234_v31 = vsel %vm2206_vm6, %v6029_v16, -inf }
 0x5dc   : > { %v3963_v24 = vpop.f32.mrb[14].mxu0  ;;  %v2228_v25 = vsel %vm2199_vm7, %v2185_v21, -inf }
 0x5dd   : > { %v6032_v26 = vpop.f32.mrb[15].mxu0  ;;  %2229 = vmax.xlane.f32.xlu0 %v2228_v25 }
 0x5de   : > { %v2231_v27 = vsel %vm2199_vm7, %v6032_v26, -inf }
 0x5df   : > { %2232 = vmax.xlane.f32.xlu1 %v2231_v27 }
 0x5e1   : > { %2226 = vmax.xlane.f32.xlu0 %v2225_v28 }
 0x5e3   : > { %2235 = vmax.xlane.f32.xlu1 %v2234_v31 }
 0x649   : > { %v2209_v33 = vpop.xlane.xlu0 %2208 }
 0x64a   : > { %v2239_v36 = vsub.f32 %v3938_v51, %v2209_v33 }
 0x64c   : > { %v2253_v37 = vmul.f32 1.442695, %v2239_v36  ;;  %v2205_v38 = vpop.xlane.xlu1 %2204 }
 0x64d   : > { %v2238_v39 = vsub.f32 %v2008_v54, %v2205_v38  ;;  %v2202_v42 = vpop.xlane.xlu0 %2201 }
 0x64e   : > { %4265 = vpow2.f32 %v2253_v37  ;;  %v2237_v43 = vsub.f32 %v2005_v18, %v2202_v42 }
 0x64f   : > { %v2251_v2 = vmul.f32 1.442695, %v2238_v39 }
 0x650   : > { %v2249_v5 = vmul.f32 1.442695, %v2237_v43 }
 0x651   : > { %4267 = vpow2.f32 %v2251_v2 }
 0x652   : > { %4269 = vpow2.f32 %v2249_v5 }
 0x658   : > { %v6040_v1 = vpop.eup %4265 }
 0x659   : > { %v2218_v6 = vpop.xlane.xlu1 %2217  ;;  %v2279_v12 = vsel %vm2206_vm6, %v6040_v1, 0.0 }
 0x65a   : > { %v2242_v30 = vsub.f32 %v3946_v0, %v2218_v6  ;;  %v2212_v45 = vpop.xlane.xlu0 %2211  ;;  %2280 = vadd.xlane.f32.xlu0 %v2279_v12 }
 0x65b   : > { %v6044_v46 = vpop.eup %4267  ;;  %v2240_v29 = vsub.f32 %v2065_v3, %v2212_v45 }
 0x65c   : > { %v6046_v47 = vpop.eup %4269  ;;  %v2259_v17 = vmul.f32 1.442695, %v2242_v30  ;;  %v2276_v48 = vsel %vm2199_vm7, %v6044_v46, 0.0 }
 0x65d   : > { %v2255_v61 = vmul.f32 1.442695, %v2240_v29  ;;  %2277 = vadd.xlane.f32.xlu1 %v2276_v48  ;;  %v2224_v55 = vpop.xlane.xlu1 %2223  ;;  %v2273_v58 = vsel %vm2199_vm7, %v6046_v47, 0.0 }
 0x65e   : > { %4271 = vpow2.f32 %v2259_v17  ;;  %v2244_v35 = vsub.f32 %v6018_v57, %v2224_v55  ;;  %v2215_v62 = vpop.xlane.xlu0 %2214  ;;  %2274 = vadd.xlane.f32.xlu0 %v2273_v58 }
 0x65f   : > { %4273 = vpow2.f32 %v2255_v61  ;;  %v2241_v56 = vsub.f32 %v2068_v10, %v2215_v62 }
 0x660   : > { %v2263_v22 = vmul.f32 1.442695, %v2244_v35 }
 0x661   : > { %v2257_v34 = vmul.f32 1.442695, %v2241_v56 }
 0x662   : > { %v2221_v41 = vpop.xlane.xlu0 %2220 }
 0x663   : > { %4275 = vpow2.f32 %v2257_v34  ;;  %v2243_v49 = vsub.f32 %v6016_v19, %v2221_v41 }
 0x664   : > { %4277 = vpow2.f32 %v2263_v22 }
 0x665   : > { %v2261_v51 = vmul.f32 1.442695, %v2243_v49 }
 0x667   : > { %4279 = vpow2.f32 %v2261_v51 }
 0x668   : > { %v6054_v18 = vpop.eup %4271 }
 0x669   : > { %v6056_v15 = vpop.eup %4273  ;;  %v2288_v20 = vsel %vm2206_vm6, %v6054_v18, 0.0 }
 0x66a   : > { %v2230_v53 = vpop.xlane.xlu0 %2229  ;;  %2289 = vadd.xlane.f32.xlu1 %v2288_v20  ;;  %v2282_v54 = vsel %vm2199_vm7, %v6056_v15, 0.0 }
 0x66b   : > { %v2246_v57 = vsub.f32 %v2185_v21, %v2230_v53  ;;  %2283 = vadd.xlane.f32.xlu0 %v2282_v54 }
 0x66c   : > { %v2233_v59 = vpop.xlane.xlu1 %2232 }
 0x66d   : > { %v6062_v63 = vpop.eup %4275  ;;  %v2267_v19 = vmul.f32 1.442695, %v2246_v57  ;;  %v2247_v0 = vsub.f32 %v6032_v26, %v2233_v59 }
 0x66e   : > { %v2227_v3 = vpop.xlane.xlu0 %2226  ;;  %v2285_v4 = vsel %vm2199_vm7, %v6062_v63, 0.0  ;;  %v6067_v7 = vpop.eup %4277 }
 0x66f   : > { %4281 = vpow2.f32 %v2267_v19  ;;  %v2269_v8 = vmul.f32 1.442695, %v2247_v0  ;;  %v2245_v10 = vsub.f32 %v6013_v52, %v2227_v3  ;;  %2286 = vadd.xlane.f32.xlu1 %v2285_v4  ;;  %v2294_v25 = vsel %vm2199_vm7, %v6067_v7, 0.0 }
 0x670   : > { %v2236_v11 = vpop.xlane.xlu1 %2235 }
 0x671   : > { %v6070_v13 = vpop.eup %4279  ;;  %4283 = vpow2.f32 %v2269_v8  ;;  %v2265_v14 = vmul.f32 1.442695, %v2245_v10  ;;  %v2248_v21 = vsub.f32 %v6029_v16, %v2236_v11 }
 0x672   : > { %v2291_v24 = vsel %vm2199_vm7, %v6070_v13, 0.0 }
 0x673   : > { %4285 = vpow2.f32 %v2265_v14  ;;  %v2271_v26 = vmul.f32 1.442695, %v2248_v21  ;;  %2292 = vadd.xlane.f32.xlu0 %v2291_v24  ;;  %2295 = vadd.xlane.f32.xlu1 %v2294_v25 }
 0x675   : > { %4287 = vpow2.f32 %v2271_v26 }
 0x679   : > { %v6077_v52 = vpop.eup %4281 }
 0x67a   : > { %v2300_v27 = vsel %vm2199_vm7, %v6077_v52, 0.0 }
 0x67b   : > { %v6081_v28 = vpop.eup %4283  ;;  %2301 = vadd.xlane.f32.xlu0 %v2300_v27 }
 0x67c   : > { %v2303_v16 = vsel %vm2199_vm7, %v6081_v28, 0.0 }
 0x67d   : > { %v6085_v31 = vpop.eup %4285  ;;  %2304 = vadd.xlane.f32.xlu1 %v2303_v16 }
 0x67e   : > { %v2297_v33 = vsel %vm2206_vm6, %v6085_v31, 0.0 }
 0x67f   : > { %v6089_v36 = vpop.eup %4287  ;;  %2298 = vadd.xlane.f32.xlu0 %v2297_v33 }
 0x680   : > { %v2306_v37 = vsel %vm2206_vm6, %v6089_v36, 0.0 }
 0x681   : > { %2307 = vadd.xlane.f32.xlu1 %v2306_v37 }
 0x6e7   : > { %v2281_v38 = vpop.xlane.xlu0 %2280 }
 0x6e8   : > { %4289 = vrcp.f32 %v2281_v38 }
 0x6ea   : > { %v2278_v39 = vpop.xlane.xlu1 %2277 }
 0x6eb   : > { %4291 = vrcp.f32 %v2278_v39  ;;  %v2275_v42 = vpop.xlane.xlu0 %2274 }
 0x6ec   : > { %4293 = vrcp.f32 %v2275_v42 }
 0x6f2   : > { %v4290_v43 = vpop.eup %4289 }
 0x6f3   : > { %v2323_v6 = vmul.f32 %v4290_v43, %v6040_v1 }
 0x6f5   : > { %v4292_v2 = vpop.eup %4291  ;;  %v2342_v48 = vpack.c.bf16 %v2323_v6, %v2323_v6 }
 0x6f6   : > { %v4294_v5 = vpop.eup %4293  ;;  %v2322_v12 = vmul.f32 %v4292_v2, %v6044_v46 }
 0x6f7   : > { %v2290_v30 = vpop.xlane.xlu1 %2289  ;;  %v2321_v45 = vmul.f32 %v4294_v5, %v6046_v47 }
 0x6f8   : > { %v2284_v29 = vpop.xlane.xlu0 %2283 }
 0x6f9   : > { %4295 = vrcp.f32 %v2284_v29  ;;  %v2341_v17 = vpack.c.bf16 %v2322_v12, %v2321_v45  ;;  %v2334_v35 = vsel %vm2333_vm8, %v2321_v45, 0.0 }
 0x6fa   : > { %4297 = vrcp.f32 %v2290_v30 }
 0x6fb   : > { %3968 = vmatprep.mubr.msk.bf16.mxu1 %vm2199_vm7, %v2341_v17 }
 0x6fc   : > { %3969 = vmatmul.mubr.msk.bf16.vlgmr.msra.gmra.mrb[4].mxu1 %vm2199_vm7, %v2342_v48  ;;  %v2287_v61 = vpop.xlane.xlu1 %2286 }
 0x6fd   : > { %3981 = vmatpush3.bf16.msra.mxu1 %v5986_v44  ;;  %4299 = vrcp.f32 %v2287_v61 }
 0x6fe   : > { %3982 = vmatprep.subr.bf16.mxu1 %v5982_v40 }
 0x700   : > { %v2293_v1 = vpop.xlane.xlu0 %2292  ;;  %v2296_v46 = vpop.xlane.xlu1 %2295 }
 0x701   : > { %4301 = vrcp.f32 %v2293_v1  ;;  %3983 = vmatpush3.bf16.msra.mxu1 %v5982_v40 }
 0x702   : > { %4303 = vrcp.f32 %v2296_v46 }
 0x703   : > { %v4296_v47 = vpop.eup %4295 }
 0x704   : > { %v4298_v55 = vpop.eup %4297  ;;  %v2324_v58 = vmul.f32 %v4296_v47, %v6056_v15 }
 0x705   : > { %v2326_v44 = vmul.f32 %v4298_v55, %v6054_v18 }
 0x706   : > { %v2335_v62 = vsel %vm2333_vm8, %v2324_v58, 0.0 }
 0x707   : > { %v4300_v56 = vpop.eup %4299  ;;  %v2336_v22 = vadd.f32 %v2335_v62, %v2334_v35  ;;  %v2344_v20 = vpack.c.bf16 %v2326_v44, %v2326_v44 }
 0x708   : > { %v2302_v34 = vpop.xlane.xlu0 %2301  ;;  %v2325_v41 = vmul.f32 %v4300_v56, %v6062_v63 }
 0x709   : > { %4305 = vrcp.f32 %v2302_v34 }
 0x70a   : > { %v2305_v49 = vpop.xlane.xlu1 %2304  ;;  %v2343_v40 = vpack.c.bf16 %v2325_v41, %v2324_v58 }
 0x70b   : > { %v4302_v51 = vpop.eup %4301  ;;  %4307 = vrcp.f32 %v2305_v49 }
 0x70c   : > { %v4304_v53 = vpop.eup %4303  ;;  %v2299_v54 = vpop.xlane.xlu0 %2298  ;;  %3976 = vmatprep.mubr.msk.bf16.mxu0 %vm2199_vm7, %v2343_v40  ;;  %v2327_v15 = vmul.f32 %v4302_v51, %v6070_v13 }
 0x70d   : > { %4309 = vrcp.f32 %v2299_v54  ;;  %3977 = vmatmul.mubr.msk.bf16.vlgmr.msra.gmra.mrb[16].mxu0 %vm2199_vm7, %v2344_v20  ;;  %v2328_v18 = vmul.f32 %v4304_v53, %v6067_v7 }
 0x70e   : > { %3989 = vmatpush3.bf16.msra.mxu0 %v6010_v50  ;;  %v2308_v57 = vpop.xlane.xlu1 %2307  ;;  %v2337_v59 = vsel %vm2333_vm8, %v2327_v15, 0.0 }
 0x70f   : > { %3990 = vmatprep.subr.bf16.mxu0 %v5988_v60  ;;  %4311 = vrcp.f32 %v2308_v57  ;;  %v2345_v63 = vpack.c.bf16 %v2328_v18, %v2327_v15  ;;  %v2338_v19 = vadd.f32 %v2337_v59, %v2336_v22 }
 0x711   : > { %3984 = vmatprep.mubr.msk.bf16.mxu1 %vm2199_vm7, %v2345_v63 }
 0x712   : > { %3991 = vmatpush3.bf16.msra.mxu0 %v5988_v60 }
 0x713   : > { %v4306_v0 = vpop.eup %4305 }
 0x714   : > { %v2330_v3 = vmul.f32 %v4306_v0, %v6077_v52 }
 0x715   : > { %v4308_v4 = vpop.eup %4307 }
 0x716   : > { %v2331_v7 = vmul.f32 %v4308_v4, %v6081_v28  ;;  %v2339_v50 = vsel %vm2333_vm8, %v2330_v3, 0.0 }
 0x717   : > { %v4310_v8 = vpop.eup %4309  ;;  %v6118_v10 = vadd.f32 %v2339_v50, %v2338_v19 }
 0x718   : > { %v2329_v11 = vmul.f32 %v4310_v8, %v6085_v31  ;;  %v2347_v13 = vpack.c.bf16 %v2331_v7, %v2330_v3 }
 0x719   : > { %v4312_v14 = vpop.eup %4311 }
 0x71a   : > { %v2332_v21 = vmul.f32 %v4312_v14, %v6089_v36  ;;  %3992 = vmatprep.mubr.msk.bf16.mxu0 %vm2199_vm7, %v2347_v13  ;;  %v2346_v60 = vpack.c.bf16 %v2329_v11, %v2329_v11 }
 0x71c   : > { %3985 = vmatmul.mubr.msk.bf16.vlgmr.msra.gmra.mrb[8].mxu1 %vm2199_vm7, %v2346_v60  ;;  %v2348_v24 = vpack.c.bf16 %v2332_v21, %v2332_v21 }
 0x71e   : > { %3993 = vmatmul.mubr.msk.bf16.vlgmr.msra.gmra.mrb[20].mxu0 %vm2199_vm7, %v2348_v24 }
 0x7cf   : > { %v3970_v25 = vpop.f32.mrb[4].mxu1 }
 0x7d0   : > { %v2395_v26 = vpop.f32.mrb[5].mxu1 }
 0x7d1   : > { %v3971_v52 = vpop.f32.mrb[6].mxu1 }
 0x7d2   : > { %v2398_v27 = vpop.f32.mrb[7].mxu1 }
 0x7d3   : > { %v2580_v28 = vpack.c.bf16 %v2398_v27, %v2395_v26 }
 0x7d5   : > { %v2584_v5 = vcombine.high %v2580_v28, %v4952_v32  ;;  %v2591_v46 = vrot.slane %v2580_v28, %v5756_v9 }
 0x7d7   : > { %v2598_v35 = vrot.slane %v2584_v5, %v5756_v9 }
 0x7e0   : > { %v3978_v16 = vpop.f32.mrb[16].mxu0 }
 0x7e1   : > { %v2452_v33 = vpop.f32.mrb[17].mxu0 }
 0x7e2   : > { %v3979_v31 = vpop.f32.mrb[18].mxu0 }
 0x7e3   : > { %v2455_v37 = vpop.f32.mrb[19].mxu0  ;;  %v4247_v31 = vld [vmem:[%s6534_s19] sm:$0xff]  }
 0x7e4   : > { %v2581_v38 = vpack.c.bf16 %v2455_v37, %v2452_v33  ;;  %3996 = vmatprep.subr.bf16.mxu1 %v4247_v31 }
 0x7e5   : > { %3997 = vmatpush3.bf16.msra.mxu1 %v4247_v31 }
 0x7e6   : > { %v2650_v17 = vcombine.high %v2581_v38, %v4952_v32  ;;  %v2657_v41 = vrot.slane %v2581_v38, %v5756_v9 }
 0x7e8   : > { %v2664_v49 = vrot.slane %v2650_v17, %v5756_v9 }
 0x7ef   : > { %v3986_v39 = vpop.f32.mrb[8].mxu1 }
 0x7f0   : > { %v3837_v36 = vpack.c.bf16 %v3986_v39, %v3970_v25  ;;  %v2509_v42 = vpop.f32.mrb[9].mxu1 }
 0x7f1   : > { %v3987_v43 = vpop.f32.mrb[10].mxu1  ;;  %v3994_v2 = vpop.f32.mrb[20].mxu0 }
 0x7f2   : > { %v3838_v6 = vpack.c.bf16 %v3994_v2, %v3978_v16  ;;  %v2512_v12 = vpop.f32.mrb[11].mxu1  ;;  %v2566_v30 = vpop.f32.mrb[21].mxu0  ;;  %v2725_v48 = vrot.slane %v3837_v36, %v5763_v23 }
 0x7f3   : > { %v2582_v45 = vpack.c.bf16 %v2512_v12, %v2509_v42  ;;  %v3995_v29 = vpop.f32.mrb[22].mxu0 }
 0x7f4   : > { %v2735_v61 = vrot.slane %v3838_v6, %v5763_v23  ;;  %v2569_v1 = vpop.f32.mrb[23].mxu0 }
 0x7f5   : > { %v2599_v47 = vcombine.high %v2582_v45, %v4952_v32  ;;  %v2606_v55 = vrot.slane %v2582_v45, %v5756_v9  ;;  %v2583_v58 = vpack.c.bf16 %v2569_v1, %v2566_v30 }
 0x7f6   : > { %v2802_v62 = vpack.i.b16 %v2735_v61, %v2725_v48 }
 0x7f7   : > { %v2613_v56 = vrot.slane %v2599_v47, %v5756_v9  ;;  %v2614_v44 = vcombine.low %v2591_v46, %v2606_v55  ;;  %v2615_v22 = vcombine.high %v2591_v46, %v2606_v55  ;;  %v2665_v34 = vcombine.high %v2583_v58, %v4952_v32 }
 0x7f8   : > { %v6138_v40 = vrot.slane %v2802_v62, %v5763_v23  ;;  %v2672_v51 = vrot.slane %v2583_v58, %v5756_v9 }
 0x7f9   : > { %v2622_v20 = vrot.slane %v2614_v44, %v5763_v23  ;;  %v2629_v53 = vrot.slane %v2615_v22, %v5763_v23  ;;  %v2630_v54 = vcombine.low %v2598_v35, %v2613_v56  ;;  %v2631_v15 = vcombine.high %v2598_v35, %v2613_v56 }
 0x7fa   : > { %v2679_v18 = vrot.slane %v2665_v34, %v5756_v9  ;;  %v2680_v57 = vcombine.low %v2657_v41, %v2672_v51  ;;  %v2681_v59 = vcombine.high %v2657_v41, %v2672_v51  ;;  %v2926_v63 = vshrl.u32 %v6138_v40, 16 }
 0x7fb   : > { %v2638_v19 = vrot.slane %v2630_v54, %v5763_v23  ;;  %v2645_v0 = vrot.slane %v2631_v15, %v5763_v23  ;;  %v2646_v3 = vcombine.high %v2622_v20, %v4952_v32  ;;  %v2647_v4 = vcombine.high %v2629_v53, %v4952_v32 }
 0x7fc   : > { %v2740_v7 = vshrl.u32 %v2622_v20, 16  ;;  %v2756_v50 = vshrl.u32 %v2629_v53, 16  ;;  %v2688_v8 = vrot.slane %v2680_v57, %v5763_v23  ;;  %v2695_v11 = vrot.slane %v2681_v59, %v5763_v23 }
 0x7fd   : > { %v2648_v13 = vcombine.high %v2638_v19, %v4952_v32  ;;  %v2649_v14 = vcombine.high %v2645_v0, %v4952_v32  ;;  %v2748_v21 = vshrl.u32 %v2646_v3, 16  ;;  %v2764_v60 = vshrl.u32 %v2647_v4, 16 }
 0x7fe   : > { %v2772_v24 = vshrl.u32 %v2638_v19, 16  ;;  %v2788_v25 = vshrl.u32 %v2645_v0, 16  ;;  %v2696_v26 = vcombine.low %v2664_v49, %v2679_v18  ;;  %v2697_v52 = vcombine.high %v2664_v49, %v2679_v18 }
 0x7ff   : > { %v2780_v27 = vshrl.u32 %v2648_v13, 16  ;;  %v2796_v28 = vshrl.u32 %v2649_v14, 16  ;;  %v2712_v16 = vcombine.high %v2688_v8, %v4952_v32  ;;  %v2713_v33 = vcombine.high %v2695_v11, %v4952_v32 }
 0x800   : > { %v2704_v37 = vrot.slane %v2696_v26, %v5763_v23  ;;  %v2711_v38 = vrot.slane %v2697_v52, %v5763_v23  ;;  %v2738_v39 = vpack.i.b16 %v2688_v8, %v2622_v20  ;;  %v2741_v36 = vshrl.u32 %v2688_v8, 16 }
 0x801   : > { %v2746_v42 = vpack.i.b16 %v2712_v16, %v2646_v3  ;;  %v2749_v43 = vshrl.u32 %v2712_v16, 16  ;;  %v2754_v2 = vpack.i.b16 %v2695_v11, %v2629_v53  ;;  %v2757_v5 = vshrl.u32 %v2695_v11, 16 }
 0x802   : > { %v2714_v6 = vcombine.high %v2704_v37, %v4952_v32  ;;  %v2715_v12 = vcombine.high %v2711_v38, %v4952_v32  ;;  %v2742_v30 = vpack.i.b16 %v2741_v36, %v2740_v7  ;;  %v2762_v45 = vpack.i.b16 %v2713_v33, %v2647_v4 }
 0x803   : > { %v2750_v29 = vpack.i.b16 %v2749_v43, %v2748_v21  ;;  %v2758_v17 = vpack.i.b16 %v2757_v5, %v2756_v50  ;;  %v2765_v48 = vshrl.u32 %v2713_v33, 16  ;;  %v2770_v61 = vpack.i.b16 %v2704_v37, %v2638_v19 }
 0x804   : > { %v2773_v1 = vshrl.u32 %v2704_v37, 16  ;;  %v2778_v46 = vpack.i.b16 %v2714_v6, %v2648_v13  ;;  %v2781_v47 = vshrl.u32 %v2714_v6, 16  ;;  %v2786_v55 = vpack.i.b16 %v2711_v38, %v2645_v0  ;;  %v4248_v13 = vld [vmem:[%s6535_s16 + $0x8] sm:$0xff]  }
 0x805   : > { %v2766_v58 = vpack.i.b16 %v2765_v48, %v2764_v60  ;;  %v2789_v35 = vshrl.u32 %v2711_v38, 16  ;;  %v2794_v62 = vpack.i.b16 %v2715_v12, %v2649_v14  ;;  %v2797_v56 = vshrl.u32 %v2715_v12, 16  ;;  %3998 = vmatprep.subr.bf16.mxu1 %v4248_v13 }
 0x806   : > { %v2774_v44 = vpack.i.b16 %v2773_v1, %v2772_v24  ;;  %v2803_v22 = vcombine.low %v2738_v39, %v2754_v2  ;;  %v2927_v34 = vpack.i.b16 %v4952_v32, %v2926_v63  ;;  %v2911_v41 = vcombine.high %v6138_v40, %v4952_v32  ;;  %3999 = vmatpush3.bf16.msra.mxu1 %v4248_v13 }
 0x807   : > { %v2790_v49 = vpack.i.b16 %v2789_v35, %v2788_v25  ;;  %v2782_v51 = vpack.i.b16 %v2781_v47, %v2780_v27  ;;  %v2798_v20 = vpack.i.b16 %v2797_v56, %v2796_v28  ;;  %v2811_v53 = vcombine.low %v2746_v42, %v2762_v45 }
 0x808   : > { %2934 = vrot.lane.b32.xlu1 %v2927_v34, %s4953_s15  ;;  %v2810_v54 = vrot.slane %v2803_v22, %v5756_v9  ;;  %v2819_v15 = vcombine.low %v2770_v61, %v2786_v55  ;;  %v2827_v18 = vcombine.low %v2778_v46, %v2794_v62  ;;  %v2853_v59 = vcombine.low %v2742_v30, %v2758_v17 }
 0x809   : > { %v2818_v57 = vrot.slane %v2811_v53, %v5756_v9  ;;  %v2861_v19 = vcombine.low %v2750_v29, %v2766_v58  ;;  %v2869_v63 = vcombine.low %v2774_v44, %v2790_v49  ;;  %v2929_v0 = vpack.i.b16 %v4952_v32, %v2911_v41 }
 0x80a   : > { %v2826_v3 = vrot.slane %v2819_v15, %v5756_v9  ;;  %v2834_v4 = vrot.slane %v2827_v18, %v5756_v9  ;;  %v2877_v7 = vcombine.low %v2782_v51, %v2798_v20  ;;  %v2860_v8 = vrot.slane %v2853_v59, %v5756_v9  ;;  %v4332_v20 = vld [vmem:[%s5705_s2 + $0x10] sm:$0x1] }
 0x80b   : > { %v2835_v50 = vcombine.low %v2810_v54, %v2818_v57  ;;  %v2868_v11 = vrot.slane %v2861_v19, %v5756_v9  ;;  %v2876_v21 = vrot.slane %v2869_v63, %v5756_v9  ;;  %v2930_v39 = vshrl.u32 %v2911_v41, 16  ;;  %v4331_v41 = vld [vmem:[%s5705_s2] sm:$0xff]  ;;  %v4333_v54 = vld [vmem:[%s5705_s2 + $0x8] sm:$0xff] }
 0x80c   : > { %2938 = vrot.lane.b32.xlu1 %v2929_v0, %s4954_s12  ;;  %v2843_v14 = vcombine.low %v2826_v3, %v2834_v4  ;;  %v2884_v60 = vrot.slane %v2877_v7, %v5756_v9  ;;  %v2925_v48 = vpack.i.b16 %v4952_v32, %v6138_v40 }
 0x80d   : > { %v2885_v24 = vcombine.low %v2860_v8, %v2868_v11  ;;  %v2842_v25 = vrot.slane %v2835_v50, %v5763_v23  ;;  %v2931_v12 = vpack.i.b16 %v4952_v32, %v2930_v39  ;;  %v3839_v32 = vld [vmem:[%s6536_s20] ss:$0 sm:$0xff] }
 0x80e   : > { %v2850_v26 = vrot.slane %v2843_v14, %v5763_v23  ;;  %v2893_v52 = vcombine.low %v2876_v21, %v2884_v60 }
 0x80f   : > { %v2892_v28 = vrot.slane %v2885_v24, %v5763_v23 }
 0x810   : > { %v2852_v27 = vcombine.high %v2842_v25, %v2850_v26  ;;  %v2900_v16 = vrot.slane %v2893_v52, %v5763_v23  ;;  %v2851_v33 = vcombine.low %v2842_v25, %v2850_v26  ;;  %v4249_v26 = vld [vmem:[%s6537_s4] sm:$0xff]  }
 0x811   : > { %v4250_v52 = vld [vmem:[%s6538_s18 + $0x8] sm:$0xff]   ;;  %4004 = vmatprep.subr.bf16.mxu0 %v4249_v26 }
 0x812   : > { %v2902_v31 = vcombine.high %v2892_v28, %v2900_v16  ;;  %v2901_v37 = vcombine.low %v2892_v28, %v2900_v16  ;;  %v2915_v38 = vshrl.u32 %v2851_v33, 16  ;;  %v2921_v36 = vshrl.u32 %v2852_v27, 16  ;;  %4005 = vmatpush3.bf16.msra.mxu0 %v4249_v26 }
 0x813   : > { %4006 = vmatprep.subr.bf16.mxu0 %v4250_v52 }
 0x814   : > { %v2920_v9 = vpack.i.b16 %v2902_v31, %v2852_v27  ;;  %v2916_v42 = vshrl.u32 %v2901_v37, 16  ;;  %v2922_v43 = vshrl.u32 %v2902_v31, 16  ;;  %v2914_v2 = vpack.i.b16 %v2901_v37, %v2851_v33 }
 0x816   : > { %2936 = vrot.lane.b32.xlu1 %v2920_v9, %s4954_s12  ;;  %v2917_v5 = vpack.i.b16 %v2916_v42, %v2915_v38  ;;  %v2923_v6 = vpack.i.b16 %v2922_v43, %v2921_v36  ;;  %4007 = vmatpush3.bf16.msra.mxu0 %v4250_v52 }
 0x818   : > { %2932 = vrot.lane.b32.xlu0 %v2917_v5, %s4953_s15 }
 0x81a   : > { %2942 = vrot.lane.b32.xlu1 %v2931_v12, %s4955_s5 }
 0x81c   : > { %2940 = vrot.lane.b32.xlu0 %v2923_v6, %s4955_s5 }
 0x87a   : > { %v2935_v23 = vpop.permute.xlu1 %2934 }
 0x87b   : > { %v2949_v1 = vsel %vm1958_vm4, %v2925_v48, %v2935_v23 }
 0x87e   : > { %v2939_v30 = vpop.permute.xlu1 %2938 }
 0x87f   : > { %v2954_v55 = vsel %vm2950_vm9, %v2949_v1, %v2939_v30 }
 0x888   : > { %v2937_v45 = vpop.permute.xlu1 %2936 }
 0x88a   : > { %v2933_v29 = vpop.permute.xlu0 %2932 }
 0x88b   : > { %v2946_v17 = vsel %vm1958_vm4, %v2914_v2, %v2933_v29  ;;  %v3844_v2 = vld [vmem:[%s6539_s9] ss:$0 sm:$0xff] }
 0x88c   : > { %v2943_v61 = vpop.permute.xlu1 %2942  ;;  %v2952_v47 = vsel %vm2950_vm9, %v2946_v17, %v2937_v45  ;;  %v3845_v29 = vld [vmem:[%s6540_s7] ss:$0 sm:$0xff] }
 0x88d   : > { %v2959_v35 = vsel %vm2955_vm10, %v2954_v55, %v2943_v61  ;;  %v4251_v55 = vld [vmem:[%s5685_s13] sm:$0xff]  }
 0x88e   : > { %v2941_v46 = vpop.permute.xlu0 %2940  ;;  %4012 = vmatprep.subr.bf16.mxu1 %v4251_v55 }
 0x88f   : > { %v2957_v58 = vsel %vm2955_vm10, %v2952_v47, %v2941_v46 }
 0x890   : > { %4000 = vmatprep.mubr.msk.bf16.mxu1 %vm1017_vm2, %v2957_v58  ;;  %v4252_v58 = vld [vmem:[%s5685_s13 + $0x8] sm:$0xff]  }
 0x891   : > { %4001 = vmatmul.mubr.msk.bf16.vlgmr.msra.gmra.mrb[12].mxu1 %vm1017_vm2, %v2959_v35  ;;  %v4253_v35 = vld [vmem:[%s5685_s13 + $0x10] sm:$0xff]  }
 0x892   : > { %4013 = vmatpush3.bf16.msra.mxu1 %v4251_v55 }
 0x893   : > { %4014 = vmatprep.subr.bf16.mxu1 %v4252_v58 }
 0x896   : > { %4015 = vmatpush3.bf16.msra.mxu1 %v4252_v58 }
 0x897   : > { %4016 = vmatprep.subr.bf16.mxu1 %v4253_v35 }
 0x89a   : > { %4017 = vmatpush3.bf16.msra.mxu1 %v4253_v35 }
 0x964   : > { %v4002_v40 = vpop.f32.mrb[12].mxu1 }
 0x965   : > { %v3016_v62 = vpop.f32.mrb[13].mxu1  ;;  %v3025_v56 = vadd.f32 %v4002_v40, %v3839_v32  ;;  %v4255_v40 = vld [vmem:[%s5685_s13 + $0x20] sm:$0xff]  }
 0x966   : > { %v3017_v44 = vadd.f32 %v3839_v32, %v3016_v62  ;;  %v4003_v22 = vpop.f32.mrb[14].mxu1  ;;  %v4256_v62 = vld [vmem:[%s5685_s13 + $0x28] sm:$0xff]  }
 0x967   : > { %v3019_v34 = vpop.f32.mrb[15].mxu1  ;;  %v6196_v53 = vadd.f32 %v4332_v20, %v3025_v56  ;;  %v4257_v56 = vld [vmem:[%s5685_s13 + $0x30] sm:$0xff]  }
 0x968   : > { %v6193_v49 = vadd.f32 %v4331_v41, %v3017_v44  ;;  %v3020_v51 = vadd.f32 %v3839_v32, %v3019_v34  ;;  %v4254_v32 = vld [vmem:[%s5685_s13 + $0x18] sm:$0xff]   ;;  %v3846_v22 = vld [vmem:[%s840_s29] ss:$0 sm:$0xff]  ;;  %s6542_s29 = sld [smem:[#allocation43_spill]] (!%p3813_p0) }
 0x969   : > { %v3039_v59 = vsel %vm1024_vm3, %v6196_v53, 0.0  ;;  %4018 = vmatprep.subr.bf16.mxu1 %v4254_v32  ;;  %v4258_v44 = vld [vmem:[%s5685_s13 + $0x38] sm:$0xff]  }
 0x96a   : > { %v6199_v15 = vadd.f32 %v4333_v54, %v3020_v51  ;;  %v3033_v18 = vsel %vm1017_vm2, %v6193_v49, 0.0  ;;  %4019 = vmatpush3.bf16.msra.mxu1 %v4254_v32 }
 0x96b   : > { %3034 = vadd.xlane.f32.xlu0 %v3033_v18  ;;  %4020 = vmatprep.subr.bf16.mxu1 %v4255_v40 }
 0x96c   : > { %v3036_v57 = vsel %vm1017_vm2, %v6199_v15, 0.0 }
 0x96d   : > { %3037 = vadd.xlane.f32.xlu1 %v3036_v57 }
 0x96e   : > { %4021 = vmatpush3.bf16.msra.mxu1 %v4255_v40 }
 0x96f   : > { %3040 = vadd.xlane.f32.xlu0 %v3039_v59  ;;  %4022 = vmatprep.subr.bf16.mxu1 %v4256_v62 }
 0x972   : > { %4023 = vmatpush3.bf16.msra.mxu1 %v4256_v62 }
 0x973   : > { %4024 = vmatprep.subr.bf16.mxu1 %v4257_v56 }
 0x976   : > { %4025 = vmatpush3.bf16.msra.mxu1 %v4257_v56 }
 0x977   : > { %4026 = vmatprep.subr.bf16.mxu1 %v4258_v44 }
 0x97a   : > { %4027 = vmatpush3.bf16.msra.mxu1 %v4258_v44 }
 0x9f8   : > { %v3035_v19 = vpop.xlane.xlu0 %3034 }
 0x9f9   : > { %v3042_v63 = vmul.f32 0.03125, %v3035_v19 }
 0x9fa   : > { %v3038_v0 = vpop.xlane.xlu1 %3037 }
 0x9fb   : > { %v3045_v3 = vsub.f32 %v6193_v49, %v3042_v63  ;;  %v3043_v4 = vmul.f32 0.03125, %v3038_v0 }
 0x9fc   : > { %v3041_v7 = vpop.xlane.xlu0 %3040 }
 0x9fd   : > { %v3046_v50 = vsub.f32 %v6199_v15, %v3043_v4  ;;  %v3044_v8 = vmul.f32 0.03125, %v3041_v7  ;;  %v3048_v11 = vmul.f32 %v3045_v3, %v3045_v3 }
 0x9ff   : > { %v3047_v13 = vsub.f32 %v6196_v53, %v3044_v8  ;;  %v3051_v14 = vsel %vm1017_vm2, %v3048_v11, 0.0  ;;  %v3049_v21 = vmul.f32 %v3046_v50, %v3046_v50 }
 0xa00   : > { %3052 = vadd.xlane.f32.xlu0 %v3051_v14 }
 0xa01   : > { %v3050_v60 = vmul.f32 %v3047_v13, %v3047_v13  ;;  %v3054_v24 = vsel %vm1017_vm2, %v3049_v21, 0.0 }
 0xa03   : > { %v3057_v25 = vsel %vm1024_vm3, %v3050_v60, 0.0 }
 0xa04   : > { %3055 = vadd.xlane.f32.xlu0 %v3054_v24  ;;  %3058 = vadd.xlane.f32.xlu1 %v3057_v25 }
 0xa1a   : > { %3359 = vrot.lane.b32.xlu0 %v6118_v10, %s4956_s25 }
 0xa8d   : > { %v3053_v27 = vpop.xlane.xlu0 %3052 }
 0xa8e   : > { %v3060_v28 = vmul.f32 0.03125, %v3053_v27 }
 0xa90   : > { %v3063_v16 = vadd.f32 1e-06, %v3060_v28 }
 0xa91   : > { %v3059_v33 = vpop.xlane.xlu1 %3058  ;;  %v3056_v31 = vpop.xlane.xlu0 %3055 }
 0xa92   : > { %4313 = vrsqrt.f32 %v3063_v16  ;;  %v3062_v37 = vmul.f32 0.03125, %v3059_v33  ;;  %v3061_v38 = vmul.f32 0.03125, %v3056_v31 }
 0xa94   : > { %v3065_v39 = vadd.f32 1e-06, %v3062_v37  ;;  %v3064_v10 = vadd.f32 1e-06, %v3061_v38 }
 0xa95   : > { %v3360_v36 = vpop.permute.xlu0 %3359 }
 0xa96   : > { %4315 = vrsqrt.f32 %v3065_v39  ;;  %v6219_v9 = vsel %vm2950_vm9, %v3360_v36, 0.0 }
 0xa97   : > { %4317 = vrsqrt.f32 %v3064_v10 }
 0xa9c   : > { %v4314_v42 = vpop.eup %4313 }
 0xa9d   : > { %v3069_v43 = vmul.f32 %v4314_v42, %v3045_v3 }
 0xa9f   : > { %v3078_v30 = vmul.f32 %v3844_v2, %v3069_v43 }
 0xaa0   : > { %v4316_v5 = vpop.eup %4315 }
 0xaa1   : > { %v4318_v6 = vpop.eup %4317  ;;  %v3071_v12 = vmul.f32 %v4316_v5, %v3047_v13  ;;  %v3087_v61 = vadd.f32 %v3845_v29, %v3078_v30 }
 0xaa2   : > { %v3070_v23 = vmul.f32 %v4318_v6, %v3046_v50 }
 0xaa3   : > { %v3080_v45 = vmul.f32 %v3844_v2, %v3071_v12 }
 0xaa4   : > { %v3079_v17 = vmul.f32 %v3844_v2, %v3070_v23 }
 0xaa5   : > { %v3089_v48 = vadd.f32 %v3845_v29, %v3080_v45 }
 0xaa6   : > { %v3088_v1 = vadd.f32 %v3845_v29, %v3079_v17 }
 0xaa7   : > { %v3091_v46 = vpack.c.bf16 %v3089_v48, %v3089_v48 }
 0xaa8   : > { %v3090_v47 = vpack.c.bf16 %v3088_v1, %v3087_v61 }
 0xaaa   : > { %4008 = vmatprep.mubr.msk.bf16.mxu0 %vm1017_vm2, %v3090_v47 }
 0xaab   : > { %4009 = vmatmul.mubr.msk.bf16.vlgmr.msra.gmra.mrb[24].mxu0 %vm1017_vm2, %v3091_v46 }
 0xb7e   : > { %v4010_v34 = vpop.f32.mrb[24].mxu0 }
 0xb7f   : > { %v6237_v41 = vadd.f32 %v4010_v34, %v3846_v22  ;;  %v3150_v51 = vpop.f32.mrb[25].mxu0 }
 0xb80   : > { %v6239_v20 = vadd.f32 %v3846_v22, %v3150_v51  ;;  %v4011_v54 = vpop.f32.mrb[26].mxu0 }
 0xb81   : > { %v6242_v18 = vmul.f32 0.70710677, %v6237_v41  ;;  %v3153_v57 = vpop.f32.mrb[27].mxu0 }
 0xb82   : > { %v6245_v59 = vmul.f32 0.70710677, %v6239_v20  ;;  %v6247_v19 = vadd.f32 %v3846_v22, %v3153_v57 }
 0xb83   : > { %v3172_v63 = vand.u32 2147483647, %v6242_v18  ;;  %vm3232_vm11 = vcmp.ge.f32.partialorder %v6242_v18, 0.0 }
 0xb84   : > { %v3170_v0 = vand.u32 2147483647, %v6245_v59  ;;  %v6252_v3 = vmul.f32 0.70710677, %v6247_v19  ;;  %vm3230_vm12 = vcmp.ge.f32.partialorder %v6245_v59, 0.0 }
 0xb85   : > { %v3175_v4 = vmul.f32 0.3275911, %v3172_v63  ;;  %v3214_v21 = vsub.f32 0.0, %v3172_v63 }
 0xb86   : > { %v3173_v7 = vmul.f32 0.3275911, %v3170_v0  ;;  %v3171_v50 = vand.u32 2147483647, %v6252_v3  ;;  %v3212_v60 = vsub.f32 0.0, %v3170_v0  ;;  %vm3231_vm13 = vcmp.ge.f32.partialorder %v6252_v3, 0.0 }
 0xb87   : > { %v3178_v8 = vadd.f32 1.0, %v3175_v4  ;;  %v3217_v25 = vmul.f32 %v3214_v21, %v3172_v63 }
 0xb88   : > { %v3176_v11 = vadd.f32 1.0, %v3173_v7  ;;  %v3174_v13 = vmul.f32 0.3275911, %v3171_v50  ;;  %v3213_v26 = vsub.f32 0.0, %v3171_v50  ;;  %v3215_v28 = vmul.f32 %v3212_v60, %v3170_v0 }
 0xb89   : > { %4319 = vrcp.f32 %v3178_v8  ;;  %v3222_v37 = vmul.f32 1.442695, %v3217_v25  ;;  %v3166_v60 = vmul.f32 0.5, %v6237_v41  ;;  %v3164_v25 = vmul.f32 0.5, %v6239_v20  ;;  %v3851_v41 = vld [vmem:[%s857_s14] ss:$0 sm:$0xff] }
 0xb8a   : > { %4321 = vrcp.f32 %v3176_v11  ;;  %v3177_v14 = vadd.f32 1.0, %v3174_v13  ;;  %v3216_v39 = vmul.f32 %v3213_v26, %v3171_v50  ;;  %v3218_v36 = vmul.f32 1.442695, %v3215_v28  ;;  %s3366_s14 = scalar_lea.vmem (!%p3813_p0), [#allocation3], %s6542_s29 }
 0xb8b   : > { %v3165_v26 = vmul.f32 0.5, %v6247_v19  ;;  %3367 = vst [vmem:[%s3366_s14] sm:$0x1] (!%p3813_p0), %v6219_v9 }
 0xb8c   : > { %4323 = vrcp.f32 %v3177_v14  ;;  %v3220_v12 = vmul.f32 1.442695, %v3216_v39 }
 0xb8d   : > { %4325 = vpow2.f32 %v3222_v37 }
 0xb8e   : > { %4327 = vpow2.f32 %v3218_v36 }
 0xb8f   : > { %4329 = vpow2.f32 %v3220_v12 }
 0xb93   : > { %v4320_v24 = vpop.eup %4319 }
 0xb94   : > { %v4322_v52 = vpop.eup %4321  ;;  %v3187_v27 = vmul.f32 1.0614054, %v4320_v24 }
 0xb95   : > { %v3185_v16 = vmul.f32 1.0614054, %v4322_v52 }
 0xb96   : > { %v3190_v33 = vadd.f32 -1.4531521, %v3187_v27  ;;  %v4324_v31 = vpop.eup %4323 }
 0xb97   : > { %v3188_v38 = vadd.f32 -1.4531521, %v3185_v16  ;;  %v3186_v42 = vmul.f32 1.0614054, %v4324_v31  ;;  %v4326_v40 = vpop.eup %4325 }
 0xb98   : > { %v3193_v10 = vmul.f32 %v4320_v24, %v3190_v33  ;;  %v4328_v56 = vpop.eup %4327 }
 0xb99   : > { %v3191_v43 = vmul.f32 %v4322_v52, %v3188_v38  ;;  %v3189_v5 = vadd.f32 -1.4531521, %v3186_v42  ;;  %v4330_v57 = vpop.eup %4329 }
 0xb9a   : > { %v3196_v2 = vadd.f32 1.4214138, %v3193_v10 }
 0xb9b   : > { %v3194_v6 = vadd.f32 1.4214138, %v3191_v43  ;;  %v3192_v30 = vmul.f32 %v4324_v31, %v3189_v5 }
 0xb9c   : > { %v3199_v23 = vmul.f32 %v4320_v24, %v3196_v2 }
 0xb9d   : > { %v3197_v45 = vmul.f32 %v4322_v52, %v3194_v6  ;;  %v3195_v17 = vadd.f32 1.4214138, %v3192_v30 }
 0xb9e   : > { %v3202_v29 = vadd.f32 -0.28449672, %v3199_v23 }
 0xb9f   : > { %v3200_v48 = vadd.f32 -0.28449672, %v3197_v45  ;;  %v3198_v1 = vmul.f32 %v4324_v31, %v3195_v17 }
 0xba0   : > { %v3205_v61 = vmul.f32 %v4320_v24, %v3202_v29 }
 0xba1   : > { %v3203_v46 = vmul.f32 %v4322_v52, %v3200_v48  ;;  %v3201_v55 = vadd.f32 -0.28449672, %v3198_v1 }
 0xba2   : > { %v3208_v47 = vadd.f32 0.2548296, %v3205_v61 }
 0xba3   : > { %v3206_v58 = vadd.f32 0.2548296, %v3203_v46  ;;  %v3204_v32 = vmul.f32 %v4324_v31, %v3201_v55 }
 0xba4   : > { %v3211_v35 = vmul.f32 %v4320_v24, %v3208_v47 }
 0xba5   : > { %v3209_v62 = vmul.f32 %v4322_v52, %v3206_v58  ;;  %v3207_v22 = vadd.f32 0.2548296, %v3204_v32 }
 0xba6   : > { %v3226_v44 = vmul.f32 %v4326_v40, %v3211_v35 }
 0xba7   : > { %v3224_v34 = vmul.f32 %v4328_v56, %v3209_v62  ;;  %v3210_v54 = vmul.f32 %v4324_v31, %v3207_v22 }
 0xba8   : > { %v3229_v51 = vsub.f32 1.0, %v3226_v44 }
 0xba9   : > { %v3227_v63 = vsub.f32 1.0, %v3224_v34  ;;  %v3225_v4 = vmul.f32 %v4330_v57, %v3210_v54 }
 0xbaa   : > { %v3235_v0 = vsub.f32 0.0, %v3229_v51 }
 0xbab   : > { %v3233_v7 = vsub.f32 0.0, %v3227_v63  ;;  %v3228_v8 = vsub.f32 1.0, %v3225_v4 }
 0xbac   : > { %v3238_v50 = vsel %vm3232_vm11, %v3229_v51, %v3235_v0 }
 0xbad   : > { %v3236_v11 = vsel %vm3230_vm12, %v3227_v63, %v3233_v7  ;;  %v3241_v13 = vadd.f32 1.0, %v3238_v50  ;;  %v3234_v14 = vsub.f32 0.0, %v3228_v8 }
 0xbae   : > { %v3239_v21 = vadd.f32 1.0, %v3236_v11 }
 0xbaf   : > { %v3237_v24 = vsel %vm3231_vm13, %v3228_v8, %v3234_v14  ;;  %v3244_v52 = vmul.f32 %v3241_v13, %v3166_v60 }
 0xbb0   : > { %v3240_v18 = vadd.f32 1.0, %v3237_v24  ;;  %v3242_v27 = vmul.f32 %v3239_v21, %v3164_v25 }
 0xbb1   : > { %v3246_v16 = vpack.c.bf16 %v3244_v52, %v3244_v52 }
 0xbb2   : > { %v3243_v59 = vmul.f32 %v3240_v18, %v3165_v26 }
 0xbb4   : > { %v3245_v28 = vpack.c.bf16 %v3243_v59, %v3242_v27 }
 0xbb6   : > { %4028 = vmatprep.mubr.bf16.mxu1 %v3245_v28 }
 0xbb7   : > { %4029 = vmatmul.mubr.bf16.vlgmr.msra.gmra.mrb[16].mxu1 %v3246_v16 }
 0xc8a   : > { %v4030_v3 = vpop.f32.mrb[16].mxu1 }
 0xc8b   : > { %v3344_v20 = vadd.f32 %v4030_v3, %v3851_v41  ;;  %v3335_v33 = vpop.f32.mrb[17].mxu1 }
 0xc8c   : > { %v3336_v19 = vadd.f32 %v3851_v41, %v3335_v33  ;;  %v4031_v31 = vpop.f32.mrb[18].mxu1  ;;  %3365 = sbr.rel (%p3813_p0) target bundleno = 3219 (0xc93), region = 140 }
 0xc8d   : > { %v3351_v37 = vadd.f32 %v3344_v20, %v6196_v53  ;;  %v3338_v38 = vpop.f32.mrb[19].mxu1 }
 0xc8e   : > { %v3349_v39 = vadd.f32 %v3336_v19, %v6193_v49  ;;  %v3339_v10 = vadd.f32 %v3851_v41, %v3338_v38 }
 0xc8f   : > { %3354 = vst.msk [vmem:[%s5705_s2 + $0x10] sm:$0x1] %vm1024_vm3, %v3351_v37  ;;  %3357 = vst.msk [vmem:[%s5694_s30 + $0x10] sm:$0x1] %vm1024_vm3, %v3351_v37 }
 0xc90   : > { %3352 = vst.msk [vmem:[%s5705_s2] sm:$0xff] %vm1017_vm2, %v3349_v39  ;;  %3355 = vst.msk [vmem:[%s5694_s30] sm:$0xff] %vm1017_vm2, %v3349_v39  ;;  %v3350_v36 = vadd.f32 %v3339_v10, %v6199_v15 }
 0xc92   : > { %3353 = vst.msk [vmem:[%s5705_s2 + $0x8] sm:$0xff] %vm1017_vm2, %v3350_v36  ;;  %3356 = vst.msk [vmem:[%s5694_s30 + $0x8] sm:$0xff] %vm1017_vm2, %v3350_v36 }
 0xc93 PF: > { %s6543_s13 = sld [smem:[#allocation44_spill]] }
 0xc99   : > { %p3861_p2 = scmp.le.s32.totalorder %s6543_s13, 0 }
 0xc9a   : > { %s6544_s19 = sld [smem:[#allocation44_spill]] (!%p3861_p2)  ;;  %s6545_s16 = sld [smem:[#allocation43_spill]] (!%p3861_p2) }
 0xc9b   : > { %3371 = sbr.rel (%p3861_p2) target bundleno = 3246 (0xcae), region = 144 }
 0xca0   : > { %s3372_s12 = sld [smem:[#allocation8 + %s6544_s19]] (!%p3861_p2)  ;;  %s3374_s20 = scalar_lea.vmem (!%p3861_p2), [#allocation3], %s6545_s16 }
 0xca1   : > { %v3375_v49 = vld [vmem:[%s3374_s20] sm:$0x1] (!%p3861_p2) }
 0xca6   : > { %s3373_s5 = ssub.f32 1.0, %s3372_s12  ;;  %v3378_v53 = vstv %s3372_s12 }
 0xca7   : > { %v3379_v15 = vmul.f32 %v3378_v53, %v6219_v9 }
 0xca8   : > { %v3376_v42 = vstv %s3373_s5 }
 0xca9   : > { %v3377_v43 = vmul.f32 %v3376_v42, %v3375_v49 }
 0xcab   : > { %v3380_v2 = vadd.f32 %v3379_v15, %v3377_v43 }
 0xcad   : > { %3381 = vst [vmem:[%s3374_s20] sm:$0x1] %v3380_v2 }
 0xcae PF: > { %s6546_s2 = sld [smem:[#allocation43_spill]]  ;;  %s6547_s25 = sld [smem:[#allocation47_spill]] }
 0xcaf   : > { %s3403_s9 = sshll.u32 %s5694_s30, 4  ;;  %s6548_s7 = scalar_lea.vmem [#allocation28], %s5623_s17  ;;  %s6291_s9 = int_to_ptr.vmem [resolvable:$true] %s3403_s9 }
 0xcb0   : > { %s6549_s14 = sld [smem:[#allocation63_spill]]  ;;  %s3386_s19 = scalar_lea.sflag [#allocation6], %s5623_s17 }
 0xcb1   : > { %s4737_s16 = scalar_lea.vmem %s6291_s9, 384  ;;  %s4957_s12 = smov [#allocation27]  }
 0xcb2   : > { %p4738_p9 = scmp.ne.s32.totalorder %s6291_s9, %s4737_s16  ;;  %s4741_s30 = sshll.u32 %s4957_s12, 4  ;;  %s4742_s30 = int_to_ptr.vmem [resolvable:$false] %s4741_s30 }
 0xcb3   : > { %s4743_s5 = scalar_lea.vmem %s4742_s30, 768  ;;  %p4744_p3 = scmp.lt.s32.totalorder %s6291_s9, %s4742_s30 }
 0xcb4   : > { %s3382_s4 = scalar_lea.vmem [#allocation3], %s6546_s2  ;;  %s4043_s18 = smul.u32 384, %s6546_s2 }
 0xcb5   : > { %v3383_v5 = vld [vmem:[%s3382_s4] sm:$0x1]  ;;  %p6550_p13 = scmp.ne.s32.totalorder %s6547_s25, 0  ;;  %p4745_p4 = scmp.lt.s32.totalorder %s4743_s5, %s4737_s16 }
 0xcb6   : > { %3384 = vst [vmem:[%s6548_s7] sm:$0x1] %v3383_v5  ;;  %s6296_s13 = scalar_lea.hbm %s6549_s14, %s4043_s18 }
 0xcb7   : > { %p4739_p6 = pnand %p4738_p9, %p6550_p13  ;;  %p4746_p7 = por %p4745_p4, %p4744_p3 }
 0xcb9   : > { %p4740_p10 = pneg %p4739_p6 }
 0xcbb   : > { %p4747_p5 = pnand %p4746_p7, %p4740_p10 }
 0xcbd   : > { %4750 = shalt.err (!%p4747_p5)
}
 0xcbe   : > { %s4751_s20 = scalar_lea.hbm %s6296_s13, 384  ;;  %s4755_s7 = scalar_lea.hbm %s6549_s14, 768 }
 0xcbf   : > { %p4752_p12 = scmp.ne.s32.totalorder %s6296_s13, %s4751_s20  ;;  %p4756_p11 = scmp.lt.u32.totalorder %s6296_s13, %s6549_s14 }
 0xcc0   : > { %p4757_p0 = scmp.lt.u32.totalorder %s4755_s7, %s4751_s20  ;;  %p4759_p9 = scmp.lt.u32.totalorder %s4751_s20, %s6296_s13 }
 0xcc1   : > { %p4753_p8 = pnand %p4752_p12, %p6550_p13 }
 0xcc2   : > { %p4758_p2 = por %p4757_p0, %p4756_p11 }
 0xcc3   : > { %p4754_p1 = pneg %p4753_p8 }
 0xcc4   : > { %p4760_p6 = por %p4759_p9, %p4758_p2 }
 0xcc6   : > { %p4761_p10 = pnand %p4760_p6, %p4754_p1 }
 0xcc8   : > { %4764 = shalt.err (!%p4761_p10)
}
 0xcc9   : > { %s4958_s16 = smov 128   ;;  %s3863_s12 = sshll.u32 %s6546_s2, 4 }
 0xcca   : > { %4074 = dma.vmem_to_hbm [thread:$0]  (%p6550_p13), %s6291_s9, 384, %s6296_s13, %s3386_s19, %s4958_s16, %s4958_s16, %s4953_s15  }
 0xccb   : > { %s6551_s30 = scalar_lea.vmem [#allocation28], %s5623_s17  ;;  %s6552_s18 = sld [smem:[#allocation64_spill]] }
 0xccc   : > { %s3419_s5 = sshll.u32 %s6551_s30, 4  ;;  %s3391_s29 = scalar_lea.sflag [#allocation29], %s5623_s17  ;;  %s3420_s5 = int_to_ptr.vmem [resolvable:$true] %s3419_s5 }
 0xccd   : > { %s4765_s0 = scalar_lea.vmem %s3420_s5, 16  ;;  %s4959_s6 = smov [#allocation28]  }
 0xcce   : > { %p4766_p3 = scmp.ne.s32.totalorder %s3420_s5, %s4765_s0  ;;  %s4769_s8 = sshll.u32 %s4959_s6, 4  ;;  %s4770_s8 = int_to_ptr.vmem [resolvable:$false] %s4769_s8 }
 0xccf   : > { %s4771_s10 = scalar_lea.vmem %s4770_s8, 32  ;;  %p4772_p5 = scmp.lt.s32.totalorder %s3420_s5, %s4770_s8 }
 0xcd0   : > { %p4767_p4 = pnand %p4766_p3, %p6550_p13  ;;  %p4773_p12 = scmp.lt.s32.totalorder %s4771_s10, %s4765_s0 }
 0xcd1   : > { %s6553_s7 = smov %s6552_s18  ;;  %s6329_s1 = scalar_lea.hbm %s6552_s18, %s3863_s12 }
 0xcd2   : > { %p4768_p7 = pneg %p4767_p4  ;;  %p4774_p8 = por %p4773_p12, %p4772_p5 }
 0xcd4   : > { %p4775_p1 = pnand %p4774_p8, %p4768_p7 }
 0xcd6   : > { %4778 = shalt.err (!%p4775_p1)
}
 0xcd7   : > { %s4779_s17 = scalar_lea.hbm %s6329_s1, 16  ;;  %s4783_s6 = scalar_lea.hbm %s6553_s7, 32 }
 0xcd8   : > { %p4780_p11 = scmp.ne.s32.totalorder %s6329_s1, %s4779_s17  ;;  %p4784_p9 = scmp.lt.u32.totalorder %s6329_s1, %s6553_s7 }
 0xcd9   : > { %p4785_p6 = scmp.lt.u32.totalorder %s4783_s6, %s4779_s17  ;;  %p4787_p3 = scmp.lt.u32.totalorder %s4779_s17, %s6329_s1 }
 0xcda   : > { %p4781_p0 = pnand %p4780_p11, %p6550_p13 }
 0xcdb   : > { %p4786_p10 = por %p4785_p6, %p4784_p9 }
 0xcdc   : > { %p4782_p2 = pneg %p4781_p0 }
 0xcdd   : > { %p4788_p4 = por %p4787_p3, %p4786_p10 }
 0xcdf   : > { %p4789_p7 = pnand %p4788_p4, %p4782_p2 }
 0xce1   : > { %4792 = shalt.err (!%p4789_p7)
}
 0xce2   : > { %4075 = dma.vmem_to_hbm [thread:$0]  (%p6550_p13), %s3420_s5, 16, %s6329_s1, %s3391_s29  }
 0xce3 PF: > { %s6554_s10 = sld [smem:[#allocation42_spill]]  ;;  %s6555_s0 = sld [smem:[#allocation48_spill]] }
 0xce4   : > { %p4132_p5 = scmp.ge.s32.totalorder %s4919_s28, 2 }
 0xce9   : > { %s3431_s13 = sand.u32 1, %s6554_s10   ;;  %p6556_p12 = scmp.ne.s32.totalorder %s6555_s0, 0 }
 0xcea   : > { %s3432_s19 = scalar_lea.sflag [#allocation6], %s3431_s13 }
 0xceb   : > { %p4123_p8 = pnand %p4132_p5, %p6556_p12 }
 0xced   : > { %4870 = dma.done.wait (!%p4123_p8), %s3432_s19, 384  }
 0xcee   : > { %4872 = vsyncadd (!%p4123_p8), %s3432_s19, 4294966912  ;;  %s3441_s16 = scalar_lea.sflag [#allocation29], %s3431_s13 }
 0xcef   : > { %4874 = dma.done.wait (!%p4123_p8), %s3441_s16, 16  }
 0xcf0   : > { %4876 = vsyncadd (!%p4123_p8), %s3441_s16, 4294967280  ;;  %s54_s28 = sadd.s32 1, %s4919_s28   ;;  %s6557_s18 = sld [smem:[#allocation40_spill]] }
 0xcf1   : > { %p51_p1 = scmp.ge.s32.totalorder %s54_s28, 10   ;;  %s6558_s19 = sld [smem:[#allocation41_spill]] }
 0xcf2   : > { %s6559_s25 = smov %s5414_s21  ;;  %s6560_s12 = smov %s6574_s24 }
 0xcf3   : > { %s6561_s20 = smov %s6576_s3  ;;  %s6562_s21 = smov %s4895_s22 }
 0xcf4   : > { %s6563_s22 = smov %s4899_s23  ;;  %s6564_s23 = smov %s6559_s25 }
 0xcf5   : > { %s6565_s24 = smov %s4911_s26  ;;  %s6566_s25 = smov %s4915_s27 }
 0xcf6   : > { %s6567_s26 = smov %s6570_s11  ;;  %s6568_s27 = smov %s6560_s12 }
 0xcf7   :  { %53 = sbr.rel (!%p51_p1) target bundleno = 41 (0x29), region = 304 }
 0xcfe   :  { %3445 = vsyncpa [#allocation5], 1 }
 0xcff   :  { %3447 = vsyncpa [#allocation5 + $0x1], 1 }
 0xd00   :  { %3448 = vsyncpa [#allocation10], 1 }
 0xd01   :  { %3450 = vsyncpa [#allocation10 + $0x1], 1 }
 0xd02   :  { %3451 = vsyncpa [#allocation13], 1 }
 0xd03   :  { %3453 = vsyncpa [#allocation13 + $0x1], 1 }
 0xd04   :  { %3454 = vsyncpa [#allocation16], 1 }
 0xd05   :  { %3456 = vsyncpa [#allocation16 + $0x1], 1 }
 0xd06   :  { %3457 = vsyncpa [#allocation19], 1 }
 0xd07   :  { %3459 = vsyncpa [#allocation19 + $0x1], 1 }
 0xd08   :  { %3460 = vsyncpa [#allocation22], 1 }
 0xd09   :  { %3462 = vsyncpa [#allocation22 + $0x1], 1 }
 0xd0a   :  { %3463 = vsyncpa [#allocation25], 1 }
 0xd0b   :  { %3465 = vsyncpa [#allocation25 + $0x1], 1 }
 0xd0c   :  { %3466 = vsyncpa [#allocation6], 1 }
 0xd0d   :  { %3468 = vsyncpa [#allocation6 + $0x1], 1 }
 0xd0e   :  { %3469 = vsyncpa [#allocation29], 1 }
 0xd0f   :  { %3471 = vsyncpa [#allocation29 + $0x1], 1 }
 0xd10   :  { %3472 = vsyncpa [#allocation7], 1 }
 0xd11   :  { %3474 = vsyncpa [#allocation7 + $0x1], 1 }

// kernel: evo_vit_forward.21
= control target key start
LH: loop header
LB: loop body
LE: loop exit
PB: predicated region body
PF: predicated region fallthrough
CT: control target
= control target key end

     0   :  { %10 = vsyncpa [#allocation3], 0  ;;  %s592_s0 = inlined_call_operand.hbm [shape: f32[2,17,32], index: 0, kind: input, shape index: {}]   ;;  %s593_s1 = inlined_call_operand.hbm [shape: f32[1,32], index: 1, kind: input, shape index: {}]   ;;  %s594_s2 = inlined_call_operand.hbm [shape: f32[1,32], index: 2, kind: input, shape index: {}]   ;;  %s595_s3 = inlined_call_operand.hbm [shape: f32[32,10], index: 3, kind: input, shape index: {}]   ;;  %s596_s4 = inlined_call_operand.hbm [shape: f32[1,10], index: 4, kind: input, shape index: {}]   ;;  %s597_s5 = inlined_call_operand.hbm [shape: f32[2,10], index: 5, kind: output, shape index: {}]  }
   0x1   :  { %11 = vsyncpa [#allocation6], 0 }
   0x2   :  { %12 = vsyncpa [#allocation9], 0 }
   0x3   :  { %13 = vsyncpa [#allocation4], 0  ;;  %s471_s18 = smov [#allocation5]   ;;  %s331_s22 = scalar_lea.hbm %s593_s1, 16 }
   0x4   :  { %s32_s19 = sshll.u32 %s471_s18, 4  ;;  %p332_p0 = scmp.ne.s32.totalorder %s593_s1, %s331_s22  ;;  %s33_s19 = int_to_ptr.vmem [resolvable:$true] %s32_s19 }
   0x5   :  { %p335_p1 = scmp.lt.u32.totalorder %s331_s22, %s593_s1 }
   0x7   :  { %p337_p2 = pnand %p335_p1, %p332_p0 }
   0x9   :  { %340 = shalt.err (!%p337_p2)
}
   0xa   :  { %s341_s27 = scalar_lea.vmem %s33_s19, 16  ;;  %s345_s28 = scalar_lea.vmem %s33_s19, 32 }
   0xb   :  { %p342_p3 = scmp.ne.s32.totalorder %s33_s19, %s341_s27  ;;  %p346_p4 = scmp.lt.s32.totalorder %s33_s19, %s33_s19 }
   0xc   :  { %p347_p5 = scmp.lt.s32.totalorder %s345_s28, %s341_s27 }
   0xe   :  { %p348_p6 = por %p347_p5, %p346_p4 }
  0x10   :  { %p349_p7 = pnand %p348_p6, %p342_p3 }
  0x12   :  { %352 = shalt.err (!%p349_p7)
}
  0x13   :  { %35 = dma.hbm_to_vmem [thread:$0]  %s593_s1, 16, %s33_s19, [#allocation6]  }
  0x14   :  { %s472_s6 = smov [#allocation8]   ;;  %s473_s8 = smov [#allocation2]  }
  0x15   :  { %s51_s7 = sshll.u32 %s472_s6, 4  ;;  %s19_s9 = sshll.u32 %s473_s8, 4  ;;  %s52_s7 = int_to_ptr.vmem [resolvable:$true] %s51_s7  ;;  %s20_s9 = int_to_ptr.vmem [resolvable:$true] %s19_s9 }
  0x16   :  { %s353_s12 = scalar_lea.hbm %s595_s3, 512 }
  0x17   :  { %p354_p8 = scmp.ne.s32.totalorder %s595_s3, %s353_s12  ;;  %p357_p9 = scmp.lt.u32.totalorder %s353_s12, %s595_s3 }
  0x19   :  { %p359_p10 = pnand %p357_p9, %p354_p8 }
  0x1b   :  { %362 = shalt.err (!%p359_p10)
}
  0x1c   :  { %s363_s1 = scalar_lea.vmem %s52_s7, 512  ;;  %p368_p12 = scmp.lt.s32.totalorder %s52_s7, %s52_s7 }
  0x1d   :  { %p364_p11 = scmp.ne.s32.totalorder %s52_s7, %s363_s1  ;;  %p369_p13 = scmp.lt.s32.totalorder %s363_s1, %s363_s1 }
  0x1f   :  { %p370_p0 = por %p369_p13, %p368_p12 }
  0x21   :  { %p371_p1 = pnand %p370_p0, %p364_p11 }
  0x23   :  { %374 = shalt.err (!%p371_p1)
}
  0x24   :  { %s474_s17 = smov 128   ;;  %s475_s18 = smov 8  }
  0x25   :  { %57 = dma.hbm_to_vmem [thread:$0]  %s595_s3, 512, %s52_s7, [#allocation9], %s474_s17, %s474_s17, %s475_s18  }
  0x26   :  { %s375_s23 = scalar_lea.hbm %s592_s0, 768 }
  0x27   :  { %p376_p2 = scmp.ne.s32.totalorder %s592_s0, %s375_s23  ;;  %p379_p3 = scmp.lt.u32.totalorder %s375_s23, %s592_s0 }
  0x29   :  { %p381_p4 = pnand %p379_p3, %p376_p2 }
  0x2b   :  { %384 = shalt.err (!%p381_p4)
}
  0x2c   :  { %s385_s28 = scalar_lea.vmem %s20_s9, 768  ;;  %p390_p6 = scmp.lt.s32.totalorder %s20_s9, %s20_s9 }
  0x2d   :  { %p386_p5 = scmp.ne.s32.totalorder %s20_s9, %s385_s28  ;;  %p391_p7 = scmp.lt.s32.totalorder %s385_s28, %s385_s28 }
  0x2f   :  { %p392_p8 = por %p391_p7, %p390_p6 }
  0x31   :  { %p393_p9 = pnand %p392_p8, %p386_p5 }
  0x33   :  { %396 = shalt.err (!%p393_p9)
}
  0x34   :  { %25 = dma.hbm_to_vmem [thread:$0]  %s592_s0, 768, %s20_s9, [#allocation3], %s474_s17, %s474_s17, %s475_s18  }
  0x35   :  { %s476_s30 = smov [#allocation7]   ;;  %s477_s7 = smov [#allocation10]  }
  0x36   :  { %s42_s6 = sshll.u32 %s476_s30, 4  ;;  %s64_s8 = sshll.u32 %s477_s7, 4  ;;  %s43_s6 = int_to_ptr.vmem [resolvable:$true] %s42_s6  ;;  %s65_s8 = int_to_ptr.vmem [resolvable:$true] %s64_s8 }
  0x37   :  { %s397_s12 = scalar_lea.hbm %s594_s2, 16 }
  0x38   :  { %p398_p10 = scmp.ne.s32.totalorder %s594_s2, %s397_s12  ;;  %p401_p11 = scmp.lt.u32.totalorder %s397_s12, %s594_s2 }
  0x3a   :  { %p403_p12 = pnand %p401_p11, %p398_p10 }
  0x3c   :  { %406 = shalt.err (!%p403_p12)
}
  0x3d   :  { %s407_s0 = scalar_lea.vmem %s43_s6, 16  ;;  %s411_s9 = scalar_lea.vmem %s43_s6, 32 }
  0x3e   :  { %p408_p13 = scmp.ne.s32.totalorder %s43_s6, %s407_s0  ;;  %p412_p0 = scmp.lt.s32.totalorder %s43_s6, %s43_s6 }
  0x3f   :  { %p413_p1 = scmp.lt.s32.totalorder %s411_s9, %s407_s0 }
  0x41   :  { %p414_p2 = por %p413_p1, %p412_p0 }
  0x43   :  { %p415_p3 = pnand %p414_p2, %p408_p13 }
  0x45   :  { %418 = shalt.err (!%p415_p3)
}
  0x46   :  { %45 = dma.hbm_to_vmem [thread:$0]  %s594_s2, 16, %s43_s6, [#allocation6]  }
  0x47   :  { %s419_s20 = scalar_lea.hbm %s596_s4, 16 }
  0x48   :  { %p420_p4 = scmp.ne.s32.totalorder %s596_s4, %s419_s20  ;;  %p423_p5 = scmp.lt.u32.totalorder %s419_s20, %s596_s4 }
  0x4a   :  { %p425_p6 = pnand %p423_p5, %p420_p4 }
  0x4c   :  { %428 = shalt.err (!%p425_p6)
}
  0x4d   :  { %s429_s25 = scalar_lea.vmem %s65_s8, 16  ;;  %s433_s26 = scalar_lea.vmem %s65_s8, 32 }
  0x4e   :  { %p430_p7 = scmp.ne.s32.totalorder %s65_s8, %s429_s25  ;;  %p434_p8 = scmp.lt.s32.totalorder %s65_s8, %s65_s8 }
  0x4f   :  { %p435_p9 = scmp.lt.s32.totalorder %s433_s26, %s429_s25 }
  0x51   :  { %p436_p10 = por %p435_p9, %p434_p8 }
  0x53   :  { %p437_p11 = pnand %p436_p10, %p430_p7 }
  0x55   :  { %440 = shalt.err (!%p437_p11)
}
  0x56   :  { %67 = dma.hbm_to_vmem [thread:$0]  %s596_s4, 16, %s65_s8, [#allocation9]  }
  0x57   :  { %463 = dma.done.wait [#allocation3], 768  }
  0x58   :  { %464 = vsyncadd [#allocation3], 4294966528 }
  0x59   :  { %465 = dma.done.wait [#allocation6], 32  }
  0x5a   :  { %466 = vsyncadd [#allocation6], 4294967264 }
  0x5b   :  { %467 = dma.done.wait [#allocation9], 528  }
  0x5c   :  { %468 = vsyncadd [#allocation9], 4294966768  ;;  %v83_v0 = vld [vmem:[#allocation2] sm:$0xff]  ;;  %v84_v1 = vld [vmem:[#allocation2 + $0x8] sm:$0xff]  ;;  %vm95_vm0 = vcmask 1046528   ;;  %vm110_vm1 = vcmask 261120  }
  0x5d   :  { %v85_v2 = vld [vmem:[#allocation2 + $0x10] sm:$0x1]  ;;  %v86_v3 = vld [vmem:[#allocation2 + $0x18] sm:$0xff]  ;;  %v87_v4 = vld [vmem:[#allocation2 + $0x20] sm:$0xff]  ;;  %v96_v6 = vrot.slane %v83_v0, 1  ;;  %v97_v7 = vrot.slane %v84_v1, 1 }
  0x5e   :  { %v88_v5 = vld [vmem:[#allocation2 + $0x28] sm:$0x1]  ;;  %v99_v8 = vrot.slane %v85_v2, 1  ;;  %v101_v9 = vrot.slane %v86_v3, 1  ;;  %v102_v10 = vrot.slane %v87_v4, 1  ;;  %vm136_vm2 = vcmask 1041409  }
  0x5f   :  { %v104_v11 = vrot.slane %v88_v5, 1  ;;  %v98_v12 = vsel %vm95_vm0, %v96_v6, %v97_v7  ;;  %vm139_vm3 = vcmask 254976   ;;  %v186_v48 = vld [vmem:[#allocation8] sm:$0xff]  ;;  %v187_v49 = vld [vmem:[#allocation8 + $0x8] sm:$0xff]  ;;  %v188_v50 = vld [vmem:[#allocation8 + $0x10] sm:$0xff]  ;;  %v478_v51 = vmov 0.0|0.0  }
  0x60   :  { %v100_v13 = vsel %vm95_vm0, %v97_v7, %v99_v8  ;;  %v103_v14 = vsel %vm95_vm0, %v101_v9, %v102_v10  ;;  %v111_v16 = vsel %vm110_vm1, %v98_v12, 0.0  ;;  %312 = vmatprep.subr.bf16.mxu0 %v478_v51  ;;  %v313_v52 = vpack.c.bf16 %v187_v49, %v186_v48  ;;  %v189_v53 = vld [vmem:[#allocation8 + $0x18] sm:$0xff]  ;;  %v294_v7 = vld [vmem:[#allocation10] ss:$0 sm:$0xff]  ;;  %s481_s4 = smov [#allocation11]  }
  0x61   :  { %v105_v15 = vsel %vm95_vm0, %v102_v10, %v104_v11  ;;  %v112_v17 = vsel %vm110_vm1, %v100_v13, 0.0  ;;  %v120_v18 = vsel %vm110_vm1, %v103_v14, 0.0  ;;  %vm479_vm4 = vmmov 0   ;;  %v292_v62 = vld [vmem:[#allocation5] ss:$0 sm:$0xff]  ;;  %s281_s28 = sshll.u32 %s481_s4, 4  ;;  %s282_s28 = int_to_ptr.vmem [resolvable:$true] %s281_s28 }
  0x62   :  { %v121_v19 = vsel %vm110_vm1, %v105_v15, 0.0  ;;  %v113_v20 = vadd.f32 %v112_v17, %v111_v16  ;;  %v480_v54 = vmov 0.0   ;;  %314 = vmatpush3.bf16.msra.mxu0 %v313_v52  ;;  %v316_v55 = vpack.c.bf16 %v189_v53, %v188_v50  ;;  %v293_v2 = vld [vmem:[#allocation7] ss:$0 sm:$0xff]  ;;  %s441_s3 = scalar_lea.vmem %s282_s28, 32  ;;  %p446_p13 = scmp.lt.s32.totalorder %s282_s28, %s282_s28 }
  0x63   :  { %v122_v21 = vadd.f32 %v121_v19, %v120_v18  ;;  %309 = vmatprep.mubr.msk.f32.mxu0 %vm479_vm4, %v480_v54  ;;  %315 = vmatprep.subr.bf16.mxu0 %v478_v51  ;;  %vm273_vm5 = vcmask 74752   ;;  %p442_p12 = scmp.ne.s32.totalorder %s282_s28, %s441_s3  ;;  %p447_p0 = scmp.lt.s32.totalorder %s441_s3, %s441_s3 }
  0x64   :  { %v114_v22 = vrot.slane %v113_v20, 4 }
  0x65   :  { %v123_v23 = vrot.slane %v122_v21, 4  ;;  %p448_p1 = por %p447_p0, %p446_p13 }
  0x66   :  { %v115_v24 = vadd.f32 %v114_v22, %v113_v20  ;;  %317 = vmatpush3.bf16.msra.mxu0 %v316_v55 }
  0x67   :  { %v124_v25 = vadd.f32 %v123_v23, %v122_v21  ;;  %p449_p2 = pnand %p448_p1, %p442_p12 }
  0x68   :  { %v116_v26 = vrot.slane %v115_v24, 2 }
  0x69   :  { %v125_v27 = vrot.slane %v124_v25, 2 }
  0x6a   :  { %v117_v28 = vadd.f32 %v116_v26, %v115_v24 }
  0x6b   :  { %v126_v29 = vadd.f32 %v125_v27, %v124_v25 }
  0x6c   :  { %v118_v30 = vrot.slane %v117_v28, 1 }
  0x6d   :  { %v127_v31 = vrot.slane %v126_v29, 1 }
  0x6e   :  { %v119_v32 = vadd.f32 %v118_v30, %v117_v28 }
  0x6f   :  { %v128_v33 = vadd.f32 %v127_v31, %v126_v29 }
  0x70   :  { %v130_v34 = vmul.f32 0.0625, %v119_v32 }
  0x71   :  { %v131_v35 = vmul.f32 0.0625, %v128_v33 }
  0x73   :  { %v137_v36 = vsel %vm136_vm2, %v131_v35, %v130_v34 }
  0x74   :  { %v140_v37 = vsel %vm139_vm3, %v137_v36, 0.0 }
  0x75   :  { %141 = vadd.xlane.f32.xlu0 %v140_v37 }
 0x102   :  { %v142_v38 = vpop.xlane.xlu0 %141 }
 0x103   :  { %v144_v39 = vmul.f32 0.03125, %v142_v38 }
 0x105   :  { %v146_v40 = vrot.slane %v144_v39, 1  ;;  %v149_v41 = vsub.f32 %v130_v34, %v144_v39 }
 0x107   :  { %v150_v42 = vsub.f32 %v131_v35, %v146_v40  ;;  %v151_v44 = vmul.f32 %v149_v41, %v149_v41 }
 0x109   :  { %v152_v43 = vmul.f32 %v150_v42, %v150_v42 }
 0x10b   :  { %v155_v45 = vrot.slane %v152_v43, 7 }
 0x10d   :  { %v156_v46 = vsel %vm136_vm2, %v155_v45, %v151_v44 }
 0x10e   :  { %v158_v47 = vsel %vm139_vm3, %v156_v46, 0.0 }
 0x10f   :  { %159 = vadd.xlane.f32.xlu0 %v158_v47 }
 0x19c   :  { %v160_v56 = vpop.xlane.xlu0 %159 }
 0x19d   :  { %v161_v57 = vmul.f32 0.03125, %v160_v56 }
 0x19f   :  { %v162_v58 = vadd.f32 1e-06, %v161_v57 }
 0x1a1   :  { %329 = vrsqrt.f32 %v162_v58 }
 0x1ab   :  { %v330_v59 = vpop.eup %329 }
 0x1ac   :  { %v165_v60 = vrot.slane %v330_v59, 1  ;;  %v168_v61 = vmul.f32 %v330_v59, %v149_v41 }
 0x1ae   :  { %v169_v63 = vmul.f32 %v165_v60, %v150_v42  ;;  %v176_v0 = vmul.f32 %v292_v62, %v168_v61 }
 0x1b0   :  { %v177_v1 = vmul.f32 %v292_v62, %v169_v63  ;;  %v184_v4 = vadd.f32 %v293_v2, %v176_v0 }
 0x1b2   :  { %v185_v3 = vadd.f32 %v293_v2, %v177_v1 }
 0x1b4   :  { %v199_v5 = vrot.slane %v185_v3, 7 }
 0x1b6   :  { %v200_v6 = vsel %vm136_vm2, %v199_v5, %v184_v4 }
 0x1b7   :  { %310 = vmatmul.mubr.msk.f32.vlgmr.msra.gmra.mrb[0].mxu0 %vm110_vm1, %v200_v6 }
 0x28a   :  { %v269_v8 = vpop.f32.mrb[0].mxu0 }
 0x28b   :  { %v270_v9 = vadd.f32 %v294_v7, %v269_v8  ;;  %v311_v10 = vpop.f32.mrb[1].mxu0 }
 0x28d   :  { %274 = vst.msk [vmem:[#allocation11] sm:$0x3] %vm273_vm5, %v270_v9 }
 0x28e   :  { %452 = shalt.err (!%p449_p2)
}
 0x28f   :  { %s453_s6 = scalar_lea.hbm %s597_s5, 32 }
 0x290   :  { %p454_p3 = scmp.ne.s32.totalorder %s597_s5, %s453_s6  ;;  %p457_p4 = scmp.lt.u32.totalorder %s453_s6, %s597_s5 }
 0x292   :  { %p459_p5 = pnand %p457_p4, %p454_p3 }
 0x294   :  { %462 = shalt.err (!%p459_p5)
}
 0x295   :  { %284 = dma.vmem_to_hbm [thread:$0]  %s282_s28, 32, %s597_s5, [#allocation4]  }
 0x296   :  { %469 = dma.done.wait [#allocation4], 32  }
 0x297   :  { %470 = vsyncadd [#allocation4], 4294967264 }
 0x298   :  { %288 = vsyncpa [#allocation3], 1 }
 0x299   :  { %289 = vsyncpa [#allocation6], 1 }
 0x29a   :  { %290 = vsyncpa [#allocation9], 1 }
 0x29b   :  { %291 = vsyncpa [#allocation4], 1 }

// kernel: evo_vit_forward.13
= control target key start
LH: loop header
LB: loop body
LE: loop exit
PB: predicated region body
PF: predicated region fallthrough
CT: control target
= control target key end

     0   :  { %s4293_s0 = inlined_call_operand.hbm [shape: f32[2,9,32], index: 0, kind: input, shape index: {}, may-alias: {0,13}]   ;;  %s4294_s1 = inlined_call_operand.hbm [shape: f32[1,32], index: 1, kind: input, shape index: {}]   ;;  %s4295_s2 = inlined_call_operand.hbm [shape: f32[1,32], index: 2, kind: input, shape index: {}]   ;;  %s4296_s3 = inlined_call_operand.hbm [shape: bf16[32,96], index: 3, kind: input, shape index: {}]   ;;  %s4297_s4 = inlined_call_operand.hbm [shape: f32[1,96], index: 4, kind: input, shape index: {}]   ;;  %s4298_s5 = inlined_call_operand.hbm [shape: bf16[32,32], index: 5, kind: input, shape index: {}]   ;;  %s4299_s6 = inlined_call_operand.hbm [shape: f32[1,32], index: 6, kind: input, shape index: {}]   ;;  %s4300_s7 = inlined_call_operand.hbm [shape: f32[1,32], index: 7, kind: input, shape index: {}]   ;;  %s4301_s8 = inlined_call_operand.hbm [shape: f32[1,32], index: 8, kind: input, shape index: {}]   ;;  %s4302_s9 = inlined_call_operand.hbm [shape: bf16[32,128], index: 9, kind: input, shape index: {}]   ;;  %s4303_s10 = inlined_call_operand.hbm [shape: f32[1,128], index: 10, kind: input, shape index: {}]   ;;  %s4304_s11 = inlined_call_operand.hbm [shape: bf16[128,32], index: 11, kind: input, shape index: {}]   ;;  %s4305_s12 = inlined_call_operand.hbm [shape: f32[1,32], index: 12, kind: input, shape index: {}]   ;;  %s4306_s13 = inlined_call_operand.hbm [shape: f32[2,9,32], index: 13, kind: output, shape index: {0}, may-alias: {0,13}]   ;;  %s4307_s14 = inlined_call_operand.hbm [shape: f32[2,1,128], index: 14, kind: output, shape index: {1}]  }
   0x1   :  { %4321 = sst [smem:[#allocation37_spill]] %s4293_s0 }
   0x2   :  { %4322 = sst [smem:[#allocation38_spill]] %s4294_s1 }
   0x3   :  { %4323 = sst [smem:[#allocation39_spill]] %s4295_s2 }
   0x4   :  { %4324 = sst [smem:[#allocation40_spill]] %s4296_s3 }
   0x5   :  { %4325 = sst [smem:[#allocation41_spill]] %s4306_s13 }
   0x6   :  { %4326 = sst [smem:[#allocation42_spill]] %s4307_s14 }
   0x7   :  { %20 = vsyncpa [#allocation3], 0 }
   0x8   :  { %22 = vsyncpa [#allocation3 + $0x1], 0 }
   0x9   :  { %23 = vsyncpa [#allocation6], 0 }
   0xa   :  { %24 = vsyncpa [#allocation9], 0 }
   0xb   :  { %25 = vsyncpa [#allocation12], 0 }
   0xc   :  { %26 = vsyncpa [#allocation15], 0 }
   0xd   :  { %27 = vsyncpa [#allocation18], 0 }
   0xe   :  { %28 = vsyncpa [#allocation21], 0 }
   0xf   :  { %29 = vsyncpa [#allocation4], 0 }
  0x10   :  { %31 = vsyncpa [#allocation4 + $0x1], 0 }
  0x11   :  { %32 = vsyncpa [#allocation25], 0 }
  0x12   :  { %34 = vsyncpa [#allocation25 + $0x1], 0  ;;  %s3599_s29 = smov 0   ;;  %s3601_s30 = smov 0  }
  0x13   :  { %s3603_s15 = smov 0   ;;  %s3605_s16 = smov 0  }
  0x14 LB: > { %s3483_s17 = smov [#allocation5]   ;;  %s3620_s19 = sadd.s32 4294967295, %s3481_s16   ;;  %s3481_s16 = sphi %s3605_s16, %s4368_s16   ;;  %s3477_s15 = sphi %s3603_s15, %s4367_s15   ;;  %s3473_s30 = sphi %s3601_s30, %s4366_s30   ;;  %s3469_s29 = sphi %s3599_s29, %s4365_s29  }
  0x15   : > { %s388_s18 = sshll.u32 %s3483_s17, 4  ;;  %4327 = sst [smem:[#allocation35_spill]] %s3620_s19  ;;  %s3625_s18 = int_to_ptr.vmem [resolvable:$true] %s388_s18 }
  0x16   : > { %p2528_p0 = scmp.ge.s32.totalorder %s3481_s16, 1  ;;  %p4315_p1 = scmp.eq.s32.totalorder %s3620_s19, 0 }
  0x17   : > { %p375_p2 = scmp.lt.s32.totalorder %s3481_s16, 3  ;;  %s3484_s21 = smov [#allocation8]  }
  0x18   : > { %s409_s22 = sshll.u32 %s3484_s21, 4  ;;  %s3485_s24 = smov [#allocation11]   ;;  %s3634_s22 = int_to_ptr.vmem [resolvable:$true] %s409_s22 }
  0x19   : > { %p3627_p3 = pnand %p2528_p0, %p375_p2  ;;  %s433_s25 = sshll.u32 %s3485_s24, 4  ;;  %s3642_s25 = int_to_ptr.vmem [resolvable:$true] %s433_s25 }
  0x1a   : > { %s4331_s1 = sld [smem:[#allocation38_spill]] }
  0x1b   : > { %s4328_s20 = scalar_select %p3627_p3, 1, 0 }
  0x1c   : > { %p2785_p5 = pneg %p3627_p3 }
  0x1d   : > { %4329 = sst [smem:[#allocation36_spill]] %s4328_s20 }
  0x1e   : > { %p3638_p6 = pnand %p2785_p5, %p4315_p1 }
  0x20   : > { %s2993_s28 = scalar_lea.hbm %s4331_s1, 16  ;;  %p3652_p8 = pneg %p3638_p6 }
  0x21   : > { %p2994_p7 = scmp.ne.s32.totalorder %s4331_s1, %s2993_s28  ;;  %p3000_p11 = scmp.lt.u32.totalorder %s2993_s28, %s4331_s1 }
  0x23   : > { %p2996_p9 = pnand %p3652_p8, %p2994_p7 }
  0x25   : > { %p2997_p10 = pneg %p2996_p9 }
  0x27   : > { %p3002_p12 = pnand %p3000_p11, %p2997_p10 }
  0x29   : > { %3005 = shalt.err (!%p3002_p12)
}
  0x2a   : > { %s3006_s13 = scalar_lea.vmem %s3625_s18, 16  ;;  %s3013_s26 = scalar_lea.vmem %s3625_s18, 32 }
  0x2b   : > { %p3007_p13 = scmp.ne.s32.totalorder %s3625_s18, %s3006_s13  ;;  %p3014_p5 = scmp.lt.s32.totalorder %s3625_s18, %s3625_s18 }
  0x2c   : > { %p3015_p7 = scmp.lt.s32.totalorder %s3013_s26, %s3006_s13 }
  0x2d   : > { %p3009_p0 = pnand %p3007_p13, %p3652_p8 }
  0x2e   : > { %p3016_p9 = por %p3015_p7, %p3014_p5 }
  0x2f   : > { %p3010_p2 = pneg %p3009_p0 }
  0x31   : > { %p3017_p4 = pnand %p3016_p9, %p3010_p2 }
  0x33   : > { %3020 = shalt.err (!%p3017_p4)
}
  0x34   : > { %2788 = dma.hbm_to_vmem [thread:$0]  (!%p3638_p6), %s4331_s1, 16, %s3625_s18, [#allocation6]  }
  0x35   : > { %s4333_s3 = sld [smem:[#allocation40_spill]] }
  0x3b   : > { %s3021_s24 = scalar_lea.hbm %s4333_s3, 256 }
  0x3c   : > { %p3022_p10 = scmp.ne.s32.totalorder %s4333_s3, %s3021_s24  ;;  %p3028_p4 = scmp.lt.u32.totalorder %s3021_s24, %s4333_s3 }
  0x3e   : > { %p3024_p11 = pnand %p3022_p10, %p3652_p8 }
  0x40   : > { %p3025_p12 = pneg %p3024_p11 }
  0x42   : > { %p3030_p13 = pnand %p3028_p4, %p3025_p12 }
  0x44   : > { %3033 = shalt.err (!%p3030_p13)
}
  0x45   : > { %s3034_s18 = scalar_lea.vmem %s3634_s22, 256  ;;  %p3042_p7 = scmp.lt.s32.totalorder %s3634_s22, %s3634_s22 }
  0x46   : > { %p3035_p0 = scmp.ne.s32.totalorder %s3634_s22, %s3034_s18  ;;  %p3043_p9 = scmp.lt.s32.totalorder %s3034_s18, %s3034_s18 }
  0x48   : > { %p3037_p2 = pnand %p3035_p0, %p3652_p8  ;;  %p3044_p10 = por %p3043_p9, %p3042_p7 }
  0x4a   : > { %p3038_p5 = pneg %p3037_p2 }
  0x4c   : > { %p3045_p11 = pnand %p3044_p10, %p3038_p5 }
  0x4e   : > { %3048 = shalt.err (!%p3045_p11)
}
  0x4f   : > { %s3486_s0 = smov 64   ;;  %s3487_s20 = smov 4  }
  0x50   : > { %2794 = dma.hbm_to_vmem [thread:$0]  (!%p3638_p6), %s4333_s3, 256, %s3634_s22, [#allocation9], %s3486_s0, %s3486_s0, %s3487_s20  }
  0x51   : > { %s3049_s24 = scalar_lea.hbm %s4298_s5, 256 }
  0x52   : > { %p3050_p12 = scmp.ne.s32.totalorder %s4298_s5, %s3049_s24  ;;  %p3056_p0 = scmp.lt.u32.totalorder %s3049_s24, %s4298_s5 }
  0x54   : > { %p3052_p4 = pnand %p3050_p12, %p3652_p8 }
  0x56   : > { %p3053_p13 = pneg %p3052_p4 }
  0x58   : > { %p3058_p2 = pnand %p3056_p0, %p3053_p13 }
  0x5a   : > { %3061 = shalt.err (!%p3058_p2)
}
  0x5b   : > { %s3062_s22 = scalar_lea.vmem %s3642_s25, 256  ;;  %p3070_p10 = scmp.lt.s32.totalorder %s3642_s25, %s3642_s25 }
  0x5c   : > { %p3063_p5 = scmp.ne.s32.totalorder %s3642_s25, %s3062_s22  ;;  %p3071_p11 = scmp.lt.s32.totalorder %s3062_s22, %s3062_s22 }
  0x5e   : > { %p3065_p7 = pnand %p3063_p5, %p3652_p8  ;;  %p3072_p12 = por %p3071_p11, %p3070_p10 }
  0x60   : > { %p3066_p9 = pneg %p3065_p7 }
  0x62   : > { %p3073_p4 = pnand %p3072_p12, %p3066_p9 }
  0x64   : > { %3076 = shalt.err (!%p3073_p4)
}
  0x65   : > { %2800 = dma.hbm_to_vmem [thread:$0]  (!%p3638_p6), %s4298_s5, 256, %s3642_s25, [#allocation12], %s3486_s0, %s3486_s0, %s3487_s20  }
  0x66   : > { %s3488_s27 = smov [#allocation14]   ;;  %s3489_s17 = smov [#allocation17]  }
  0x67   : > { %s458_s28 = sshll.u32 %s3488_s27, 4  ;;  %s479_s24 = sshll.u32 %s3489_s17, 4  ;;  %s459_s28 = int_to_ptr.vmem [resolvable:$true] %s458_s28  ;;  %s480_s24 = int_to_ptr.vmem [resolvable:$true] %s479_s24 }
  0x68   : > { %s3077_s18 = scalar_lea.hbm %s4300_s7, 16 }
  0x69   : > { %p3078_p13 = scmp.ne.s32.totalorder %s4300_s7, %s3077_s18  ;;  %p3084_p5 = scmp.lt.u32.totalorder %s3077_s18, %s4300_s7 }
  0x6b   : > { %p3080_p0 = pnand %p3078_p13, %p3652_p8 }
  0x6d   : > { %p3081_p2 = pneg %p3080_p0 }
  0x6f   : > { %p3086_p7 = pnand %p3084_p5, %p3081_p2 }
  0x71   : > { %3089 = shalt.err (!%p3086_p7)
}
  0x72   : > { %s3090_s25 = scalar_lea.vmem %s459_s28, 16  ;;  %s3097_s14 = scalar_lea.vmem %s459_s28, 32 }
  0x73   : > { %p3091_p9 = scmp.ne.s32.totalorder %s459_s28, %s3090_s25  ;;  %p3098_p12 = scmp.lt.s32.totalorder %s459_s28, %s459_s28 }
  0x74   : > { %p3099_p4 = scmp.lt.s32.totalorder %s3097_s14, %s3090_s25 }
  0x75   : > { %p3093_p10 = pnand %p3091_p9, %p3652_p8 }
  0x76   : > { %p3100_p1 = por %p3099_p4, %p3098_p12 }
  0x77   : > { %p3094_p11 = pneg %p3093_p10 }
  0x79   : > { %p3101_p3 = pnand %p3100_p1, %p3094_p11 }
  0x7b   : > { %3104 = shalt.err (!%p3101_p3)
}
  0x7c   : > { %2806 = dma.hbm_to_vmem [thread:$0]  (!%p3638_p6), %s4300_s7, 16, %s459_s28, [#allocation15]  }
  0x7d   : > { %s3105_s13 = scalar_lea.hbm %s4302_s9, 256 }
  0x7e   : > { %p3106_p13 = scmp.ne.s32.totalorder %s4302_s9, %s3105_s13  ;;  %p3112_p3 = scmp.lt.u32.totalorder %s3105_s13, %s4302_s9 }
  0x80   : > { %p3108_p0 = pnand %p3106_p13, %p3652_p8 }
  0x82   : > { %p3109_p1 = pneg %p3108_p0 }
  0x84   : > { %p3114_p2 = pnand %p3112_p3, %p3109_p1 }
  0x86   : > { %3117 = shalt.err (!%p3114_p2)
}
  0x87   : > { %s3118_s25 = scalar_lea.vmem %s480_s24, 256  ;;  %p3126_p10 = scmp.lt.s32.totalorder %s480_s24, %s480_s24 }
  0x88   : > { %p3119_p5 = scmp.ne.s32.totalorder %s480_s24, %s3118_s25  ;;  %p3127_p11 = scmp.lt.s32.totalorder %s3118_s25, %s3118_s25 }
  0x8a   : > { %p3121_p7 = pnand %p3119_p5, %p3652_p8  ;;  %p3128_p12 = por %p3127_p11, %p3126_p10 }
  0x8c   : > { %p3122_p9 = pneg %p3121_p7 }
  0x8e   : > { %p3129_p4 = pnand %p3128_p12, %p3122_p9 }
  0x90   : > { %3132 = shalt.err (!%p3129_p4)
}
  0x91   : > { %2812 = dma.hbm_to_vmem [thread:$0]  (!%p3638_p6), %s4302_s9, 256, %s480_s24, [#allocation18], %s3486_s0, %s3486_s0, %s3487_s20  }
  0x92   : > { %s3490_s3 = smov [#allocation20]   ;;  %s3491_s19 = smov [#allocation7]  }
  0x93   : > { %s503_s27 = sshll.u32 %s3490_s3, 4  ;;  %s399_s17 = sshll.u32 %s3491_s19, 4  ;;  %s504_s27 = int_to_ptr.vmem [resolvable:$true] %s503_s27  ;;  %s400_s17 = int_to_ptr.vmem [resolvable:$true] %s399_s17 }
  0x94   : > { %s3133_s18 = scalar_lea.hbm %s4304_s11, 1024 }
  0x95   : > { %p3134_p13 = scmp.ne.s32.totalorder %s4304_s11, %s3133_s18  ;;  %p3140_p3 = scmp.lt.u32.totalorder %s3133_s18, %s4304_s11 }
  0x97   : > { %p3136_p0 = pnand %p3134_p13, %p3652_p8 }
  0x99   : > { %p3137_p1 = pneg %p3136_p0 }
  0x9b   : > { %p3142_p2 = pnand %p3140_p3, %p3137_p1 }
  0x9d   : > { %3145 = shalt.err (!%p3142_p2)
}
  0x9e   : > { %s3146_s24 = scalar_lea.vmem %s504_s27, 1024  ;;  %p3154_p10 = scmp.lt.s32.totalorder %s504_s27, %s504_s27 }
  0x9f   : > { %p3147_p5 = scmp.ne.s32.totalorder %s504_s27, %s3146_s24  ;;  %p3155_p11 = scmp.lt.s32.totalorder %s3146_s24, %s3146_s24 }
  0xa1   : > { %p3149_p7 = pnand %p3147_p5, %p3652_p8  ;;  %p3156_p12 = por %p3155_p11, %p3154_p10 }
  0xa3   : > { %p3150_p9 = pneg %p3149_p7 }
  0xa5   : > { %p3157_p4 = pnand %p3156_p12, %p3150_p9 }
  0xa7   : > { %3160 = shalt.err (!%p3157_p4)
}
  0xa8   : > { %2818 = dma.hbm_to_vmem [thread:$0]  (!%p3638_p6), %s4304_s11, 1024, %s504_s27, [#allocation21], %s3486_s0, %s3486_s0, %s3487_s20  }
  0xa9   : > { %s4334_s2 = sld [smem:[#allocation39_spill]] }
  0xaf   : > { %s3161_s26 = scalar_lea.hbm %s4334_s2, 16 }
  0xb0   : > { %p3162_p13 = scmp.ne.s32.totalorder %s4334_s2, %s3161_s26  ;;  %p3168_p3 = scmp.lt.u32.totalorder %s3161_s26, %s4334_s2 }
  0xb2   : > { %p3164_p0 = pnand %p3162_p13, %p3652_p8 }
  0xb4   : > { %p3165_p1 = pneg %p3164_p0 }
  0xb6   : > { %p3170_p2 = pnand %p3168_p3, %p3165_p1 }
  0xb8   : > { %3173 = shalt.err (!%p3170_p2)
}
  0xb9   : > { %s3174_s28 = scalar_lea.vmem %s400_s17, 16  ;;  %s3181_s0 = scalar_lea.vmem %s400_s17, 32 }
  0xba   : > { %p3175_p5 = scmp.ne.s32.totalorder %s400_s17, %s3174_s28  ;;  %p3182_p10 = scmp.lt.s32.totalorder %s400_s17, %s400_s17 }
  0xbb   : > { %p3183_p11 = scmp.lt.s32.totalorder %s3181_s0, %s3174_s28 }
  0xbc   : > { %p3177_p7 = pnand %p3175_p5, %p3652_p8 }
  0xbd   : > { %p3184_p12 = por %p3183_p11, %p3182_p10 }
  0xbe   : > { %p3178_p9 = pneg %p3177_p7 }
  0xc0   : > { %p3185_p4 = pnand %p3184_p12, %p3178_p9 }
  0xc2   : > { %3188 = shalt.err (!%p3185_p4)
}
  0xc3   : > { %2791 = dma.hbm_to_vmem [thread:$0]  (!%p3638_p6), %s4334_s2, 16, %s400_s17, [#allocation6]  }
  0xc4   : > { %s3492_s24 = smov [#allocation10]   ;;  %s3493_s3 = smov [#allocation13]  }
  0xc5   : > { %s423_s14 = sshll.u32 %s3492_s24, 4  ;;  %s447_s19 = sshll.u32 %s3493_s3, 4  ;;  %s424_s14 = int_to_ptr.vmem [resolvable:$true] %s423_s14  ;;  %s448_s19 = int_to_ptr.vmem [resolvable:$true] %s447_s19 }
  0xc6   : > { %s3189_s18 = scalar_lea.hbm %s4297_s4, 16 }
  0xc7   : > { %p3190_p13 = scmp.ne.s32.totalorder %s4297_s4, %s3189_s18  ;;  %p3196_p3 = scmp.lt.u32.totalorder %s3189_s18, %s4297_s4 }
  0xc9   : > { %p3192_p0 = pnand %p3190_p13, %p3652_p8 }
  0xcb   : > { %p3193_p1 = pneg %p3192_p0 }
  0xcd   : > { %p3198_p2 = pnand %p3196_p3, %p3193_p1 }
  0xcf   : > { %3201 = shalt.err (!%p3198_p2)
}
  0xd0   : > { %s3202_s17 = scalar_lea.vmem %s424_s14, 16  ;;  %s3209_s0 = scalar_lea.vmem %s424_s14, 32 }
  0xd1   : > { %p3203_p5 = scmp.ne.s32.totalorder %s424_s14, %s3202_s17  ;;  %p3210_p10 = scmp.lt.s32.totalorder %s424_s14, %s424_s14 }
  0xd2   : > { %p3211_p11 = scmp.lt.s32.totalorder %s3209_s0, %s3202_s17 }
  0xd3   : > { %p3205_p7 = pnand %p3203_p5, %p3652_p8 }
  0xd4   : > { %p3212_p12 = por %p3211_p11, %p3210_p10 }
  0xd5   : > { %p3206_p9 = pneg %p3205_p7 }
  0xd7   : > { %p3213_p4 = pnand %p3212_p12, %p3206_p9 }
  0xd9   : > { %3216 = shalt.err (!%p3213_p4)
}
  0xda   : > { %2797 = dma.hbm_to_vmem [thread:$0]  (!%p3638_p6), %s4297_s4, 16, %s424_s14, [#allocation9]  }
  0xdb   : > { %s3217_s13 = scalar_lea.hbm %s4299_s6, 16 }
  0xdc   : > { %p3218_p13 = scmp.ne.s32.totalorder %s4299_s6, %s3217_s13  ;;  %p3224_p3 = scmp.lt.u32.totalorder %s3217_s13, %s4299_s6 }
  0xde   : > { %p3220_p0 = pnand %p3218_p13, %p3652_p8 }
  0xe0   : > { %p3221_p1 = pneg %p3220_p0 }
  0xe2   : > { %p3226_p2 = pnand %p3224_p3, %p3221_p1 }
  0xe4   : > { %3229 = shalt.err (!%p3226_p2)
}
  0xe5   : > { %s3230_s25 = scalar_lea.vmem %s448_s19, 16  ;;  %s3237_s14 = scalar_lea.vmem %s448_s19, 32 }
  0xe6   : > { %p3231_p5 = scmp.ne.s32.totalorder %s448_s19, %s3230_s25  ;;  %p3238_p10 = scmp.lt.s32.totalorder %s448_s19, %s448_s19 }
  0xe7   : > { %p3239_p11 = scmp.lt.s32.totalorder %s3237_s14, %s3230_s25 }
  0xe8   : > { %p3233_p7 = pnand %p3231_p5, %p3652_p8 }
  0xe9   : > { %p3240_p12 = por %p3239_p11, %p3238_p10 }
  0xea   : > { %p3234_p9 = pneg %p3233_p7 }
  0xec   : > { %p3241_p4 = pnand %p3240_p12, %p3234_p9 }
  0xee   : > { %3244 = shalt.err (!%p3241_p4)
}
  0xef   : > { %2803 = dma.hbm_to_vmem [thread:$0]  (!%p3638_p6), %s4299_s6, 16, %s448_s19, [#allocation12]  }
  0xf0   : > { %s3494_s0 = smov [#allocation16]   ;;  %s3495_s27 = smov [#allocation19]  }
  0xf1   : > { %s469_s20 = sshll.u32 %s3494_s0, 4  ;;  %s493_s24 = sshll.u32 %s3495_s27, 4  ;;  %s470_s20 = int_to_ptr.vmem [resolvable:$true] %s469_s20  ;;  %s494_s24 = int_to_ptr.vmem [resolvable:$true] %s493_s24 }
  0xf2   : > { %s3245_s26 = scalar_lea.hbm %s4301_s8, 16 }
  0xf3   : > { %p3246_p13 = scmp.ne.s32.totalorder %s4301_s8, %s3245_s26  ;;  %p3252_p3 = scmp.lt.u32.totalorder %s3245_s26, %s4301_s8 }
  0xf5   : > { %p3248_p0 = pnand %p3246_p13, %p3652_p8 }
  0xf7   : > { %p3249_p1 = pneg %p3248_p0 }
  0xf9   : > { %p3254_p2 = pnand %p3252_p3, %p3249_p1 }
  0xfb   : > { %3257 = shalt.err (!%p3254_p2)
}
  0xfc   : > { %s3258_s19 = scalar_lea.vmem %s470_s20, 16  ;;  %s3265_s14 = scalar_lea.vmem %s470_s20, 32 }
  0xfd   : > { %p3259_p5 = scmp.ne.s32.totalorder %s470_s20, %s3258_s19  ;;  %p3266_p10 = scmp.lt.s32.totalorder %s470_s20, %s470_s20 }
  0xfe   : > { %p3267_p11 = scmp.lt.s32.totalorder %s3265_s14, %s3258_s19 }
  0xff   : > { %p3261_p7 = pnand %p3259_p5, %p3652_p8 }
 0x100   : > { %p3268_p12 = por %p3267_p11, %p3266_p10 }
 0x101   : > { %p3262_p9 = pneg %p3261_p7 }
 0x103   : > { %p3269_p4 = pnand %p3268_p12, %p3262_p9 }
 0x105   : > { %3272 = shalt.err (!%p3269_p4)
}
 0x106   : > { %2809 = dma.hbm_to_vmem [thread:$0]  (!%p3638_p6), %s4301_s8, 16, %s470_s20, [#allocation15]  }
 0x107   : > { %s3273_s3 = scalar_lea.hbm %s4303_s10, 16 }
 0x108   : > { %p3274_p13 = scmp.ne.s32.totalorder %s4303_s10, %s3273_s3  ;;  %p3280_p3 = scmp.lt.u32.totalorder %s3273_s3, %s4303_s10 }
 0x10a   : > { %p3276_p0 = pnand %p3274_p13, %p3652_p8 }
 0x10c   : > { %p3277_p1 = pneg %p3276_p0 }
 0x10e   : > { %p3282_p2 = pnand %p3280_p3, %p3277_p1 }
 0x110   : > { %3285 = shalt.err (!%p3282_p2)
}
 0x111   : > { %s3286_s1 = scalar_lea.vmem %s494_s24, 16  ;;  %s3293_s20 = scalar_lea.vmem %s494_s24, 32 }
 0x112   : > { %p3287_p5 = scmp.ne.s32.totalorder %s494_s24, %s3286_s1  ;;  %p3294_p10 = scmp.lt.s32.totalorder %s494_s24, %s494_s24 }
 0x113   : > { %p3295_p11 = scmp.lt.s32.totalorder %s3293_s20, %s3286_s1 }
 0x114   : > { %p3289_p7 = pnand %p3287_p5, %p3652_p8 }
 0x115   : > { %p3296_p12 = por %p3295_p11, %p3294_p10 }
 0x116   : > { %p3290_p9 = pneg %p3289_p7 }
 0x118   : > { %p3297_p4 = pnand %p3296_p12, %p3290_p9 }
 0x11a   : > { %3300 = shalt.err (!%p3297_p4)
}
 0x11b   : > { %2815 = dma.hbm_to_vmem [thread:$0]  (!%p3638_p6), %s4303_s10, 16, %s494_s24, [#allocation18]  }
 0x11c   : > { %s3496_s14 = smov [#allocation22]   ;;  %s3301_s27 = scalar_lea.hbm %s4305_s12, 16 }
 0x11d   : > { %s517_s28 = sshll.u32 %s3496_s14, 4  ;;  %p3302_p13 = scmp.ne.s32.totalorder %s4305_s12, %s3301_s27  ;;  %s518_s28 = int_to_ptr.vmem [resolvable:$true] %s517_s28 }
 0x11e   : > { %p3308_p3 = scmp.lt.u32.totalorder %s3301_s27, %s4305_s12 }
 0x11f   : > { %p3304_p0 = pnand %p3302_p13, %p3652_p8 }
 0x121   : > { %p3305_p1 = pneg %p3304_p0 }
 0x123   : > { %p3310_p2 = pnand %p3308_p3, %p3305_p1 }
 0x125   : > { %3313 = shalt.err (!%p3310_p2)
}
 0x126   : > { %s3314_s24 = scalar_lea.vmem %s518_s28, 16  ;;  %s3321_s22 = scalar_lea.vmem %s518_s28, 32 }
 0x127   : > { %p3315_p5 = scmp.ne.s32.totalorder %s518_s28, %s3314_s24  ;;  %p3322_p10 = scmp.lt.s32.totalorder %s518_s28, %s518_s28 }
 0x128   : > { %p3323_p11 = scmp.lt.s32.totalorder %s3321_s22, %s3314_s24 }
 0x129   : > { %p3317_p7 = pnand %p3315_p5, %p3652_p8 }
 0x12a   : > { %p3324_p12 = por %p3323_p11, %p3322_p10 }
 0x12b   : > { %p3318_p9 = pneg %p3317_p7 }
 0x12d   : > { %p3325_p4 = pnand %p3324_p12, %p3318_p9 }
 0x12f   : > { %3328 = shalt.err (!%p3325_p4)
}
 0x130   : > { %s4335_s21 = sld [smem:[#allocation35_spill]]  ;;  %s2527_s25 = sadd.s32 4294967294, %s3481_s16  }
 0x131   : > { %2821 = dma.hbm_to_vmem [thread:$0]  (!%p3638_p6), %s4305_s12, 16, %s518_s28, [#allocation21]  }
 0x132   : > { %s3896_s23 = sadd.s32 1, %s3481_s16   ;;  %s47_s14 = sadd.s32 1, %s3477_s15 }
 0x133   : > { %s44_s19 = ssub.s32 %s3481_s16, %s3896_s23  ;;  %p54_p13 = scmp.ne.s32.totalorder %s3477_s15, %s3473_s30 }
 0x134   : > { %p45_p8 = scmp.eq.s32.totalorder %s44_s19, 0  ;;  %p55_p0 = scmp.eq.s32.totalorder %s3481_s16, 0 }
 0x135   : > { %p60_p1 = scmp.ne.s32.totalorder %s3473_s30, %s3469_s29  ;;  %p342_p7 = scmp.eq.s32.totalorder %s2527_s25, 1 }
 0x136   : > { %s3907_s17 = scalar_select %p45_p8, %s3477_s15, %s47_s14  }
 0x137   : > { %p3909_p3 = por %p55_p0, %p54_p13  ;;  %p4337_p2 = scmp.eq.s32.totalorder %s4335_s21, 0 }
 0x138   : > { %p336_p5 = scmp.eq.s32.totalorder %s4335_s21, 1  ;;  %p2845_p9 = scmp.lt.s32.totalorder %s3481_s16, 2 }
 0x139   : > { %p3915_p6 = por %p4337_p2, %p60_p1  ;;  %s528_s27 = sand.u32 1, %s3477_s15  }
 0x13a   : > { %p3922_p10 = por %p336_p5, %p54_p13  ;;  %p3926_p11 = por %p342_p7, %p60_p1 }
 0x13b   : > { %s2542_s26 = sshll.u32 %s528_s27, 4  ;;  %s2603_s18 = sshll.u32 %s3481_s16, 8 }
 0x13c   : > { %s4339_s3 = scalar_select %p3922_p10, 1, 0 }
 0x13d   : > { %s4340_s13 = scalar_select %p3926_p11, 1, 0 }
 0x13e   : > { %s4341_s1 = sld [smem:[#allocation37_spill]]  ;;  %s532_s21 = scalar_lea.vmem [#allocation2], %s2542_s26 }
 0x13f   : > { %s539_s25 = sshll.u32 %s532_s21, 4  ;;  %p3940_p12 = pnand %p2845_p9, %p3909_p3  ;;  %s3936_s25 = int_to_ptr.vmem [resolvable:$true] %s539_s25 }
 0x140   : > { %s3944_s14 = scalar_lea.sflag [#allocation3], %s528_s27 }
 0x141   : > { %p3331_p8 = pneg %p3940_p12 }
 0x144   : > { %s3934_s20 = scalar_lea.hbm %s4341_s1, %s2603_s18  ;;  %s3334_s0 = scalar_lea.hbm %s4341_s1, 512 }
 0x145   : > { %s3329_s24 = scalar_lea.hbm %s3934_s20, 256  ;;  %p3335_p1 = scmp.lt.u32.totalorder %s3934_s20, %s4341_s1 }
 0x146   : > { %p3330_p4 = scmp.ne.s32.totalorder %s3934_s20, %s3329_s24  ;;  %p3336_p3 = scmp.lt.u32.totalorder %s3334_s0, %s3329_s24 }
 0x147   : > { %p3338_p5 = scmp.lt.u32.totalorder %s3329_s24, %s3934_s20 }
 0x148   : > { %p3332_p13 = pnand %p3331_p8, %p3330_p4  ;;  %p3337_p2 = por %p3336_p3, %p3335_p1 }
 0x14a   : > { %p3333_p0 = pneg %p3332_p13  ;;  %p3339_p7 = por %p3338_p5, %p3337_p2 }
 0x14c   : > { %p3340_p9 = pnand %p3339_p7, %p3333_p0 }
 0x14e   : > { %3343 = shalt.err (!%p3340_p9)
}
 0x14f   : > { %s3344_s27 = scalar_lea.vmem %s3936_s25, 256  ;;  %s3497_s26 = smov [#allocation2]  }
 0x150   : > { %p3345_p4 = scmp.ne.s32.totalorder %s3936_s25, %s3344_s27  ;;  %s3349_s18 = sshll.u32 %s3497_s26, 4  ;;  %s3350_s18 = int_to_ptr.vmem [resolvable:$false] %s3349_s18 }
 0x151   : > { %s3351_s22 = scalar_lea.vmem %s3350_s18, 512  ;;  %p3352_p10 = scmp.lt.s32.totalorder %s3936_s25, %s3350_s18 }
 0x152   : > { %p3347_p13 = pnand %p3345_p4, %p3331_p8  ;;  %p3353_p1 = scmp.lt.s32.totalorder %s3351_s22, %s3344_s27 }
 0x154   : > { %p3348_p11 = pneg %p3347_p13  ;;  %p3354_p3 = por %p3353_p1, %p3352_p10 }
 0x156   : > { %p3355_p2 = pnand %p3354_p3, %p3348_p11 }
 0x158   : > { %3358 = shalt.err (!%p3355_p2)
}
 0x159   : > { %s3498_s24 = smov 128   ;;  %s3499_s0 = smov 8  }
 0x15a   : > { %2825 = dma.hbm_to_vmem [thread:$0]  (!%p3940_p12), %s3934_s20, 256, %s3936_s25, %s3944_s14, %s3498_s24, %s3498_s24, %s3499_s0  }
 0x15b   : > { %s4343_s21 = sld [smem:[#allocation36_spill]] }
 0x161   : > { %p4344_p8 = scmp.ne.s32.totalorder %s4343_s21, 0 }
 0x162   : > { %s3975_s26 = sand.u32 (!%p4344_p8), 1, %s3473_s30  }
 0x163   : > { %551 = sbr.rel (%p4344_p8) target bundleno = 3035 (0xbdb), region = 72  ;;  %s4318_s27 = sshll.u32 (!%p4344_p8), %s3975_s26, 4 }
 0x164   : > { %s554_s18 = scalar_lea.sflag (!%p4344_p8), [#allocation3], %s3975_s26  ;;  %s3981_s22 = scalar_lea.vmem (!%p4344_p8), [#allocation2], %s4318_s27 }
 0x16a   : > { %3432 = dma.done.wait (%p3915_p6), %s554_s18, 256  }
 0x16b   : > { %3434 = vsyncadd (%p3915_p6), %s554_s18, 4294967040  ;;  %s4345_s20 = sld [smem:[#allocation35_spill]] }
 0x171   : > { %p4346_p10 = scmp.eq.s32.totalorder %s4345_s20, 0 }
 0x173   : > { %3436 = dma.done.wait (%p4346_p10), [#allocation6], 32   ;;  %p4347_p11 = pmov %p4346_p10 }
 0x174   : > { %p4348_p12 = pmov %p4346_p10 }
 0x175   : > { %3438 = vsyncadd (%p4347_p11), [#allocation6], 4294967264 }
 0x176   : > { %3440 = dma.done.wait (%p4348_p12), [#allocation9], 272   ;;  %p4349_p0 = pmov %p4346_p10 }
 0x178   : > { %3442 = vsyncadd (%p4349_p0), [#allocation9], 4294967024  ;;  %p4350_p5 = pmov %p4349_p0 }
 0x179   : > { %p4351_p7 = pmov %p4349_p0 }
 0x17a   : > { %3444 = dma.done.wait (%p4350_p5), [#allocation12], 272  }
 0x17b   : > { %3446 = vsyncadd (%p4351_p7), [#allocation12], 4294967024  ;;  %p4352_p6 = pmov %p4349_p0 }
 0x17c   : > { %p4353_p9 = pmov %p4349_p0 }
 0x17d   : > { %3448 = dma.done.wait (%p4352_p6), [#allocation15], 32  }
 0x17e   : > { %3450 = vsyncadd (%p4353_p9), [#allocation15], 4294967264  ;;  %p4354_p4 = pmov %p4349_p0 }
 0x17f   : > { %p4355_p13 = pmov %p4349_p0 }
 0x180   : > { %3452 = dma.done.wait (%p4354_p4), [#allocation18], 272  }
 0x181   : > { %3454 = vsyncadd (%p4355_p13), [#allocation18], 4294967024  ;;  %p4356_p1 = pmov %p4349_p0 }
 0x182   : > { %p4357_p3 = pmov %p4349_p0 }
 0x183   : > { %3456 = dma.done.wait (%p4356_p1), [#allocation21], 1040  }
 0x184   : > { %3458 = vsyncadd (%p4357_p3), [#allocation21], 4294966256  ;;  %vm693_vm0 = vcmask 261120   ;;  %vm697_vm1 = vcmask 253952   ;;  %v655_v0 = vld [vmem:[%s3981_s22] sm:$0xff]  ;;  %v3500_v15 = vmov 0.0   ;;  %v841_v46 = vlaneseq }
 0x185   : > { %v656_v1 = vld [vmem:[%s3981_s22 + $0x8] sm:$0x1]  ;;  %v694_v2 = vsel %vm693_vm0, %v655_v0, 0.0  ;;  %2639 = vmatprep.subr.bf16.mxu0 %v3500_v15  ;;  %2659 = vmatprep.subr.bf16.mxu1 %v3500_v15  ;;  %v2930_v16 = vld [vmem:[#allocation8 + $0x8] sm:$0xff]   ;;  %vm3501_vm2 = vmmov 0   ;;  %s3502_s28 = smov 112  }
 0x186   : > { %v698_v3 = vsel %vm697_vm1, %v656_v1, 0.0  ;;  %695 = vadd.xlane.f32.xlu0 %v694_v2  ;;  %v2929_v14 = vld [vmem:[#allocation8] sm:$0xff]   ;;  %2643 = vmatprep.mubr.msk.bf16.mxu0 %vm3501_vm2, %v3500_v15  ;;  %v2560_v25 = vld [vmem:[#allocation5] ss:$0 sm:$0xff]  ;;  %v2561_v29 = vld [vmem:[#allocation7] ss:$0 sm:$0xff] }
 0x187   : > { %2640 = vmatpush3.bf16.msra.mxu0 %v2929_v14  ;;  %2661 = vmatprep.mubr.msk.bf16.mxu1 %vm3501_vm2, %v3500_v15  ;;  %v2562_v34 = vld [vmem:[#allocation10] ss:$0 sm:$0xff]  ;;  %s3503_s25 = smov 120   ;;  %s3504_s19 = smov 104   ;;  %v3513_v44 = vmov 1983009808  }
 0x188   : > { %2641 = vmatprep.subr.bf16.mxu0 %v3500_v15  ;;  %s3505_s14 = smov 88   ;;  %s3506_s24 = smov 96   ;;  %v839_v45 = vunpack.c.l.s4 %v3513_v44  ;;  %v842_v50 = vshrl.u32 %v841_v46, 7  ;;  %v3514_v52 = vmov 1934713408   ;;  %vm1261_vm3 = vcmask 64512  }
 0x189   : > { %s3507_s0 = smov 72   ;;  %s3508_s21 = smov 80   ;;  %v887_v53 = vunpack.c.l.s4 %v3514_v52  ;;  %vm1555_vm4 = vcmask 1043456   ;;  %vm1556_vm5 = vcmask 1044480   ;;  %vm1450_vm6 = vcmask 72704  }
 0x18a   : > { %699 = vadd.xlane.f32.xlu0 %v698_v3  ;;  %s3509_s18 = smov 56   ;;  %s3510_s27 = smov 64   ;;  %v840_v49 = vunpack.c.0.s8 %v839_v45  ;;  %vm1454_vm7 = vcmask 65536   ;;  %vm1540_vm8 = vcmask 65544   ;;  %vm1947_vm9 = vcmask 130048  }
 0x18b   : > { %2642 = vmatpush3.bf16.msra.mxu0 %v2930_v16  ;;  %s3511_s1 = smov 40   ;;  %s3512_s2 = smov 48   ;;  %v888_v59 = vunpack.c.0.s8 %v887_v53  ;;  %vm1950_vm10 = vcmask 195584  }
 0x18c   : > { %2647 = vmatprep.subr.bf16.mxu0 %v3500_v15  ;;  %v4028_v56 = vsub.s32 %v840_v49, %v842_v50  ;;  %p4359_p8 = scmp.ne.s32.totalorder %s4339_s3, 0 }
 0x213   : > { %v696_v4 = vpop.xlane.xlu0 %695 }
 0x214   : > { %v702_v5 = vmul.f32 0.03125, %v696_v4 }
 0x216   : > { %v704_v6 = vsub.f32 %v655_v0, %v702_v5 }
 0x217   : > { %v700_v7 = vpop.xlane.xlu0 %699 }
 0x218   : > { %v703_v8 = vmul.f32 0.03125, %v700_v7  ;;  %v706_v9 = vmul.f32 %v704_v6, %v704_v6 }
 0x21a   : > { %v705_v10 = vsub.f32 %v656_v1, %v703_v8  ;;  %v708_v11 = vsel %vm693_vm0, %v706_v9, 0.0 }
 0x21b   : > { %709 = vadd.xlane.f32.xlu1 %v708_v11 }
 0x21c   : > { %v707_v12 = vmul.f32 %v705_v10, %v705_v10 }
 0x21e   : > { %v711_v13 = vsel %vm697_vm1, %v707_v12, 0.0 }
 0x21f   : > { %712 = vadd.xlane.f32.xlu1 %v711_v13 }
 0x2a8   : > { %v710_v17 = vpop.xlane.xlu1 %709 }
 0x2a9   : > { %v714_v18 = vmul.f32 0.03125, %v710_v17 }
 0x2ab   : > { %v716_v19 = vadd.f32 1e-06, %v714_v18 }
 0x2ac   : > { %v713_v20 = vpop.xlane.xlu1 %712 }
 0x2ad   : > { %2943 = vrsqrt.f32 %v716_v19  ;;  %v715_v21 = vmul.f32 0.03125, %v713_v20 }
 0x2af   : > { %v717_v22 = vadd.f32 1e-06, %v715_v21 }
 0x2b1   : > { %2945 = vrsqrt.f32 %v717_v22 }
 0x2b7   : > { %v2944_v23 = vpop.eup %2943 }
 0x2b8   : > { %v720_v24 = vmul.f32 %v2944_v23, %v704_v6  ;;  %v4033_v6 = vsub.s32 %v888_v59, %v842_v50 }
 0x2ba   : > { %v728_v28 = vmul.f32 %v2560_v25, %v720_v24 }
 0x2bb   : > { %v2946_v26 = vpop.eup %2945 }
 0x2bc   : > { %v721_v27 = vmul.f32 %v2946_v26, %v705_v10  ;;  %v736_v31 = vadd.f32 %v2561_v29, %v728_v28 }
 0x2be   : > { %v729_v30 = vmul.f32 %v2560_v25, %v721_v27 }
 0x2c0   : > { %v737_v32 = vadd.f32 %v2561_v29, %v729_v30 }
 0x2c2   : > { %v738_v33 = vpack.c.bf16 %v737_v32, %v736_v31 }
 0x2c4   : > { %2644 = vmatmul.mubr.msk.bf16.vlgmr.msra.gmra.mrb[0].mxu0 %vm693_vm0, %v738_v33 }
 0x2c5   : > { %2649 = vmatprep.mubr.msk.bf16.mxu0 %vm3501_vm2, %v3500_v15 }
 0x397   : > { %v794_v35 = vpop.f32.mrb[0].mxu0 }
 0x398   : > { %v2645_v36 = vpop.f32.mrb[1].mxu0  ;;  %v795_v38 = vadd.f32 %v2562_v34, %v794_v35 }
 0x399   : > { %v797_v37 = vpop.f32.mrb[2].mxu0 }
 0x39a   : > { %v798_v39 = vadd.f32 %v2562_v34, %v797_v37  ;;  %v2646_v40 = vpop.f32.mrb[3].mxu0 }
 0x39c   : > { %v801_v41 = vpack.c.bf16 %v798_v39, %v795_v38 }
 0x39e   : > { %806 = vrot.lane.b32.xlu1 %v801_v41, %s3502_s28  ;;  %803 = vrot.lane.b32.xlu0 %v801_v41, %s3503_s25  ;;  %s653_s28 = scalar_lea.vmem [#allocation24], %s3975_s26  ;;  %s2600_s25 = sshll.u32 %s4345_s20, 4 }
 0x3a2   : > { %809 = vrot.lane.b32.xlu1 %v801_v41, %s3504_s19  ;;  %815 = vrot.lane.b32.xlu0 %v801_v41, %s3505_s14 }
 0x3a6   : > { %812 = vrot.lane.b32.xlu1 %v801_v41, %s3506_s24  ;;  %821 = vrot.lane.b32.xlu0 %v801_v41, %s3507_s0  ;;  %s4358_s24 = sld [smem:[#allocation42_spill]] }
 0x3aa   : > { %818 = vrot.lane.b32.xlu1 %v801_v41, %s3508_s21  ;;  %827 = vrot.lane.b32.xlu0 %v801_v41, %s3509_s18  ;;  %s2315_s21 = sshll.u32 %s653_s28, 4  ;;  %s2287_s18 = scalar_lea.sflag [#allocation25], %s3975_s26  ;;  %s2316_s21 = int_to_ptr.vmem [resolvable:$true] %s2315_s21 }
 0x3ac   : > { %s4214_s0 = scalar_lea.hbm %s4358_s24, %s2600_s25 }
 0x3ae   : > { %824 = vrot.lane.b32.xlu1 %v801_v41, %s3510_s27  ;;  %833 = vrot.lane.b32.xlu0 %v801_v41, %s3511_s1  ;;  %s4320_s1 = smov 8   ;;  %s3519_s27 = smov 24  }
 0x3b2   : > { %830 = vrot.lane.b32.xlu1 %v801_v41, %s3512_s2  ;;  %s3517_s2 = smov 16  }
 0x410   : > { %v807_v42 = vpop.permute.xlu1 %806  ;;  %v804_v43 = vpop.permute.xlu0 %803 }
 0x414   : > { %v810_v47 = vpop.permute.xlu1 %809  ;;  %v816_v48 = vpop.permute.xlu0 %815 }
 0x415   : > { %v937_v57 = vcombine.low %v804_v43, %v816_v48  ;;  %v938_v63 = vcombine.high %v804_v43, %v816_v48 }
 0x417   : > { %v945_v1 = vrot.slane %v937_v57, %v4028_v56  ;;  %v952_v12 = vrot.slane %v938_v63, %v4028_v56 }
 0x418   : > { %v813_v51 = vpop.permute.xlu1 %812  ;;  %v822_v54 = vpop.permute.xlu0 %821 }
 0x419   : > { %v953_v55 = vcombine.low %v810_v47, %v822_v54  ;;  %v954_v58 = vcombine.high %v810_v47, %v822_v54  ;;  %v836_v2 = vcombine.low %v801_v41, %v813_v51  ;;  %v837_v3 = vcombine.high %v801_v41, %v813_v51 }
 0x41b   : > { %v961_v60 = vrot.slane %v953_v55, %v4028_v56  ;;  %v968_v5 = vrot.slane %v954_v58, %v4028_v56  ;;  %v844_v16 = vrot.slane %v836_v2, %v4028_v56  ;;  %v851_v17 = vrot.slane %v837_v3, %v4028_v56 }
 0x41c   : > { %v819_v61 = vpop.permute.xlu1 %818  ;;  %v828_v62 = vpop.permute.xlu0 %827 }
 0x41d   : > { %v852_v0 = vcombine.low %v807_v42, %v819_v61  ;;  %v853_v4 = vcombine.high %v807_v42, %v819_v61  ;;  %v985_v7 = vcombine.low %v945_v1, %v961_v60  ;;  %v975_v13 = vrot.slane %v828_v62, %v4028_v56 }
 0x41e   : > { %v986_v18 = vcombine.high %v945_v1, %v961_v60  ;;  %v1001_v19 = vcombine.low %v952_v12, %v968_v5 }
 0x41f   : > { %v860_v8 = vrot.slane %v852_v0, %v4028_v56  ;;  %v867_v9 = vrot.slane %v853_v4, %v4028_v56  ;;  %v993_v23 = vrot.slane %v985_v7, %v4033_v6 }
 0x420   : > { %v825_v10 = vpop.permute.xlu1 %824  ;;  %v834_v11 = vpop.permute.xlu0 %833  ;;  %v1000_v33 = vrot.slane %v986_v18, %v4033_v6  ;;  %v1008_v34 = vrot.slane %v1001_v19, %v4033_v6 }
 0x421   : > { %v983_v14 = vrot.slane %v834_v11, %v4028_v56  ;;  %v2567_v22 = vcombine.high %v828_v62, %v834_v11  ;;  %v884_v24 = vcombine.low %v844_v16, %v860_v8  ;;  %v900_v25 = vcombine.low %v851_v17, %v867_v9 }
 0x422   : > { %v885_v31 = vcombine.high %v844_v16, %v860_v8  ;;  %v874_v32 = vrot.slane %v825_v10, %v4028_v56 }
 0x423   : > { %v1009_v20 = vcombine.low %v975_v13, %v983_v14  ;;  %v1010_v21 = vcombine.high %v975_v13, %v983_v14  ;;  %v1032_v35 = vrot.slane %v2567_v22, %v4033_v6  ;;  %v907_v37 = vrot.slane %v900_v25, %v4033_v6 }
 0x424   : > { %v831_v26 = vpop.permute.xlu1 %830  ;;  %v892_v41 = vrot.slane %v884_v24, %v4033_v6  ;;  %v899_v45 = vrot.slane %v885_v31, %v4033_v6 }
 0x425   : > { %v1017_v27 = vrot.slane %v1009_v20, %v4033_v6  ;;  %v1024_v28 = vrot.slane %v1010_v21, %v4033_v6  ;;  %v882_v29 = vrot.slane %v831_v26, %v4028_v56  ;;  %v2566_v30 = vcombine.high %v825_v10, %v831_v26 }
 0x426   : > { %v1037_v49 = vcombine.low %v1008_v34, %v1032_v35 }
 0x427   : > { %v1033_v36 = vcombine.low %v993_v23, %v1017_v27  ;;  %v908_v38 = vcombine.low %v874_v32, %v882_v29  ;;  %v909_v39 = vcombine.high %v874_v32, %v882_v29  ;;  %v931_v40 = vrot.slane %v2566_v30, %v4033_v6 }
 0x428   : > { %v1034_v42 = vcombine.high %v993_v23, %v1017_v27  ;;  %v1035_v43 = vcombine.low %v1000_v33, %v1024_v28  ;;  %v1036_v44 = vcombine.high %v1000_v33, %v1024_v28  ;;  %v3515_v23 = vmov 0  }
 0x429   : > { %v916_v46 = vrot.slane %v908_v38, %v4033_v6  ;;  %v923_v47 = vrot.slane %v909_v39, %v4033_v6  ;;  %v936_v48 = vcombine.low %v907_v37, %v931_v40  ;;  %v1043_v50 = vshrl.u32 %v1033_v36, 16 }
 0x42a   : > { %v1051_v55 = vshrl.u32 %v1034_v42, 16  ;;  %v1059_v57 = vshrl.u32 %v1035_v43, 16  ;;  %v1067_v58 = vshrl.u32 %v1036_v44, 16 }
 0x42b   : > { %v932_v51 = vcombine.low %v892_v41, %v916_v46  ;;  %v933_v52 = vcombine.high %v892_v41, %v916_v46  ;;  %v934_v53 = vcombine.low %v899_v45, %v923_v47  ;;  %v935_v54 = vcombine.high %v899_v45, %v923_v47 }
 0x42c   : > { %v1072_v59 = vpack.i.b16 %v1037_v49, %v936_v48 }
 0x42d   : > { %v1040_v60 = vpack.i.b16 %v1033_v36, %v932_v51  ;;  %v1042_v61 = vshrl.u32 %v932_v51, 16  ;;  %v1048_v62 = vpack.i.b16 %v1034_v42, %v933_v52  ;;  %v1050_v63 = vshrl.u32 %v933_v52, 16 }
 0x42e   : > { %v1056_v0 = vpack.i.b16 %v1035_v43, %v934_v53  ;;  %v1058_v1 = vshrl.u32 %v934_v53, 16  ;;  %v1064_v2 = vpack.i.b16 %v1036_v44, %v935_v54  ;;  %v1066_v3 = vshrl.u32 %v935_v54, 16 }
 0x42f   : > { %v1044_v4 = vpack.i.b16 %v1043_v50, %v1042_v61  ;;  %v1052_v5 = vpack.i.b16 %v1051_v55, %v1050_v63  ;;  %v1112_v7 = vrot.slane %v1072_v59, %v4028_v56  ;;  %v1152_v32 = vcombine.high %v1072_v59, %v3515_v23 }
 0x430   : > { %v1060_v8 = vpack.i.b16 %v1059_v57, %v1058_v1  ;;  %v1068_v9 = vpack.i.b16 %v1067_v58, %v1066_v3  ;;  %v1074_v10 = vcombine.low %v1040_v60, %v1056_v0  ;;  %v1075_v11 = vcombine.high %v1040_v60, %v1056_v0 }
 0x431   : > { %v1090_v12 = vcombine.low %v1048_v62, %v1064_v2  ;;  %v1091_v13 = vcombine.high %v1048_v62, %v1064_v2  ;;  %v1137_v24 = vcombine.high %v1112_v7, %v3515_v23  ;;  %v1159_v43 = vrot.slane %v1152_v32, %v4033_v6 }
 0x432   : > { %v1089_v14 = vrot.slane %v1075_v11, %v4028_v56  ;;  %v1166_v16 = vcombine.low %v1044_v4, %v1060_v8  ;;  %v1167_v17 = vcombine.high %v1044_v4, %v1060_v8  ;;  %v1182_v18 = vcombine.low %v1052_v5, %v1068_v9 }
 0x433   : > { %v1105_v19 = vrot.slane %v1091_v13, %v4028_v56  ;;  %v1183_v20 = vcombine.high %v1052_v5, %v1068_v9  ;;  %v1082_v21 = vrot.slane %v1074_v10, %v4028_v56  ;;  %v1098_v22 = vrot.slane %v1090_v12, %v4028_v56 }
 0x434   : > { %v1174_v25 = vrot.slane %v1166_v16, %v4028_v56  ;;  %v1190_v26 = vrot.slane %v1182_v18, %v4028_v56  ;;  %v1181_v27 = vrot.slane %v1167_v17, %v4028_v56  ;;  %v1151_v35 = vrot.slane %v1137_v24, %v4033_v6 }
 0x435   : > { %v1197_v28 = vrot.slane %v1183_v20, %v4028_v56  ;;  %v1114_v29 = vcombine.high %v1082_v21, %v1098_v22  ;;  %v1129_v30 = vcombine.low %v1089_v14, %v1105_v19  ;;  %v1113_v33 = vcombine.low %v1082_v21, %v1098_v22 }
 0x436   : > { %v1199_v31 = vcombine.high %v1174_v25, %v1190_v26  ;;  %v1198_v36 = vcombine.low %v1174_v25, %v1190_v26  ;;  %v1144_v46 = vrot.slane %v1112_v7, %v4033_v6  ;;  %v3516_v57 = vmov 65535  }
 0x437   : > { %v1128_v34 = vrot.slane %v1114_v29, %v4033_v6  ;;  %v1136_v39 = vrot.slane %v1129_v30, %v4033_v6  ;;  %v1214_v40 = vcombine.low %v1181_v27, %v1197_v28  ;;  %v1121_v45 = vrot.slane %v1113_v33, %v4033_v6 }
 0x438   : > { %v1213_v37 = vrot.slane %v1199_v31, %v4033_v6  ;;  %v1206_v48 = vrot.slane %v1198_v36, %v4033_v6  ;;  %v1557_v58 = vsel %vm1555_vm4, 4294967295, %v3516_v57 }
 0x439   : > { %v1162_v38 = vcombine.low %v1128_v34, %v1151_v35  ;;  %v1163_v41 = vcombine.high %v1128_v34, %v1151_v35  ;;  %v1164_v52 = vcombine.low %v1136_v39, %v1159_v43  ;;  %v1221_v53 = vrot.slane %v1214_v40, %v4033_v6 }
 0x43a   : > { %v1223_v42 = vcombine.high %v1213_v37, %v3515_v23  ;;  %v1241_v49 = vshrl.u32 %v1213_v37, 16  ;;  %v1160_v55 = vcombine.low %v1121_v45, %v1144_v46  ;;  %v1222_v59 = vcombine.high %v1206_v48, %v3515_v23 }
 0x43b   : > { %v1239_v44 = vpack.i.b16 %v1213_v37, %v1162_v38  ;;  %v1240_v51 = vshrl.u32 %v1162_v38, 16  ;;  %v1165_v60 = vcombine.high %v1136_v39, %v1159_v43  ;;  %v1251_v62 = vpack.i.b16 %v1221_v53, %v1164_v52 }
 0x43c   : > { %v1245_v47 = vpack.i.b16 %v1223_v42, %v1163_v41  ;;  %v1224_v63 = vcombine.high %v1221_v53, %v3515_v23  ;;  %v1161_v0 = vcombine.high %v1121_v45, %v1144_v46  ;;  %v4084_v1 = vsel %vm1556_vm5, %v1557_v58, 0 }
 0x43d   : > { %v1266_v50 = vsel %vm1261_vm3, %v1239_v44, 0  ;;  %v1242_v61 = vpack.i.b16 %v1241_v49, %v1240_v51  ;;  %v1227_v2 = vpack.i.b16 %v1206_v48, %v1160_v55  ;;  %v1258_v4 = vshrl.u32 %v1165_v60, 16 }
 0x43e   : > { %2648 = vmatpush3.bf16.xpose.msra.mxu0 %v1266_v50  ;;  %v1360_v54 = vsel %vm1261_vm3, %v1245_v47, 0  ;;  %v1257_v3 = vpack.i.b16 %v1224_v63, %v1165_v60  ;;  %v1259_v5 = vshrl.u32 %v1224_v63, 16  ;;  %v1247_v7 = vshrl.u32 %v1223_v42, 16 }
 0x43f   : > { %2660 = vmatpush3.bf16.xpose.msra.mxu1 %v1360_v54  ;;  %2653 = vmatprep.subr.bf16.mxu0 %v3500_v15  ;;  %v1233_v8 = vpack.i.b16 %v1222_v59, %v1161_v0  ;;  %v1313_v9 = vsel %vm1261_vm3, %v1242_v61, 0  ;;  %v1560_v10 = vand.u32 %v4084_v1, %v1251_v62  ;;  %v1246_v13 = vshrl.u32 %v1163_v41, 16 }
 0x440   : > { %2671 = vmatprep.subr.bf16.mxu1 %v3500_v15  ;;  %v4090_v11 = vand.u32 %v4084_v1, %v1257_v3  ;;  %v4092_v12 = vpack.i.b16 %v1259_v5, %v1258_v4  ;;  %v1228_v14 = vshrl.u32 %v1160_v55, 16  ;;  %v1229_v16 = vshrl.u32 %v1206_v48, 16 }
 0x441   : > { %v1248_v18 = vpack.i.b16 %v1247_v7, %v1246_v13  ;;  %v1252_v20 = vshrl.u32 %v1164_v52, 16  ;;  %v1253_v21 = vshrl.u32 %v1221_v53, 16  ;;  %v1235_v24 = vshrl.u32 %v1222_v59, 16 }
 0x442   : > { %v1701_v17 = vand.u32 %v4084_v1, %v4092_v12  ;;  %v1230_v19 = vpack.i.b16 %v1229_v16, %v1228_v14  ;;  %v1234_v26 = vshrl.u32 %v1161_v0, 16 }
 0x443   : > { %v1407_v22 = vsel %vm1261_vm3, %v1248_v18, 0  ;;  %v1254_v25 = vpack.i.b16 %v1253_v21, %v1252_v20 }
 0x444   : > { %v1236_v27 = vpack.i.b16 %v1235_v24, %v1234_v26 }
 0x445   : > { %2650 = vmatmul.mubr.msk.bf16.vlgmr.msra.gmra.mrb[4].mxu0 %vm1261_vm3, %v1227_v2  ;;  %v1607_v28 = vand.u32 %v4084_v1, %v1254_v25  ;;  %v2931_v1 = vld [vmem:[#allocation11] sm:$0xff]  }
 0x446   : > { %2654 = vmatpush3.bf16.xpose.msra.mxu0 %v1313_v9  ;;  %2662 = vmatmul.mubr.msk.bf16.vlgmr.msra.gmra.mrb[0].mxu1 %vm1261_vm3, %v1233_v8 }
 0x447   : > { %2672 = vmatpush3.bf16.msra.mxu1 %v1560_v10  ;;  %2655 = vmatprep.mubr.msk.bf16.mxu0 %vm3501_vm2, %v3500_v15 }
 0x448   : > { %2665 = vmatprep.subr.bf16.mxu0 %v3500_v15  ;;  %2673 = vmatprep.mubr.msk.bf16.mxu1 %vm3501_vm2, %v3500_v15 }
 0x449   : > { %2683 = vmatprep.subr.bf16.mxu1 %v3500_v15 }
 0x44d   : > { %2656 = vmatmul.mubr.msk.bf16.vlgmr.msra.gmra.mrb[8].mxu0 %vm1261_vm3, %v1230_v19 }
 0x44e   : > { %2666 = vmatpush3.bf16.xpose.msra.mxu0 %v1407_v22  ;;  %2667 = vmatprep.mubr.msk.bf16.mxu0 %vm3501_vm2, %v3500_v15 }
 0x44f   : > { %2677 = vmatprep.subr.bf16.mxu0 %v3500_v15 }
 0x455   : > { %2668 = vmatmul.mubr.msk.bf16.vlgmr.msra.gmra.mrb[12].mxu0 %vm1261_vm3, %v1236_v27 }
 0x456   : > { %2678 = vmatpush3.bf16.msra.mxu0 %v1607_v28  ;;  %2679 = vmatprep.mubr.msk.bf16.mxu0 %vm3501_vm2, %v3500_v15 }
 0x457   : > { %2689 = vmatprep.subr.bf16.mxu0 %v3500_v15 }
 0x518   : > { %v1302_v29 = vpop.f32.mrb[4].mxu0 }
 0x519   : > { %v2651_v30 = vpop.f32.mrb[5].mxu0  ;;  %v1396_v31 = vpop.f32.mrb[0].mxu1  ;;  %v1451_v32 = vsel %vm1450_vm6, %v1302_v29, -inf }
 0x51a   : > { %1452 = vmax.xlane.f32.xlu1 %v1451_v32  ;;  %v1305_v33 = vpop.f32.mrb[6].mxu0  ;;  %v2663_v34 = vpop.f32.mrb[1].mxu1  ;;  %v1464_v39 = vsel %vm1450_vm6, %v1396_v31, -inf }
 0x51b   : > { %v2652_v35 = vpop.f32.mrb[7].mxu0  ;;  %v1399_v36 = vpop.f32.mrb[2].mxu1  ;;  %v1455_v37 = vsel %vm1454_vm7, %v1305_v33, -inf }
 0x51c   : > { %1456 = vmax.xlane.f32.xlu0 %v1455_v37  ;;  %v2664_v38 = vpop.f32.mrb[3].mxu1  ;;  %v1467_v48 = vsel %vm1454_vm7, %v1399_v36, -inf }
 0x51e   : > { %1465 = vmax.xlane.f32.xlu1 %v1464_v39 }
 0x520   : > { %v1349_v40 = vpop.f32.mrb[8].mxu0 }
 0x521   : > { %v2657_v41 = vpop.f32.mrb[9].mxu0  ;;  %v1458_v42 = vsel %vm1450_vm6, %v1349_v40, -inf }
 0x522   : > { %1459 = vmax.xlane.f32.xlu0 %v1458_v42  ;;  %v1352_v43 = vpop.f32.mrb[10].mxu0 }
 0x523   : > { %v2658_v44 = vpop.f32.mrb[11].mxu0  ;;  %v1461_v45 = vsel %vm1454_vm7, %v1352_v43, -inf }
 0x526   : > { %1462 = vmax.xlane.f32.xlu0 %v1461_v45 }
 0x528   : > { %v1443_v46 = vpop.f32.mrb[12].mxu0 }
 0x529   : > { %v2669_v47 = vpop.f32.mrb[13].mxu0  ;;  %v1470_v49 = vsel %vm1450_vm6, %v1443_v46, -inf }
 0x52a   : > { %1468 = vmax.xlane.f32.xlu0 %v1467_v48  ;;  %1471 = vmax.xlane.f32.xlu1 %v1470_v49  ;;  %v1446_v50 = vpop.f32.mrb[14].mxu0 }
 0x52b   : > { %v2670_v51 = vpop.f32.mrb[15].mxu0  ;;  %v1473_v52 = vsel %vm1454_vm7, %v1446_v50, -inf }
 0x52e   : > { %1474 = vmax.xlane.f32.xlu0 %v1473_v52 }
 0x5a7   : > { %v1453_v53 = vpop.xlane.xlu1 %1452 }
 0x5a8   : > { %v1476_v54 = vsub.f32 %v1302_v29, %v1453_v53 }
 0x5a9   : > { %v1457_v55 = vpop.xlane.xlu0 %1456 }
 0x5aa   : > { %v1484_v57 = vmul.f32 1.442695, %v1476_v54  ;;  %v1477_v58 = vsub.f32 %v1305_v33, %v1457_v55 }
 0x5ab   : > { %v1466_v59 = vpop.xlane.xlu1 %1465 }
 0x5ac   : > { %2947 = vpow2.f32 %v1484_v57  ;;  %v1486_v60 = vmul.f32 1.442695, %v1477_v58  ;;  %v1480_v61 = vsub.f32 %v1396_v31, %v1466_v59 }
 0x5ae   : > { %2949 = vpow2.f32 %v1486_v60  ;;  %v1492_v0 = vmul.f32 1.442695, %v1480_v61 }
 0x5af   : > { %v1460_v62 = vpop.xlane.xlu0 %1459 }
 0x5b0   : > { %v1478_v63 = vsub.f32 %v1349_v40, %v1460_v62 }
 0x5b2   : > { %v1488_v2 = vmul.f32 1.442695, %v1478_v63 }
 0x5b3   : > { %v1463_v3 = vpop.xlane.xlu0 %1462 }
 0x5b4   : > { %2951 = vpow2.f32 %v1488_v2  ;;  %v1479_v4 = vsub.f32 %v1352_v43, %v1463_v3 }
 0x5b5   : > { %2953 = vpow2.f32 %v1492_v0 }
 0x5b6   : > { %v2948_v5 = vpop.eup %2947  ;;  %v1490_v7 = vmul.f32 1.442695, %v1479_v4 }
 0x5b7   : > { %v1469_v8 = vpop.xlane.xlu0 %1468  ;;  %v1472_v9 = vpop.xlane.xlu1 %1471  ;;  %v1500_v10 = vsel %vm1450_vm6, %v2948_v5, 0.0 }
 0x5b8   : > { %v2950_v13 = vpop.eup %2949  ;;  %2955 = vpow2.f32 %v1490_v7  ;;  %v1481_v14 = vsub.f32 %v1399_v36, %v1469_v8  ;;  %v1482_v16 = vsub.f32 %v1443_v46, %v1472_v9  ;;  %1501 = vadd.xlane.f32.xlu1 %v1500_v10 }
 0x5b9   : > { %v1503_v18 = vsel %vm1454_vm7, %v2950_v13, 0.0 }
 0x5ba   : > { %v1494_v19 = vmul.f32 1.442695, %v1481_v14  ;;  %v1496_v20 = vmul.f32 1.442695, %v1482_v16  ;;  %1504 = vadd.xlane.f32.xlu0 %v1503_v18 }
 0x5bb   : > { %v1475_v21 = vpop.xlane.xlu0 %1474 }
 0x5bc   : > { %2957 = vpow2.f32 %v1494_v19  ;;  %v1483_v22 = vsub.f32 %v1446_v50, %v1475_v21 }
 0x5bd   : > { %2959 = vpow2.f32 %v1496_v20 }
 0x5be   : > { %v2952_v24 = vpop.eup %2951  ;;  %v1498_v25 = vmul.f32 1.442695, %v1483_v22 }
 0x5bf   : > { %v1506_v26 = vsel %vm1450_vm6, %v2952_v24, 0.0  ;;  %v2954_v27 = vpop.eup %2953 }
 0x5c0   : > { %2961 = vpow2.f32 %v1498_v25  ;;  %1507 = vadd.xlane.f32.xlu1 %v1506_v26  ;;  %v1512_v29 = vsel %vm1450_vm6, %v2954_v27, 0.0 }
 0x5c2   : > { %v2956_v28 = vpop.eup %2955 }
 0x5c3   : > { %v1509_v30 = vsel %vm1454_vm7, %v2956_v28, 0.0 }
 0x5c4   : > { %1513 = vadd.xlane.f32.xlu1 %v1512_v29  ;;  %1510 = vadd.xlane.f32.xlu0 %v1509_v30 }
 0x5c6   : > { %v2958_v31 = vpop.eup %2957 }
 0x5c7   : > { %v2960_v32 = vpop.eup %2959  ;;  %v1515_v33 = vsel %vm1454_vm7, %v2958_v31, 0.0 }
 0x5c8   : > { %v1518_v34 = vsel %vm1450_vm6, %v2960_v32, 0.0  ;;  %1516 = vadd.xlane.f32.xlu0 %v1515_v33 }
 0x5c9   : > { %1519 = vadd.xlane.f32.xlu1 %v1518_v34 }
 0x5ca   : > { %v2962_v35 = vpop.eup %2961 }
 0x5cb   : > { %v1521_v36 = vsel %vm1454_vm7, %v2962_v35, 0.0 }
 0x5cc   : > { %1522 = vadd.xlane.f32.xlu0 %v1521_v36 }
 0x645   : > { %v1502_v37 = vpop.xlane.xlu1 %1501 }
 0x646   : > { %2963 = vrcp.f32 %v1502_v37 }
 0x647   : > { %v1505_v38 = vpop.xlane.xlu0 %1504 }
 0x648   : > { %2965 = vrcp.f32 %v1505_v38 }
 0x64d   : > { %v1508_v39 = vpop.xlane.xlu1 %1507 }
 0x64e   : > { %2967 = vrcp.f32 %v1508_v39 }
 0x650   : > { %v2964_v40 = vpop.eup %2963 }
 0x651   : > { %v1514_v41 = vpop.xlane.xlu1 %1513  ;;  %v1511_v42 = vpop.xlane.xlu0 %1510  ;;  %v1532_v44 = vmul.f32 %v2964_v40, %v2948_v5 }
 0x652   : > { %v2966_v43 = vpop.eup %2965  ;;  %2969 = vrcp.f32 %v1514_v41 }
 0x653   : > { %v1533_v45 = vmul.f32 %v2966_v43, %v2950_v13  ;;  %2971 = vrcp.f32 %v1511_v42  ;;  %v1541_v52 = vsel %vm1540_vm8, %v1532_v44, 0.0 }
 0x655   : > { %v1517_v46 = vpop.xlane.xlu0 %1516  ;;  %v1548_v47 = vpack.c.bf16 %v1533_v45, %v1532_v44 }
 0x656   : > { %v1520_v48 = vpop.xlane.xlu1 %1519  ;;  %2973 = vrcp.f32 %v1517_v46 }
 0x657   : > { %2975 = vrcp.f32 %v1520_v48  ;;  %2674 = vmatmul.mubr.msk.bf16.vlgmr.msra.gmra.mrb[4].mxu1 %vm1450_vm6, %v1548_v47 }
 0x658   : > { %v2968_v49 = vpop.eup %2967  ;;  %2684 = vmatpush3.bf16.msra.mxu1 %v4090_v11  ;;  %2685 = vmatprep.mubr.msk.bf16.mxu1 %vm3501_vm2, %v3500_v15 }
 0x659   : > { %v1534_v50 = vmul.f32 %v2968_v49, %v2952_v24  ;;  %v1523_v51 = vpop.xlane.xlu0 %1522  ;;  %2695 = vmatprep.subr.bf16.mxu1 %v3500_v15 }
 0x65a   : > { %2977 = vrcp.f32 %v1523_v51 }
 0x65b   : > { %v1542_v53 = vsel %vm1540_vm8, %v1534_v50, 0.0 }
 0x65c   : > { %v2970_v54 = vpop.eup %2969  ;;  %v1543_v55 = vadd.f32 %v1542_v53, %v1541_v52 }
 0x65d   : > { %v2972_v57 = vpop.eup %2971  ;;  %v1536_v58 = vmul.f32 %v2970_v54, %v2954_v27 }
 0x65e   : > { %v1535_v59 = vmul.f32 %v2972_v57, %v2956_v28 }
 0x65f   : > { %v1544_v11 = vsel %vm1540_vm8, %v1536_v58, 0.0 }
 0x660   : > { %v2974_v60 = vpop.eup %2973  ;;  %v1549_v61 = vpack.c.bf16 %v1535_v59, %v1534_v50  ;;  %v1545_v62 = vadd.f32 %v1544_v11, %v1543_v55 }
 0x661   : > { %v2976_v63 = vpop.eup %2975  ;;  %v1537_v0 = vmul.f32 %v2974_v60, %v2958_v31 }
 0x662   : > { %v1538_v2 = vmul.f32 %v2976_v63, %v2960_v32  ;;  %2680 = vmatmul.mubr.msk.bf16.vlgmr.msra.gmra.mrb[16].mxu0 %vm1450_vm6, %v1549_v61 }
 0x663   : > { %2690 = vmatpush3.bf16.msra.mxu0 %v1701_v17  ;;  %v1550_v3 = vpack.c.bf16 %v1537_v0, %v1536_v58  ;;  %2691 = vmatprep.mubr.msk.bf16.mxu0 %vm3501_vm2, %v3500_v15 }
 0x664   : > { %v2978_v4 = vpop.eup %2977  ;;  %v1546_v5 = vsel %vm1540_vm8, %v1538_v2, 0.0  ;;  %2703 = vmatprep.subr.bf16.mxu0 %v3500_v15 }
 0x665   : > { %v1539_v7 = vmul.f32 %v2978_v4, %v2962_v35  ;;  %2686 = vmatmul.mubr.msk.bf16.vlgmr.msra.gmra.mrb[8].mxu1 %vm1450_vm6, %v1550_v3  ;;  %v4146_v8 = vadd.f32 %v1546_v5, %v1545_v62 }
 0x666   : > { %2699 = vmatprep.mubr.msk.bf16.mxu1 %vm3501_vm2, %v3500_v15  ;;  %2696 = vmatpush3.bf16.msra.mxu1 %v2931_v1 }
 0x667   : > { %v1551_v9 = vpack.c.bf16 %v1539_v7, %v1538_v2  ;;  %2697 = vmatprep.subr.bf16.mxu1 %v3500_v15 }
 0x66a   : > { %2692 = vmatmul.mubr.msk.bf16.vlgmr.msra.gmra.mrb[20].mxu0 %vm1450_vm6, %v1551_v9 }
 0x66b   : > { %2707 = vmatprep.mubr.msk.bf16.mxu0 %vm3501_vm2, %v3500_v15 }
 0x72a   : > { %v1596_v12 = vpop.f32.mrb[4].mxu1 }
 0x72b   : > { %v2675_v17 = vpop.f32.mrb[5].mxu1 }
 0x72c   : > { %v1599_v10 = vpop.f32.mrb[6].mxu1 }
 0x72d   : > { %v1744_v13 = vpack.c.bf16 %v1599_v10, %v1596_v12  ;;  %v2676_v14 = vpop.f32.mrb[7].mxu1 }
 0x72f   : > { %v1754_v29 = vrot.slane %v1744_v13, %v4028_v56  ;;  %v2932_v13 = vld [vmem:[#allocation11 + $0x8] sm:$0xff]  }
 0x730   : > { %2698 = vmatpush3.bf16.msra.mxu1 %v2932_v13 }
 0x731   : > { %2711 = vmatprep.subr.bf16.mxu1 %v3500_v15 }
 0x735   : > { %v1643_v16 = vpop.f32.mrb[16].mxu0 }
 0x736   : > { %v2681_v18 = vpop.f32.mrb[17].mxu0 }
 0x737   : > { %v1646_v19 = vpop.f32.mrb[18].mxu0 }
 0x738   : > { %v1745_v20 = vpack.c.bf16 %v1646_v19, %v1643_v16  ;;  %v2682_v21 = vpop.f32.mrb[19].mxu0  ;;  %v1690_v22 = vpop.f32.mrb[8].mxu1 }
 0x739   : > { %v2687_v24 = vpop.f32.mrb[9].mxu1 }
 0x73a   : > { %v1693_v25 = vpop.f32.mrb[10].mxu1  ;;  %v1796_v40 = vrot.slane %v1745_v20, %v4028_v56 }
 0x73b   : > { %v1746_v26 = vpack.c.bf16 %v1693_v25, %v1690_v22  ;;  %v2576_v27 = vpack.c.bf16 %v1693_v25, %v1599_v10  ;;  %v2688_v28 = vpop.f32.mrb[11].mxu1 }
 0x73d   : > { %v1762_v30 = vrot.slane %v1746_v26, %v4028_v56  ;;  %v1737_v31 = vpop.f32.mrb[20].mxu0  ;;  %v1789_v41 = vrot.slane %v2576_v27, %v4033_v6 }
 0x73e   : > { %v2693_v32 = vpop.f32.mrb[21].mxu0 }
 0x73f   : > { %v1764_v33 = vcombine.low %v1754_v29, %v1762_v30  ;;  %v1765_v34 = vcombine.high %v1754_v29, %v1762_v30  ;;  %v1740_v35 = vpop.f32.mrb[22].mxu0 }
 0x740   : > { %v1747_v36 = vpack.c.bf16 %v1740_v35, %v1737_v31  ;;  %v2577_v37 = vpack.c.bf16 %v1740_v35, %v1646_v19  ;;  %v2694_v38 = vpop.f32.mrb[23].mxu0 }
 0x741   : > { %v1772_v39 = vrot.slane %v1764_v33, %v4033_v6  ;;  %v1779_v44 = vrot.slane %v1765_v34, %v4033_v6 }
 0x742   : > { %v1804_v42 = vrot.slane %v1747_v36, %v4028_v56  ;;  %v1831_v43 = vrot.slane %v2577_v37, %v4033_v6 }
 0x743   : > { %v1781_v48 = vcombine.high %v1772_v39, %v3515_v23  ;;  %v1782_v51 = vcombine.high %v1779_v44, %v3515_v23  ;;  %v1836_v52 = vshrl.u32 %v1772_v39, 16  ;;  %v1852_v59 = vshrl.u32 %v1779_v44, 16 }
 0x744   : > { %v1806_v45 = vcombine.low %v1796_v40, %v1804_v42  ;;  %v1807_v46 = vcombine.high %v1796_v40, %v1804_v42  ;;  %v1866_v47 = vpack.i.b16 %v1831_v43, %v1789_v41 }
 0x745   : > { %v1844_v58 = vshrl.u32 %v1781_v48, 16  ;;  %v1860_v2 = vshrl.u32 %v1782_v51, 16 }
 0x746   : > { %v1814_v49 = vrot.slane %v1806_v45, %v4033_v6  ;;  %v1821_v50 = vrot.slane %v1807_v46, %v4033_v6  ;;  %v1898_v20 = vrot.slane %v1866_v47, %v4033_v6 }
 0x748   : > { %v1823_v53 = vcombine.high %v1814_v49, %v3515_v23  ;;  %v1824_v54 = vcombine.high %v1821_v50, %v3515_v23  ;;  %v1834_v55 = vpack.i.b16 %v1814_v49, %v1772_v39  ;;  %v1837_v57 = vshrl.u32 %v1814_v49, 16  ;;  %v2578_v39 = vld [vmem:[#allocation13] ss:$0 sm:$0xff] }
 0x749   : > { %v1850_v11 = vpack.i.b16 %v1821_v50, %v1779_v44  ;;  %v1853_v60 = vshrl.u32 %v1821_v50, 16  ;;  %v2991_v44 = vld [vmem:[%s3981_s22] sm:$0xff] }
 0x74a   : > { %v1838_v61 = vpack.i.b16 %v1837_v57, %v1836_v52  ;;  %v1842_v62 = vpack.i.b16 %v1823_v53, %v1781_v48  ;;  %v1845_v63 = vshrl.u32 %v1823_v53, 16  ;;  %v1858_v0 = vpack.i.b16 %v1824_v54, %v1782_v51  ;;  %v2992_v48 = vld [vmem:[%s3981_s22 + $0x8] sm:$0x1]  ;;  %s3520_s22 = smov 127  }
 0x74b   : > { %v1854_v3 = vpack.i.b16 %v1853_v60, %v1852_v59  ;;  %v1861_v4 = vshrl.u32 %v1824_v54, 16  ;;  %v1867_v5 = vcombine.low %v1834_v55, %v1850_v11 }
 0x74c   : > { %v1846_v7 = vpack.i.b16 %v1845_v63, %v1844_v58  ;;  %v1875_v9 = vcombine.low %v1842_v62, %v1858_v0  ;;  %v2933_v62 = vld [vmem:[#allocation17] sm:$0xff]   ;;  %v2934_v63 = vld [vmem:[#allocation17 + $0x8] sm:$0xff]  }
 0x74d   : > { %v1862_v1 = vpack.i.b16 %v1861_v4, %v1860_v2  ;;  %v1901_v12 = vcombine.low %v1838_v61, %v1854_v3  ;;  %v1874_v17 = vrot.slane %v1867_v5, %v4028_v56  ;;  %2704 = vmatpush3.bf16.msra.mxu0 %v2933_v62 }
 0x74e   : > { %v1882_v10 = vrot.slane %v1875_v9, %v4028_v56  ;;  %2705 = vmatprep.subr.bf16.mxu0 %v3500_v15 }
 0x74f   : > { %v1909_v14 = vcombine.low %v1846_v7, %v1862_v1  ;;  %v1908_v18 = vrot.slane %v1901_v12, %v4028_v56  ;;  %v2582_v12 = vld [vmem:[#allocation14] ss:$0 sm:$0xff] }
 0x750   : > { %v1883_v16 = vcombine.low %v1874_v17, %v1882_v10 }
 0x751   : > { %v1916_v19 = vrot.slane %v1909_v14, %v4028_v56  ;;  %2706 = vmatpush3.bf16.msra.mxu0 %v2934_v63 }
 0x752   : > { %v1890_v21 = vrot.slane %v1883_v16, %v4033_v6  ;;  %v2583_v16 = vld [vmem:[#allocation16] ss:$0 sm:$0xff] }
 0x753   : > { %v1917_v22 = vcombine.low %v1908_v18, %v1916_v19 }
 0x754   : > { %v1900_v24 = vcombine.high %v1890_v21, %v1898_v20  ;;  %v1899_v25 = vcombine.low %v1890_v21, %v1898_v20 }
 0x755   : > { %v1924_v26 = vrot.slane %v1917_v22, %v4033_v6  ;;  %v2935_v22 = vld [vmem:[#allocation20] sm:$0xff]  }
 0x756   : > { %v1929_v27 = vshrl.u32 %v1899_v25, 16  ;;  %v1935_v33 = vshrl.u32 %v1900_v24, 16 }
 0x757   : > { %v1925_v28 = vcombine.high %v1924_v26, %v3515_v23  ;;  %v1930_v29 = vshrl.u32 %v1924_v26, 16  ;;  %v1928_v30 = vpack.i.b16 %v1924_v26, %v1899_v25  ;;  %v2937_v25 = vld [vmem:[#allocation20 + $0x10] sm:$0xff]   ;;  %v2938_v26 = vld [vmem:[#allocation20 + $0x18] sm:$0xff]  }
 0x759   : > { %v1934_v31 = vpack.i.b16 %v1925_v28, %v1900_v24  ;;  %v1931_v32 = vpack.i.b16 %v1930_v29, %v1929_v27  ;;  %v1936_v56 = vshrl.u32 %v1925_v28, 16  ;;  %v2936_v24 = vld [vmem:[#allocation20 + $0x8] sm:$0xff]   ;;  %v2939_v27 = vld [vmem:[#allocation20 + $0x20] sm:$0xff]   ;;  %v2941_v29 = vld [vmem:[#allocation20 + $0x30] sm:$0xff]  }
 0x75a   : > { %v2940_v28 = vld [vmem:[#allocation20 + $0x28] sm:$0xff]  }
 0x75b   : > { %1940 = vrot.lane.b32.xlu0 %v1934_v31, %s3517_s2  ;;  %1938 = vrot.lane.b32.xlu1 %v1931_v32, %s4320_s1  ;;  %v1937_v34 = vpack.i.b16 %v1936_v56, %v1935_v33  ;;  %v2584_v31 = vld [vmem:[#allocation19] ss:$0 sm:$0xff]  ;;  %s3359_s2 = scalar_lea.vmem %s2316_s21, 16 }
 0x75c   : > { %p3360_p2 = scmp.ne.s32.totalorder %s2316_s21, %s3359_s2 }
 0x75e   : > { %p3361_p10 = pnand %p3360_p2, %p4359_p8 }
 0x75f   : > { %1942 = vrot.lane.b32.xlu1 %v1937_v34, %s3519_s27  ;;  %s3521_s27 = smov [#allocation24]  }
 0x760   : > { %p3362_p11 = pneg %p3361_p10 }
 0x7cd   : > { %v1939_v35 = vpop.permute.xlu1 %1938  ;;  %v1941_v6 = vpop.permute.xlu0 %1940 }
 0x7ce   : > { %v1946_v36 = vsel %vm1261_vm3, %v1928_v30, %v1939_v35  ;;  %v2942_v30 = vld [vmem:[#allocation20 + $0x38] sm:$0xff]  }
 0x7cf   : > { %v1949_v37 = vsel %vm1947_vm9, %v1946_v36, %v1941_v6 }
 0x7d1   : > { %v1943_v23 = vpop.permute.xlu1 %1942 }
 0x7d2   : > { %v1952_v38 = vsel %vm1950_vm10, %v1949_v37, %v1943_v23 }
 0x7d3   : > { %2700 = vmatmul.mubr.msk.bf16.vlgmr.msra.gmra.mrb[12].mxu1 %vm693_vm0, %v1952_v38 }
 0x7d4   : > { %2727 = vmatprep.mubr.msk.bf16.mxu1 %vm3501_vm2, %v3500_v15  ;;  %2712 = vmatpush3.bf16.msra.mxu1 %v2935_v22 }
 0x7d5   : > { %2713 = vmatprep.subr.bf16.mxu1 %v3500_v15 }
 0x7d8   : > { %2714 = vmatpush3.bf16.msra.mxu1 %v2936_v24 }
 0x7d9   : > { %2715 = vmatprep.subr.bf16.mxu1 %v3500_v15 }
 0x7dc   : > { %2716 = vmatpush3.bf16.msra.mxu1 %v2937_v25 }
 0x7dd   : > { %2717 = vmatprep.subr.bf16.mxu1 %v3500_v15 }
 0x7e0   : > { %2718 = vmatpush3.bf16.msra.mxu1 %v2938_v26 }
 0x7e1   : > { %2719 = vmatprep.subr.bf16.mxu1 %v3500_v15 }
 0x7e4   : > { %2720 = vmatpush3.bf16.msra.mxu1 %v2939_v27 }
 0x7e5   : > { %2721 = vmatprep.subr.bf16.mxu1 %v3500_v15 }
 0x7e8   : > { %2722 = vmatpush3.bf16.msra.mxu1 %v2940_v28 }
 0x7e9   : > { %2723 = vmatprep.subr.bf16.mxu1 %v3500_v15 }
 0x7ec   : > { %2724 = vmatpush3.bf16.msra.mxu1 %v2941_v29 }
 0x7ed   : > { %2725 = vmatprep.subr.bf16.mxu1 %v3500_v15 }
 0x7f0   : > { %2726 = vmatpush3.bf16.msra.mxu1 %v2942_v30 }
 0x8a6   : > { %v2007_v40 = vpop.f32.mrb[12].mxu1 }
 0x8a7   : > { %v2008_v41 = vadd.f32 %v2578_v39, %v2007_v40  ;;  %v2701_v42 = vpop.f32.mrb[13].mxu1 }
 0x8a8   : > { %v2010_v43 = vpop.f32.mrb[14].mxu1 }
 0x8a9   : > { %v4183_v45 = vadd.f32 %v2991_v44, %v2008_v41  ;;  %v2011_v46 = vadd.f32 %v2578_v39, %v2010_v43  ;;  %v2702_v47 = vpop.f32.mrb[15].mxu1 }
 0x8ab   : > { %v4186_v49 = vadd.f32 %v2992_v48, %v2011_v46  ;;  %v2016_v50 = vsel %vm693_vm0, %v4183_v45, 0.0 }
 0x8ac   : > { %2017 = vadd.xlane.f32.xlu1 %v2016_v50 }
 0x8ad   : > { %v2019_v51 = vsel %vm697_vm1, %v4186_v49, 0.0 }
 0x8ae   : > { %2020 = vadd.xlane.f32.xlu0 %v2019_v51 }
 0x939   : > { %v2018_v52 = vpop.xlane.xlu1 %2017 }
 0x93a   : > { %v2022_v53 = vmul.f32 0.03125, %v2018_v52 }
 0x93b   : > { %v2021_v54 = vpop.xlane.xlu0 %2020 }
 0x93c   : > { %v2024_v55 = vsub.f32 %v4183_v45, %v2022_v53  ;;  %v2023_v57 = vmul.f32 0.03125, %v2021_v54 }
 0x93e   : > { %v2025_v58 = vsub.f32 %v4186_v49, %v2023_v57  ;;  %v2026_v59 = vmul.f32 %v2024_v55, %v2024_v55 }
 0x940   : > { %v2028_v11 = vsel %vm693_vm0, %v2026_v59, 0.0  ;;  %v2027_v60 = vmul.f32 %v2025_v58, %v2025_v58 }
 0x941   : > { %2029 = vadd.xlane.f32.xlu0 %v2028_v11 }
 0x942   : > { %v2031_v61 = vsel %vm697_vm1, %v2027_v60, 0.0 }
 0x943   : > { %2032 = vadd.xlane.f32.xlu1 %v2031_v61 }
 0x957   : > { %2276 = vrot.lane.b32.xlu0 %v4146_v8, %s3520_s22  ;;  %s3363_s22 = sshll.u32 %s3521_s27, 4  ;;  %s3364_s22 = int_to_ptr.vmem [resolvable:$false] %s3363_s22 }
 0x958   : > { %s3365_s1 = scalar_lea.vmem %s3364_s22, 32  ;;  %p3366_p12 = scmp.lt.s32.totalorder %s2316_s21, %s3364_s22 }
 0x959   : > { %p3367_p0 = scmp.lt.s32.totalorder %s3365_s1, %s3359_s2 }
 0x95b   : > { %p3368_p5 = por %p3367_p0, %p3366_p12 }
 0x95d   : > { %p3369_p7 = pnand %p3368_p5, %p3362_p11 }
 0x9ce   : > { %v2030_v0 = vpop.xlane.xlu0 %2029 }
 0x9cf   : > { %v2034_v2 = vmul.f32 0.03125, %v2030_v0 }
 0x9d0   : > { %v2033_v3 = vpop.xlane.xlu1 %2032 }
 0x9d1   : > { %v2036_v4 = vadd.f32 1e-06, %v2034_v2  ;;  %v2035_v5 = vmul.f32 0.03125, %v2033_v3 }
 0x9d2   : > { %v2277_v7 = vpop.permute.xlu0 %2276 }
 0x9d3   : > { %2979 = vrsqrt.f32 %v2036_v4  ;;  %v2037_v9 = vadd.f32 1e-06, %v2035_v5  ;;  %v2279_v1 = vsel %vm1261_vm3, %v2277_v7, 0.0 }
 0x9d4   : > { %2280 = vst [vmem:[%s653_s28] sm:$0x1] %v2279_v1 }
 0x9d5   : > { %2981 = vrsqrt.f32 %v2037_v9 }
 0x9dd   : > { %v2980_v8 = vpop.eup %2979 }
 0x9de   : > { %v2040_v17 = vmul.f32 %v2980_v8, %v2024_v55 }
 0x9df   : > { %v2982_v10 = vpop.eup %2981 }
 0x9e0   : > { %v2048_v13 = vmul.f32 %v2582_v12, %v2040_v17  ;;  %v2041_v14 = vmul.f32 %v2982_v10, %v2025_v58 }
 0x9e2   : > { %v2049_v18 = vmul.f32 %v2582_v12, %v2041_v14  ;;  %v2056_v19 = vadd.f32 %v2583_v16, %v2048_v13 }
 0x9e4   : > { %v2057_v20 = vadd.f32 %v2583_v16, %v2049_v18 }
 0x9e6   : > { %v2058_v21 = vpack.c.bf16 %v2057_v20, %v2056_v19 }
 0x9e8   : > { %2708 = vmatmul.mubr.msk.bf16.vlgmr.msra.gmra.mrb[24].mxu0 %vm693_vm0, %v2058_v21 }
 0xabb   : > { %v2114_v32 = vpop.f32.mrb[24].mxu0 }
 0xabc   : > { %v2115_v33 = vadd.f32 %v2584_v31, %v2114_v32  ;;  %v2709_v56 = vpop.f32.mrb[25].mxu0 }
 0xabd   : > { %v2117_v34 = vpop.f32.mrb[26].mxu0 }
 0xabe   : > { %v2123_v35 = vmul.f32 0.70710677, %v2115_v33  ;;  %v2118_v6 = vadd.f32 %v2584_v31, %v2117_v34  ;;  %v2710_v36 = vpop.f32.mrb[27].mxu0  ;;  %v2121_v20 = vmul.f32 0.5, %v2115_v33 }
 0xac0   : > { %v2125_v23 = vand.u32 2147483647, %v2123_v35  ;;  %v2124_v37 = vmul.f32 0.70710677, %v2118_v6  ;;  %vm2165_vm11 = vcmp.ge.f32.partialorder %v2123_v35, 0.0  ;;  %v2122_v21 = vmul.f32 0.5, %v2118_v6 }
 0xac2   : > { %v2127_v38 = vmul.f32 0.3275911, %v2125_v23  ;;  %v2126_v39 = vand.u32 2147483647, %v2124_v37  ;;  %v2153_v15 = vsub.f32 0.0, %v2125_v23  ;;  %vm2166_vm12 = vcmp.ge.f32.partialorder %v2124_v37, 0.0 }
 0xac4   : > { %v2129_v40 = vadd.f32 1.0, %v2127_v38  ;;  %v2128_v41 = vmul.f32 0.3275911, %v2126_v39  ;;  %v2154_v43 = vsub.f32 0.0, %v2126_v39  ;;  %v2155_v46 = vmul.f32 %v2153_v15, %v2125_v23 }
 0xac6   : > { %2983 = vrcp.f32 %v2129_v40  ;;  %v2130_v42 = vadd.f32 1.0, %v2128_v41  ;;  %v2156_v51 = vmul.f32 %v2154_v43, %v2126_v39  ;;  %v2157_v52 = vmul.f32 1.442695, %v2155_v46 }
 0xac8   : > { %2985 = vrcp.f32 %v2130_v42  ;;  %v2159_v58 = vmul.f32 1.442695, %v2156_v51 }
 0xac9   : > { %2987 = vpow2.f32 %v2157_v52 }
 0xaca   : > { %2989 = vpow2.f32 %v2159_v58 }
 0xad0   : > { %v2984_v44 = vpop.eup %2983 }
 0xad1   : > { %v2135_v47 = vmul.f32 1.0614054, %v2984_v44 }
 0xad2   : > { %v2986_v48 = vpop.eup %2985 }
 0xad3   : > { %v2137_v50 = vadd.f32 -1.4531521, %v2135_v47  ;;  %v2136_v53 = vmul.f32 1.0614054, %v2986_v48  ;;  %v2988_v5 = vpop.eup %2987 }
 0xad4   : > { %v2990_v8 = vpop.eup %2989 }
 0xad5   : > { %v2139_v54 = vmul.f32 %v2984_v44, %v2137_v50  ;;  %v2138_v55 = vadd.f32 -1.4531521, %v2136_v53 }
 0xad7   : > { %v2141_v57 = vadd.f32 1.4214138, %v2139_v54  ;;  %v2140_v59 = vmul.f32 %v2986_v48, %v2138_v55 }
 0xad9   : > { %v2143_v11 = vmul.f32 %v2984_v44, %v2141_v57  ;;  %v2142_v60 = vadd.f32 1.4214138, %v2140_v59 }
 0xadb   : > { %v2145_v61 = vadd.f32 -0.28449672, %v2143_v11  ;;  %v2144_v62 = vmul.f32 %v2986_v48, %v2142_v60 }
 0xadd   : > { %v2147_v63 = vmul.f32 %v2984_v44, %v2145_v61  ;;  %v2146_v0 = vadd.f32 -0.28449672, %v2144_v62 }
 0xadf   : > { %v2149_v2 = vadd.f32 0.2548296, %v2147_v63  ;;  %v2148_v3 = vmul.f32 %v2986_v48, %v2146_v0 }
 0xae1   : > { %v2151_v4 = vmul.f32 %v2984_v44, %v2149_v2  ;;  %v2150_v7 = vadd.f32 0.2548296, %v2148_v3 }
 0xae3   : > { %v2161_v9 = vmul.f32 %v2988_v5, %v2151_v4  ;;  %v2152_v1 = vmul.f32 %v2986_v48, %v2150_v7 }
 0xae5   : > { %v2163_v12 = vsub.f32 1.0, %v2161_v9  ;;  %v2162_v17 = vmul.f32 %v2990_v8, %v2152_v1 }
 0xae7   : > { %v2167_v10 = vsub.f32 0.0, %v2163_v12  ;;  %v2164_v13 = vsub.f32 1.0, %v2162_v17 }
 0xae9   : > { %v2169_v14 = vsel %vm2165_vm11, %v2163_v12, %v2167_v10  ;;  %v2168_v16 = vsub.f32 0.0, %v2164_v13 }
 0xaea   : > { %v2171_v18 = vadd.f32 1.0, %v2169_v14 }
 0xaeb   : > { %v2170_v19 = vsel %vm2166_vm12, %v2164_v13, %v2168_v16 }
 0xaec   : > { %v2172_v22 = vadd.f32 1.0, %v2170_v19  ;;  %v2173_v24 = vmul.f32 %v2171_v18, %v2121_v20 }
 0xaee   : > { %v2174_v25 = vmul.f32 %v2172_v22, %v2122_v21 }
 0xaf0   : > { %v2175_v26 = vpack.c.bf16 %v2174_v25, %v2173_v24 }
 0xaf2   : > { %2728 = vmatmul.mubr.bf16.vlgmr.msra.gmra.mrb[16].mxu1 %v2175_v26 }
 0xaf3   : > { %3372 = shalt.err (!%p3369_p7)
}
 0xaf4   : > { %s3373_s28 = scalar_lea.hbm %s4214_s0, 16  ;;  %s3377_s14 = scalar_lea.hbm %s4358_s24, 32 }
 0xaf5   : > { %p3374_p6 = scmp.ne.s32.totalorder %s4214_s0, %s3373_s28  ;;  %p3378_p13 = scmp.lt.u32.totalorder %s4214_s0, %s4358_s24 }
 0xaf6   : > { %p3379_p1 = scmp.lt.u32.totalorder %s3377_s14, %s3373_s28  ;;  %p3381_p2 = scmp.lt.u32.totalorder %s3373_s28, %s4214_s0 }
 0xaf7   : > { %p3375_p9 = pnand %p3374_p6, %p4359_p8 }
 0xaf8   : > { %p3380_p3 = por %p3379_p1, %p3378_p13 }
 0xaf9   : > { %p3376_p4 = pneg %p3375_p9 }
 0xafa   : > { %p3382_p10 = por %p3381_p2, %p3380_p3 }
 0xafc   : > { %p3383_p11 = pnand %p3382_p10, %p3376_p4 }
 0xafe   : > { %3386 = shalt.err (!%p3383_p11)
}
 0xaff   : > { %2782 = dma.vmem_to_hbm [thread:$0]  (%p4359_p8), %s2316_s21, 16, %s4214_s0, %s2287_s18   ;;  %v2588_v27 = vld [vmem:[#allocation22] ss:$0 sm:$0xff] }
 0xb00   : > { %s2604_s1 = sshll.u32 %s4345_s20, 8  ;;  %s4360_s2 = sshll.u32 %s3975_s26, 4 }
 0xb01   : > { %s647_s25 = scalar_lea.vmem [#allocation23], %s4360_s2  ;;  %s4361_s27 = sld [smem:[#allocation41_spill]] }
 0xb02   : > { %s2299_s28 = sshll.u32 %s647_s25, 4  ;;  %s2282_s20 = scalar_lea.sflag [#allocation4], %s3975_s26  ;;  %s4247_s28 = int_to_ptr.vmem [resolvable:$true] %s2299_s28 }
 0xb03   : > { %s3387_s0 = scalar_lea.vmem %s4247_s28, 256  ;;  %s3522_s21 = smov [#allocation23]  }
 0xb04   : > { %p3388_p12 = scmp.ne.s32.totalorder %s4247_s28, %s3387_s0  ;;  %s3391_s18 = sshll.u32 %s3522_s21, 4  ;;  %s3392_s18 = int_to_ptr.vmem [resolvable:$false] %s3391_s18 }
 0xb05   : > { %p3394_p7 = scmp.lt.s32.totalorder %s4247_s28, %s3392_s18 }
 0xb06   : > { %p3389_p0 = pnand %p3388_p12, %p4359_p8 }
 0xb07   : > { %s4243_s22 = scalar_lea.hbm %s4361_s27, %s2604_s1  ;;  %s3393_s1 = scalar_lea.vmem %s3392_s18, 512 }
 0xb08   : > { %p3390_p5 = pneg %p3389_p0  ;;  %p3395_p6 = scmp.lt.s32.totalorder %s3393_s1, %s3387_s0 }
 0xb0a   : > { %p3396_p9 = por %p3395_p6, %p3394_p7 }
 0xb0c   : > { %p3397_p4 = pnand %p3396_p9, %p3390_p5 }
 0xbc5   : > { %v2264_v28 = vpop.f32.mrb[16].mxu1 }
 0xbc6   : > { %v2265_v29 = vadd.f32 %v2588_v27, %v2264_v28  ;;  %v2729_v30 = vpop.f32.mrb[17].mxu1 }
 0xbc7   : > { %v2267_v31 = vpop.f32.mrb[18].mxu1 }
 0xbc8   : > { %v2271_v32 = vadd.f32 %v2265_v29, %v4183_v45  ;;  %v2268_v33 = vadd.f32 %v2588_v27, %v2267_v31  ;;  %v2730_v56 = vpop.f32.mrb[19].mxu1 }
 0xbca   : > { %2273 = vst.msk [vmem:[%s647_s25] sm:$0xff] %vm693_vm0, %v2271_v32  ;;  %v2272_v34 = vadd.f32 %v2268_v33, %v4186_v49 }
 0xbcc   : > { %2274 = vst.msk [vmem:[%s647_s25 + $0x8] sm:$0x1] %vm697_vm1, %v2272_v34 }
 0xbcd   : > { %3400 = shalt.err (!%p3397_p4)
}
 0xbce   : > { %s3401_s2 = scalar_lea.hbm %s4243_s22, 256  ;;  %s3405_s14 = scalar_lea.hbm %s4361_s27, 512 }
 0xbcf   : > { %p3402_p13 = scmp.ne.s32.totalorder %s4243_s22, %s3401_s2  ;;  %p3406_p2 = scmp.lt.u32.totalorder %s4243_s22, %s4361_s27 }
 0xbd0   : > { %p3407_p10 = scmp.lt.u32.totalorder %s3405_s14, %s3401_s2  ;;  %p3409_p12 = scmp.lt.u32.totalorder %s3401_s2, %s4243_s22 }
 0xbd1   : > { %p3403_p1 = pnand %p3402_p13, %p4359_p8 }
 0xbd2   : > { %p3408_p11 = por %p3407_p10, %p3406_p2 }
 0xbd3   : > { %p3404_p3 = pneg %p3403_p1 }
 0xbd4   : > { %p3410_p0 = por %p3409_p12, %p3408_p11 }
 0xbd6   : > { %p3411_p5 = pnand %p3410_p0, %p3404_p3 }
 0xbd8   : > { %3414 = shalt.err (!%p3411_p5)
}
 0xbd9   : > { %s3523_s0 = smov 128   ;;  %s4362_s1 = smov 8  }
 0xbda   : > { %2781 = dma.vmem_to_hbm [thread:$0]  (%p4359_p8), %s4247_s28, 256, %s4243_s22, %s2282_s20, %s3523_s0, %s3523_s0, %s4362_s1  }
 0xbdb PF: > { %s2327_s25 = sand.u32 1, %s3469_s29   ;;  %p4363_p7 = scmp.ne.s32.totalorder %s4340_s13, 0 }
 0xbdc   : > { %p4364_p6 = scmp.ge.s32.totalorder %s3481_s16, 2  ;;  %s2328_s2 = scalar_lea.sflag [#allocation4], %s2327_s25 }
 0xbde   : > { %p2827_p9 = pnand %p4364_p6, %p4363_p7 }
 0xbe0   : > { %3460 = dma.done.wait (!%p2827_p9), %s2328_s2, 256  }
 0xbe1   : > { %3462 = vsyncadd (!%p2827_p9), %s2328_s2, 4294967040  ;;  %s2337_s19 = scalar_lea.sflag [#allocation25], %s2327_s25 }
 0xbe2   : > { %3464 = dma.done.wait (!%p2827_p9), %s2337_s19, 16  }
 0xbe3   : > { %3466 = vsyncadd (!%p2827_p9), %s2337_s19, 4294967280  ;;  %p37_p8 = scmp.ge.s32.totalorder %s3896_s23, 4   ;;  %s4365_s29 = smov %s3473_s30 }
 0xbe4   : > { %s4366_s30 = smov %s3477_s15  ;;  %s4367_s15 = smov %s3907_s17 }
 0xbe5   : > { %s4368_s16 = smov %s3896_s23  ;;  %39 = sbr.rel (!%p37_p8) target bundleno = 20 (0x14), region = 182 }
 0xbec   :  { %2341 = vsyncpa [#allocation3], 1 }
 0xbed   :  { %2343 = vsyncpa [#allocation3 + $0x1], 1 }
 0xbee   :  { %2344 = vsyncpa [#allocation6], 1 }
 0xbef   :  { %2345 = vsyncpa [#allocation9], 1 }
 0xbf0   :  { %2346 = vsyncpa [#allocation12], 1 }
 0xbf1   :  { %2347 = vsyncpa [#allocation15], 1 }
 0xbf2   :  { %2348 = vsyncpa [#allocation18], 1 }
 0xbf3   :  { %2349 = vsyncpa [#allocation21], 1 }
 0xbf4   :  { %2350 = vsyncpa [#allocation4], 1 }
 0xbf5   :  { %2352 = vsyncpa [#allocation4 + $0x1], 1 }
 0xbf6   :  { %2353 = vsyncpa [#allocation25], 1 }
 0xbf7   :  { %2355 = vsyncpa [#allocation25 + $0x1], 1 }

</bundles_post_ra>
